<compile_context>
chip_gen: v7x
topology: tpu7x:2x2x1
jax: 0.10.0
libtpu: 0.0.40
codegen_flags: <defaults>
</compile_context>

<pallas_src>
import functools

import jax
import jax.numpy as jnp
from jax.experimental import pallas as pl
from jax.experimental.pallas import tpu as pltpu

_LANE = 128   # f32 lane tile
_SUB = 8      # f32 sublane tile


def _round_up(x, m):
    return (x + m - 1) // m * m


def _mixer_kernel(x_ref, w1_ref, b1_ref, w2t_ref, b2c_ref,
                  wh_ref, bhr_ref, bhc_ref, wo_ref, bo_ref, o_ref,
                  *, n_hidden_layers, h_last):
    """Fused MLPMixer forward for one block of batch elements.

    All shapes are pre-padded by the wrapper so every operand is (8,128) aligned:
      x_ref : (Bb, Sp, Dp)
      w1    : (Dp, Hp)    b1  : (1, Hp)          first_layer
      w2t   : (Hp, Sp)    b2c : (Hp, 1)          second_layer weight, pre-transposed
      wh    : (L, Hp, Hp)                        hidden weights; even l: W, odd l: W^T
      bhr   : (L, 1, Hp)  bhc : (L, Hp, 1)       hidden biases (row / col form)
      wo    : (Hp, Op)    bo  : (1, Op)          last_layer
      o_ref : (Bb, Op)
    """
    f32 = jnp.float32
    Bb, Sp, Dp = x_ref.shape
    L = n_hidden_layers

    def dot(a, b):
        return jnp.dot(a, b, preferred_element_type=f32)

    # ---- first_layer + relu: fold the whole batch block into the matmul M dim ----
    x2d = x_ref[...].astype(f32).reshape(Bb * Sp, Dp)
    a1 = jnp.maximum(dot(x2d, w1_ref[...]) + b1_ref[...], 0.0)        # (Bb*Sp, Hp)
    # Per-batch "pre-transpose" blocks (torch holds their per-batch transpose).
    pre_b = [a1[b * Sp:(b + 1) * Sp, :] for b in range(Bb)]            # each (Sp, Hp)

    lastmat = None                                                     # -> (Bb, Hp)

    # ---- second_layer + relu, transpose folded: torch_next = relu(W2^T @ pre + b_col)
    if L == 0:
        # Only the row that feeds last_layer (x[:, -1, :]) is needed.
        w_row = w2t_ref[...][h_last:h_last + 1, :]                     # (1, Sp)
        b_sc = b2c_ref[...][h_last:h_last + 1, :]                      # (1, 1)
        lastmat = jnp.concatenate(
            [jnp.maximum(dot(w_row, p) + b_sc, 0.0) for p in pre_b], axis=0)
    else:
        w2t = w2t_ref[...]
        b2c = b2c_ref[...]
        torch_b = [jnp.maximum(dot(w2t, p) + b2c, 0.0) for p in pre_b]  # each (Hp, Hp)

        # ---- hidden mixer layers, alternating orientation.  The layer feeding
        # last_layer only computes the single row/column that survives x[:, -1, :].
        for l in range(L):
            is_last = l == L - 1
            w = wh_ref[l]                                               # (Hp, Hp)
            if l % 2 == 0:
                # torch-oriented input: pre_next = relu(torch @ W + b_row)
                if is_last:   # (L odd) only column h_last of the pre-form output matters
                    w_col = w[:, h_last:h_last + 1]                     # (Hp, 1)
                    b_sc = bhr_ref[l][:, h_last:h_last + 1]             # (1, 1)
                    rows = [jnp.transpose(jnp.maximum(dot(t, w_col) + b_sc, 0.0))
                            for t in torch_b]                           # each (1, Hp)
                    lastmat = jnp.concatenate(rows, axis=0)             # (Bb, Hp)
                else:
                    b_row = bhr_ref[l]                                  # (1, Hp)
                    pre_b = [jnp.maximum(dot(t, w) + b_row, 0.0) for t in torch_b]
            else:
                # transposed input: torch_next = relu(W^T @ pre + b_col); W^T pre-passed.
                if is_last:   # (L even) only row h_last of the torch-form output matters
                    w_row = w[h_last:h_last + 1, :]                     # (1, Hp)
                    b_sc = bhc_ref[l][h_last:h_last + 1, :]             # (1, 1)
                    rows = [jnp.maximum(dot(w_row, p) + b_sc, 0.0)      # each (1, Hp)
                            for p in pre_b]
                    lastmat = jnp.concatenate(rows, axis=0)             # (Bb, Hp)
                else:
                    b_col = bhc_ref[l]                                  # (Hp, 1)
                    torch_b = [jnp.maximum(dot(w, p) + b_col, 0.0) for p in pre_b]

    # ---- last_layer on the already-sliced "last token": lane-dense (Bb, Op) store ----
    y = dot(lastmat, wo_ref[...]) + bo_ref[...]                         # (Bb, Op)
    o_ref[...] = y.astype(o_ref.dtype)


def mlp_mixer_forward(x, params, *, batch_block=8):
    """x: (B, S, Din).  params = (w1, b1, w2, b2, wh, bh, wo, bo) with weights in
    (fan_in, fan_out) layout, 1-D biases, wh: (L, H, H), bh: (L, H)."""
    w1, b1, w2, b2, wh, bh, wo, bo = params
    B, S, Din = x.shape
    H = w1.shape[1]
    L = int(wh.shape[0])
    O = wo.shape[1]
    assert w2.shape[0] == S, "second_layer fan_in must equal n_seq"

    # ---- hardware-friendly padded sizes ------------------------------------
    Dp = _round_up(Din, _LANE)
    Sp = _round_up(S, _SUB)
    Hp = _round_up(H, _LANE)
    Op = _round_up(O, _LANE)
    Bb = _round_up(min(max(B, 1), batch_block), _SUB)   # batch block (multiple of 8)
    Bp = _round_up(B, Bb)
    dtype = x.dtype

    def pad_to(a, shape):
        out = jnp.zeros(shape, a.dtype)
        return out.at[tuple(slice(0, s) for s in a.shape)].set(a)

    # Zero-padding keeps the math exact: padded weight rows/cols are zero, padded
    # biases are zero, so any relu(bias) garbage in padded activation rows is
    # multiplied by zero weight rows before it can reach a real output.
    x_p = pad_to(x, (Bp, Sp, Dp))
    w1_p = pad_to(w1, (Dp, Hp))
    b1_p = pad_to(b1.reshape(1, H), (1, Hp))
    w2t_p = pad_to(w2.T, (Hp, Sp))                      # second_layer weight, pre-transposed
    b2c_p = pad_to(b2.reshape(H, 1), (Hp, 1))
    wo_p = pad_to(wo, (Hp, Op))
    bo_p = pad_to(bo.reshape(1, O), (1, Op))

    if L > 0:
        # Even hidden layers see torch-oriented activations (plain W); odd ones see
        # transposed activations, so pass W^T and the kernel never transposes.
        wh_or = jnp.stack([wh[l] if l % 2 == 0 else wh[l].T for l in range(L)])
        wh_p = pad_to(wh_or, (L, Hp, Hp))
        bhr_p = pad_to(bh.reshape(L, 1, H), (L, 1, Hp))
        bhc_p = pad_to(jnp.swapaxes(bh.reshape(L, 1, H), 1, 2), (L, Hp, 1))
    else:  # dummies; never read when L == 0
        wh_p = jnp.zeros((1, Hp, Hp), dtype)
        bhr_p = jnp.zeros((1, 1, Hp), dtype)
        bhc_p = jnp.zeros((1, Hp, 1), dtype)

    kernel = functools.partial(_mixer_kernel, n_hidden_layers=L, h_last=H - 1)

    const2 = lambda g: (0, 0)
    const3 = lambda g: (0, 0, 0)
    n_blocks = Bp // Bb

    # Rough VMEM budget: resident weights + pipelined x/out blocks + live activations.
    est = 4 * (w1_p.size + b1_p.size + w2t_p.size + b2c_p.size + wh_p.size
               + bhr_p.size + bhc_p.size + wo_p.size + bo_p.size)
    est += 4 * (2 * Bb * Sp * Dp + 2 * Bb * Op + 4 * Bb * Hp * Hp)
    vmem_limit = int(min(64 * 2**20, max(32 * 2**20, 2 * est)))

    out = pl.pallas_call(
        kernel,
        out_shape=jax.ShapeDtypeStruct((Bp, Op), dtype),
        grid=(n_blocks,),
        in_specs=[
            pl.BlockSpec((Bb, Sp, Dp), lambda g: (g, 0, 0)),   # x: one batch block
            pl.BlockSpec(w1_p.shape, const2),                  # weights/biases:
            pl.BlockSpec(b1_p.shape, const2),                  #   constant index maps
            pl.BlockSpec(w2t_p.shape, const2),                 #   -> fetched once and
            pl.BlockSpec(b2c_p.shape, const2),                 #   VMEM-resident across
            pl.BlockSpec(wh_p.shape, const3),                  #   the whole grid
            pl.BlockSpec(bhr_p.shape, const3),
            pl.BlockSpec(bhc_p.shape, const3),
            pl.BlockSpec(wo_p.shape, const2),
            pl.BlockSpec(bo_p.shape, const2),
        ],
        out_specs=pl.BlockSpec((Bb, Op), lambda g: (g, 0)),
        compiler_params=pltpu.CompilerParams(
            dimension_semantics=("parallel",),
            vmem_limit_bytes=vmem_limit,
        ),
    )(x_p, w1_p, b1_p, w2t_p, b2c_p, wh_p, bhr_p, bhc_p, wo_p, bo_p)
    return out[:B, :O]


def mlp_mixer_reference(x, params):
    """Literal JAX transcription of MLPMixer.forward (f32, highest precision)."""
    w1, b1, w2, b2, wh, bh, wo, bo = params
    hp = jax.lax.Precision.HIGHEST
    h = jax.nn.relu(jnp.einsum("bsd,dh->bsh", x, w1, precision=hp) + b1)
    h = jnp.swapaxes(h, 1, 2)
    h = jax.nn.relu(jnp.einsum("bhs,sk->bhk", h, w2, precision=hp) + b2)
    h = jnp.swapaxes(h, 1, 2)
    for l in range(wh.shape[0]):
        h = jax.nn.relu(jnp.einsum("bij,jk->bik", h, wh[l], precision=hp) + bh[l])
        h = jnp.swapaxes(h, 1, 2)
    return jnp.einsum("bh,ho->bo", h[:, -1, :], wo, precision=hp) + bo


def init_params(key, input_dim, hidden, n_seq, output_dim, n_hidden_layers):
    ks = jax.random.split(key, 8)

    def rnd(k, shape, fan_in):
        return jax.random.normal(k, shape, jnp.float32) / jnp.sqrt(float(fan_in))

    w1 = rnd(ks[0], (input_dim, hidden), input_dim)
    b1 = rnd(ks[1], (hidden,), input_dim)
    w2 = rnd(ks[2], (n_seq, hidden), n_seq)
    b2 = rnd(ks[3], (hidden,), n_seq)
    wh = rnd(ks[4], (n_hidden_layers, hidden, hidden), hidden)
    bh = rnd(ks[5], (n_hidden_layers, hidden), hidden)
    wo = rnd(ks[6], (hidden, output_dim), hidden)
    bo = rnd(ks[7], (output_dim,), hidden)
    return (w1, b1, w2, b2, wh, bh, wo, bo)


if __name__ == "__main__":
    # batch=2, seq=n_seq=16, input_dim=8, hidden=32, output_dim=1, 2 hidden layers
    B, S, Din, H, O, L = 2, 16, 8, 32, 1, 2
    key = jax.random.PRNGKey(0)
    kx, kp = jax.random.split(key)
    x = jax.random.normal(kx, (B, S, Din), dtype=jnp.float32)
    params = init_params(kp, Din, H, S, O, L)

    out = mlp_mixer_forward(x, params)
    out = jax.block_until_ready(out)

    ref = mlp_mixer_reference(x, params)
    assert out.shape == (B, O), out.shape
    assert jnp.allclose(out, ref, atol=1e-3, rtol=1e-3), (out, ref)
    print("KERNEL_OK")
</pallas_src>

<mosaic_0001>
module attributes {stable_mosaic.version = 11 : i64} {
  func.func @_mixer_kernel(%arg0: i32, %arg1: memref<8x16x128xf32, #tpu.memory_space<vmem>>, %arg2: memref<128x128xf32, #tpu.memory_space<vmem>>, %arg3: memref<1x128xf32, #tpu.memory_space<vmem>>, %arg4: memref<128x16xf32, #tpu.memory_space<vmem>>, %arg5: memref<128x1xf32, #tpu.memory_space<vmem>>, %arg6: memref<2x128x128xf32, #tpu.memory_space<vmem>>, %arg7: memref<2x1x128xf32, #tpu.memory_space<vmem>>, %arg8: memref<2x128x1xf32, #tpu.memory_space<vmem>>, %arg9: memref<128x128xf32, #tpu.memory_space<vmem>>, %arg10: memref<1x128xf32, #tpu.memory_space<vmem>>, %arg11: memref<8x128xf32, #tpu.memory_space<vmem>>) attributes {dimension_semantics = [#tpu.dimension_semantics<parallel>], iteration_bounds = array<i64: 1>, scalar_prefetch = 0 : i64, scratch_operands = 0 : i64, tpu.core_type = #tpu.core_type<tc>, window_params = [{transform_indices = @transform_0, window_bounds = array<i64: 8, 16, 128>}, {pipeline_mode = #tpu.pipeline_mode<synchronous>, transform_indices = @transform_1, window_bounds = array<i64: 128, 128>}, {pipeline_mode = #tpu.pipeline_mode<synchronous>, transform_indices = @transform_2, window_bounds = array<i64: 1, 128>}, {pipeline_mode = #tpu.pipeline_mode<synchronous>, transform_indices = @transform_3, window_bounds = array<i64: 128, 16>}, {pipeline_mode = #tpu.pipeline_mode<synchronous>, transform_indices = @transform_4, window_bounds = array<i64: 128, 1>}, {pipeline_mode = #tpu.pipeline_mode<synchronous>, transform_indices = @transform_5, window_bounds = array<i64: 2, 128, 128>}, {pipeline_mode = #tpu.pipeline_mode<synchronous>, transform_indices = @transform_6, window_bounds = array<i64: 2, 1, 128>}, {pipeline_mode = #tpu.pipeline_mode<synchronous>, transform_indices = @transform_7, window_bounds = array<i64: 2, 128, 1>}, {pipeline_mode = #tpu.pipeline_mode<synchronous>, transform_indices = @transform_8, window_bounds = array<i64: 128, 128>}, {pipeline_mode = #tpu.pipeline_mode<synchronous>, transform_indices = @transform_9, window_bounds = array<i64: 1, 128>}, {transform_indices = @transform_10, window_bounds = array<i64: 8, 128>}]} {
    %c0 = arith.constant 0 : index
    %c0_0 = arith.constant 0 : index
    %c0_1 = arith.constant 0 : index
    %0 = vector.load %arg1[%c0, %c0_0, %c0_1] : memref<8x16x128xf32, #tpu.memory_space<vmem>>, vector<8x16x128xf32>
    %1 = vector.shape_cast %0 : vector<8x16x128xf32> to vector<128x128xf32>
    %c0_2 = arith.constant 0 : index
    %c0_3 = arith.constant 0 : index
    %2 = vector.load %arg2[%c0_2, %c0_3] : memref<128x128xf32, #tpu.memory_space<vmem>>, vector<128x128xf32>
    %cst = arith.constant dense<0.000000e+00> : vector<128x128xf32>
    %3 = tpu.matmul %1, %2, %cst {dimension_numbers = #tpu.dot_dimension_numbers<[1], [0], [0], [1], [0, 0, 1, 1], [], []>} : vector<128x128xf32>, vector<128x128xf32>, vector<128x128xf32> -> vector<128x128xf32>
    %c0_4 = arith.constant 0 : index
    %c0_5 = arith.constant 0 : index
    %4 = vector.load %arg3[%c0_4, %c0_5] : memref<1x128xf32, #tpu.memory_space<vmem>>, vector<1x128xf32>
    %5 = vector.broadcast %4 : vector<1x128xf32> to vector<128x128xf32>
    %6 = arith.addf %3, %5 : vector<128x128xf32>
    %cst_6 = arith.constant 0.000000e+00 : f32
    %7 = vector.broadcast %cst_6 : f32 to vector<128x128xf32>
    %8 = arith.maximumf %6, %7 : vector<128x128xf32>
    %9 = vector.extract_strided_slice %8 {offsets = [0, 0], sizes = [16, 128], strides = [1, 1]} : vector<128x128xf32> to vector<16x128xf32>
    %10 = vector.extract_strided_slice %8 {offsets = [16, 0], sizes = [16, 128], strides = [1, 1]} : vector<128x128xf32> to vector<16x128xf32>
    %11 = vector.extract_strided_slice %8 {offsets = [32, 0], sizes = [16, 128], strides = [1, 1]} : vector<128x128xf32> to vector<16x128xf32>
    %12 = vector.extract_strided_slice %8 {offsets = [48, 0], sizes = [16, 128], strides = [1, 1]} : vector<128x128xf32> to vector<16x128xf32>
    %13 = vector.extract_strided_slice %8 {offsets = [64, 0], sizes = [16, 128], strides = [1, 1]} : vector<128x128xf32> to vector<16x128xf32>
    %14 = vector.extract_strided_slice %8 {offsets = [80, 0], sizes = [16, 128], strides = [1, 1]} : vector<128x128xf32> to vector<16x128xf32>
    %15 = vector.extract_strided_slice %8 {offsets = [96, 0], sizes = [16, 128], strides = [1, 1]} : vector<128x128xf32> to vector<16x128xf32>
    %16 = vector.extract_strided_slice %8 {offsets = [112, 0], sizes = [16, 128], strides = [1, 1]} : vector<128x128xf32> to vector<16x128xf32>
    %c0_7 = arith.constant 0 : index
    %c0_8 = arith.constant 0 : index
    %17 = vector.load %arg4[%c0_7, %c0_8] : memref<128x16xf32, #tpu.memory_space<vmem>>, vector<128x16xf32>
    %c0_9 = arith.constant 0 : index
    %c0_10 = arith.constant 0 : index
    %18 = vector.load %arg5[%c0_9, %c0_10] : memref<128x1xf32, #tpu.memory_space<vmem>>, vector<128x1xf32>
    %cst_11 = arith.constant dense<0.000000e+00> : vector<128x128xf32>
    %19 = tpu.matmul %17, %9, %cst_11 {dimension_numbers = #tpu.dot_dimension_numbers<[1], [0], [0], [1], [0, 0, 1, 1], [], []>} : vector<128x16xf32>, vector<16x128xf32>, vector<128x128xf32> -> vector<128x128xf32>
    %20 = vector.broadcast %18 : vector<128x1xf32> to vector<128x128xf32>
    %21 = arith.addf %19, %20 : vector<128x128xf32>
    %cst_12 = arith.constant 0.000000e+00 : f32
    %22 = vector.broadcast %cst_12 : f32 to vector<128x128xf32>
    %23 = arith.maximumf %21, %22 : vector<128x128xf32>
    %cst_13 = arith.constant dense<0.000000e+00> : vector<128x128xf32>
    %24 = tpu.matmul %17, %10, %cst_13 {dimension_numbers = #tpu.dot_dimension_numbers<[1], [0], [0], [1], [0, 0, 1, 1], [], []>} : vector<128x16xf32>, vector<16x128xf32>, vector<128x128xf32> -> vector<128x128xf32>
    %25 = vector.broadcast %18 : vector<128x1xf32> to vector<128x128xf32>
    %26 = arith.addf %24, %25 : vector<128x128xf32>
    %cst_14 = arith.constant 0.000000e+00 : f32
    %27 = vector.broadcast %cst_14 : f32 to vector<128x128xf32>
    %28 = arith.maximumf %26, %27 : vector<128x128xf32>
    %cst_15 = arith.constant dense<0.000000e+00> : vector<128x128xf32>
    %29 = tpu.matmul %17, %11, %cst_15 {dimension_numbers = #tpu.dot_dimension_numbers<[1], [0], [0], [1], [0, 0, 1, 1], [], []>} : vector<128x16xf32>, vector<16x128xf32>, vector<128x128xf32> -> vector<128x128xf32>
    %30 = vector.broadcast %18 : vector<128x1xf32> to vector<128x128xf32>
    %31 = arith.addf %29, %30 : vector<128x128xf32>
    %cst_16 = arith.constant 0.000000e+00 : f32
    %32 = vector.broadcast %cst_16 : f32 to vector<128x128xf32>
    %33 = arith.maximumf %31, %32 : vector<128x128xf32>
    %cst_17 = arith.constant dense<0.000000e+00> : vector<128x128xf32>
    %34 = tpu.matmul %17, %12, %cst_17 {dimension_numbers = #tpu.dot_dimension_numbers<[1], [0], [0], [1], [0, 0, 1, 1], [], []>} : vector<128x16xf32>, vector<16x128xf32>, vector<128x128xf32> -> vector<128x128xf32>
    %35 = vector.broadcast %18 : vector<128x1xf32> to vector<128x128xf32>
    %36 = arith.addf %34, %35 : vector<128x128xf32>
    %cst_18 = arith.constant 0.000000e+00 : f32
    %37 = vector.broadcast %cst_18 : f32 to vector<128x128xf32>
    %38 = arith.maximumf %36, %37 : vector<128x128xf32>
    %cst_19 = arith.constant dense<0.000000e+00> : vector<128x128xf32>
    %39 = tpu.matmul %17, %13, %cst_19 {dimension_numbers = #tpu.dot_dimension_numbers<[1], [0], [0], [1], [0, 0, 1, 1], [], []>} : vector<128x16xf32>, vector<16x128xf32>, vector<128x128xf32> -> vector<128x128xf32>
    %40 = vector.broadcast %18 : vector<128x1xf32> to vector<128x128xf32>
    %41 = arith.addf %39, %40 : vector<128x128xf32>
    %cst_20 = arith.constant 0.000000e+00 : f32
    %42 = vector.broadcast %cst_20 : f32 to vector<128x128xf32>
    %43 = arith.maximumf %41, %42 : vector<128x128xf32>
    %cst_21 = arith.constant dense<0.000000e+00> : vector<128x128xf32>
    %44 = tpu.matmul %17, %14, %cst_21 {dimension_numbers = #tpu.dot_dimension_numbers<[1], [0], [0], [1], [0, 0, 1, 1], [], []>} : vector<128x16xf32>, vector<16x128xf32>, vector<128x128xf32> -> vector<128x128xf32>
    %45 = vector.broadcast %18 : vector<128x1xf32> to vector<128x128xf32>
    %46 = arith.addf %44, %45 : vector<128x128xf32>
    %cst_22 = arith.constant 0.000000e+00 : f32
    %47 = vector.broadcast %cst_22 : f32 to vector<128x128xf32>
    %48 = arith.maximumf %46, %47 : vector<128x128xf32>
    %cst_23 = arith.constant dense<0.000000e+00> : vector<128x128xf32>
    %49 = tpu.matmul %17, %15, %cst_23 {dimension_numbers = #tpu.dot_dimension_numbers<[1], [0], [0], [1], [0, 0, 1, 1], [], []>} : vector<128x16xf32>, vector<16x128xf32>, vector<128x128xf32> -> vector<128x128xf32>
    %50 = vector.broadcast %18 : vector<128x1xf32> to vector<128x128xf32>
    %51 = arith.addf %49, %50 : vector<128x128xf32>
    %cst_24 = arith.constant 0.000000e+00 : f32
    %52 = vector.broadcast %cst_24 : f32 to vector<128x128xf32>
    %53 = arith.maximumf %51, %52 : vector<128x128xf32>
    %cst_25 = arith.constant dense<0.000000e+00> : vector<128x128xf32>
    %54 = tpu.matmul %17, %16, %cst_25 {dimension_numbers = #tpu.dot_dimension_numbers<[1], [0], [0], [1], [0, 0, 1, 1], [], []>} : vector<128x16xf32>, vector<16x128xf32>, vector<128x128xf32> -> vector<128x128xf32>
    %55 = vector.broadcast %18 : vector<128x1xf32> to vector<128x128xf32>
    %56 = arith.addf %54, %55 : vector<128x128xf32>
    %cst_26 = arith.constant 0.000000e+00 : f32
    %57 = vector.broadcast %cst_26 : f32 to vector<128x128xf32>
    %58 = arith.maximumf %56, %57 : vector<128x128xf32>
    %c0_27 = arith.constant 0 : index
    %c0_28 = arith.constant 0 : index
    %c0_29 = arith.constant 0 : index
    %59 = vector.load %arg6[%c0_27, %c0_28, %c0_29] : memref<2x128x128xf32, #tpu.memory_space<vmem>>, vector<1x128x128xf32>
    %60 = vector.shape_cast %59 : vector<1x128x128xf32> to vector<128x128xf32>
    %c0_30 = arith.constant 0 : index
    %c0_31 = arith.constant 0 : index
    %c0_32 = arith.constant 0 : index
    %61 = vector.load %arg7[%c0_30, %c0_31, %c0_32] : memref<2x1x128xf32, #tpu.memory_space<vmem>>, vector<1x1x128xf32>
    %62 = vector.shape_cast %61 : vector<1x1x128xf32> to vector<1x128xf32>
    %cst_33 = arith.constant dense<0.000000e+00> : vector<128x128xf32>
    %63 = tpu.matmul %23, %60, %cst_33 {dimension_numbers = #tpu.dot_dimension_numbers<[1], [0], [0], [1], [0, 0, 1, 1], [], []>} : vector<128x128xf32>, vector<128x128xf32>, vector<128x128xf32> -> vector<128x128xf32>
    %64 = vector.broadcast %62 : vector<1x128xf32> to vector<128x128xf32>
    %65 = arith.addf %63, %64 : vector<128x128xf32>
    %cst_34 = arith.constant 0.000000e+00 : f32
    %66 = vector.broadcast %cst_34 : f32 to vector<128x128xf32>
    %67 = arith.maximumf %65, %66 : vector<128x128xf32>
    %cst_35 = arith.constant dense<0.000000e+00> : vector<128x128xf32>
    %68 = tpu.matmul %28, %60, %cst_35 {dimension_numbers = #tpu.dot_dimension_numbers<[1], [0], [0], [1], [0, 0, 1, 1], [], []>} : vector<128x128xf32>, vector<128x128xf32>, vector<128x128xf32> -> vector<128x128xf32>
    %69 = vector.broadcast %62 : vector<1x128xf32> to vector<128x128xf32>
    %70 = arith.addf %68, %69 : vector<128x128xf32>
    %cst_36 = arith.constant 0.000000e+00 : f32
    %71 = vector.broadcast %cst_36 : f32 to vector<128x128xf32>
    %72 = arith.maximumf %70, %71 : vector<128x128xf32>
    %cst_37 = arith.constant dense<0.000000e+00> : vector<128x128xf32>
    %73 = tpu.matmul %33, %60, %cst_37 {dimension_numbers = #tpu.dot_dimension_numbers<[1], [0], [0], [1], [0, 0, 1, 1], [], []>} : vector<128x128xf32>, vector<128x128xf32>, vector<128x128xf32> -> vector<128x128xf32>
    %74 = vector.broadcast %62 : vector<1x128xf32> to vector<128x128xf32>
    %75 = arith.addf %73, %74 : vector<128x128xf32>
    %cst_38 = arith.constant 0.000000e+00 : f32
    %76 = vector.broadcast %cst_38 : f32 to vector<128x128xf32>
    %77 = arith.maximumf %75, %76 : vector<128x128xf32>
    %cst_39 = arith.constant dense<0.000000e+00> : vector<128x128xf32>
    %78 = tpu.matmul %38, %60, %cst_39 {dimension_numbers = #tpu.dot_dimension_numbers<[1], [0], [0], [1], [0, 0, 1, 1], [], []>} : vector<128x128xf32>, vector<128x128xf32>, vector<128x128xf32> -> vector<128x128xf32>
    %79 = vector.broadcast %62 : vector<1x128xf32> to vector<128x128xf32>
    %80 = arith.addf %78, %79 : vector<128x128xf32>
    %cst_40 = arith.constant 0.000000e+00 : f32
    %81 = vector.broadcast %cst_40 : f32 to vector<128x128xf32>
    %82 = arith.maximumf %80, %81 : vector<128x128xf32>
    %cst_41 = arith.constant dense<0.000000e+00> : vector<128x128xf32>
    %83 = tpu.matmul %43, %60, %cst_41 {dimension_numbers = #tpu.dot_dimension_numbers<[1], [0], [0], [1], [0, 0, 1, 1], [], []>} : vector<128x128xf32>, vector<128x128xf32>, vector<128x128xf32> -> vector<128x128xf32>
    %84 = vector.broadcast %62 : vector<1x128xf32> to vector<128x128xf32>
    %85 = arith.addf %83, %84 : vector<128x128xf32>
    %cst_42 = arith.constant 0.000000e+00 : f32
    %86 = vector.broadcast %cst_42 : f32 to vector<128x128xf32>
    %87 = arith.maximumf %85, %86 : vector<128x128xf32>
    %cst_43 = arith.constant dense<0.000000e+00> : vector<128x128xf32>
    %88 = tpu.matmul %48, %60, %cst_43 {dimension_numbers = #tpu.dot_dimension_numbers<[1], [0], [0], [1], [0, 0, 1, 1], [], []>} : vector<128x128xf32>, vector<128x128xf32>, vector<128x128xf32> -> vector<128x128xf32>
    %89 = vector.broadcast %62 : vector<1x128xf32> to vector<128x128xf32>
    %90 = arith.addf %88, %89 : vector<128x128xf32>
    %cst_44 = arith.constant 0.000000e+00 : f32
    %91 = vector.broadcast %cst_44 : f32 to vector<128x128xf32>
    %92 = arith.maximumf %90, %91 : vector<128x128xf32>
    %cst_45 = arith.constant dense<0.000000e+00> : vector<128x128xf32>
    %93 = tpu.matmul %53, %60, %cst_45 {dimension_numbers = #tpu.dot_dimension_numbers<[1], [0], [0], [1], [0, 0, 1, 1], [], []>} : vector<128x128xf32>, vector<128x128xf32>, vector<128x128xf32> -> vector<128x128xf32>
    %94 = vector.broadcast %62 : vector<1x128xf32> to vector<128x128xf32>
    %95 = arith.addf %93, %94 : vector<128x128xf32>
    %cst_46 = arith.constant 0.000000e+00 : f32
    %96 = vector.broadcast %cst_46 : f32 to vector<128x128xf32>
    %97 = arith.maximumf %95, %96 : vector<128x128xf32>
    %cst_47 = arith.constant dense<0.000000e+00> : vector<128x128xf32>
    %98 = tpu.matmul %58, %60, %cst_47 {dimension_numbers = #tpu.dot_dimension_numbers<[1], [0], [0], [1], [0, 0, 1, 1], [], []>} : vector<128x128xf32>, vector<128x128xf32>, vector<128x128xf32> -> vector<128x128xf32>
    %99 = vector.broadcast %62 : vector<1x128xf32> to vector<128x128xf32>
    %100 = arith.addf %98, %99 : vector<128x128xf32>
    %cst_48 = arith.constant 0.000000e+00 : f32
    %101 = vector.broadcast %cst_48 : f32 to vector<128x128xf32>
    %102 = arith.maximumf %100, %101 : vector<128x128xf32>
    %c1 = arith.constant 1 : index
    %c0_49 = arith.constant 0 : index
    %c0_50 = arith.constant 0 : index
    %103 = vector.load %arg6[%c1, %c0_49, %c0_50] : memref<2x128x128xf32, #tpu.memory_space<vmem>>, vector<1x128x128xf32>
    %104 = vector.shape_cast %103 : vector<1x128x128xf32> to vector<128x128xf32>
    %105 = vector.extract_strided_slice %104 {offsets = [31, 0], sizes = [1, 128], strides = [1, 1]} : vector<128x128xf32> to vector<1x128xf32>
    %c1_51 = arith.constant 1 : index
    %c0_52 = arith.constant 0 : index
    %c0_53 = arith.constant 0 : index
    %106 = vector.load %arg8[%c1_51, %c0_52, %c0_53] : memref<2x128x1xf32, #tpu.memory_space<vmem>>, vector<1x128x1xf32>
    %107 = vector.shape_cast %106 : vector<1x128x1xf32> to vector<128x1xf32>
    %108 = vector.extract_strided_slice %107 {offsets = [31, 0], sizes = [1, 1], strides = [1, 1]} : vector<128x1xf32> to vector<1x1xf32>
    %cst_54 = arith.constant dense<0.000000e+00> : vector<1x128xf32>
    %109 = tpu.matmul %105, %67, %cst_54 {dimension_numbers = #tpu.dot_dimension_numbers<[1], [0], [0], [1], [0, 0, 1, 1], [], []>} : vector<1x128xf32>, vector<128x128xf32>, vector<1x128xf32> -> vector<1x128xf32>
    %110 = vector.broadcast %108 : vector<1x1xf32> to vector<1x128xf32>
    %111 = arith.addf %109, %110 : vector<1x128xf32>
    %cst_55 = arith.constant 0.000000e+00 : f32
    %112 = vector.broadcast %cst_55 : f32 to vector<1x128xf32>
    %113 = arith.maximumf %111, %112 : vector<1x128xf32>
    %cst_56 = arith.constant dense<0.000000e+00> : vector<1x128xf32>
    %114 = tpu.matmul %105, %72, %cst_56 {dimension_numbers = #tpu.dot_dimension_numbers<[1], [0], [0], [1], [0, 0, 1, 1], [], []>} : vector<1x128xf32>, vector<128x128xf32>, vector<1x128xf32> -> vector<1x128xf32>
    %115 = vector.broadcast %108 : vector<1x1xf32> to vector<1x128xf32>
    %116 = arith.addf %114, %115 : vector<1x128xf32>
    %cst_57 = arith.constant 0.000000e+00 : f32
    %117 = vector.broadcast %cst_57 : f32 to vector<1x128xf32>
    %118 = arith.maximumf %116, %117 : vector<1x128xf32>
    %cst_58 = arith.constant dense<0.000000e+00> : vector<1x128xf32>
    %119 = tpu.matmul %105, %77, %cst_58 {dimension_numbers = #tpu.dot_dimension_numbers<[1], [0], [0], [1], [0, 0, 1, 1], [], []>} : vector<1x128xf32>, vector<128x128xf32>, vector<1x128xf32> -> vector<1x128xf32>
    %120 = vector.broadcast %108 : vector<1x1xf32> to vector<1x128xf32>
    %121 = arith.addf %119, %120 : vector<1x128xf32>
    %cst_59 = arith.constant 0.000000e+00 : f32
    %122 = vector.broadcast %cst_59 : f32 to vector<1x128xf32>
    %123 = arith.maximumf %121, %122 : vector<1x128xf32>
    %cst_60 = arith.constant dense<0.000000e+00> : vector<1x128xf32>
    %124 = tpu.matmul %105, %82, %cst_60 {dimension_numbers = #tpu.dot_dimension_numbers<[1], [0], [0], [1], [0, 0, 1, 1], [], []>} : vector<1x128xf32>, vector<128x128xf32>, vector<1x128xf32> -> vector<1x128xf32>
    %125 = vector.broadcast %108 : vector<1x1xf32> to vector<1x128xf32>
    %126 = arith.addf %124, %125 : vector<1x128xf32>
    %cst_61 = arith.constant 0.000000e+00 : f32
    %127 = vector.broadcast %cst_61 : f32 to vector<1x128xf32>
    %128 = arith.maximumf %126, %127 : vector<1x128xf32>
    %cst_62 = arith.constant dense<0.000000e+00> : vector<1x128xf32>
    %129 = tpu.matmul %105, %87, %cst_62 {dimension_numbers = #tpu.dot_dimension_numbers<[1], [0], [0], [1], [0, 0, 1, 1], [], []>} : vector<1x128xf32>, vector<128x128xf32>, vector<1x128xf32> -> vector<1x128xf32>
    %130 = vector.broadcast %108 : vector<1x1xf32> to vector<1x128xf32>
    %131 = arith.addf %129, %130 : vector<1x128xf32>
    %cst_63 = arith.constant 0.000000e+00 : f32
    %132 = vector.broadcast %cst_63 : f32 to vector<1x128xf32>
    %133 = arith.maximumf %131, %132 : vector<1x128xf32>
    %cst_64 = arith.constant dense<0.000000e+00> : vector<1x128xf32>
    %134 = tpu.matmul %105, %92, %cst_64 {dimension_numbers = #tpu.dot_dimension_numbers<[1], [0], [0], [1], [0, 0, 1, 1], [], []>} : vector<1x128xf32>, vector<128x128xf32>, vector<1x128xf32> -> vector<1x128xf32>
    %135 = vector.broadcast %108 : vector<1x1xf32> to vector<1x128xf32>
    %136 = arith.addf %134, %135 : vector<1x128xf32>
    %cst_65 = arith.constant 0.000000e+00 : f32
    %137 = vector.broadcast %cst_65 : f32 to vector<1x128xf32>
    %138 = arith.maximumf %136, %137 : vector<1x128xf32>
    %cst_66 = arith.constant dense<0.000000e+00> : vector<1x128xf32>
    %139 = tpu.matmul %105, %97, %cst_66 {dimension_numbers = #tpu.dot_dimension_numbers<[1], [0], [0], [1], [0, 0, 1, 1], [], []>} : vector<1x128xf32>, vector<128x128xf32>, vector<1x128xf32> -> vector<1x128xf32>
    %140 = vector.broadcast %108 : vector<1x1xf32> to vector<1x128xf32>
    %141 = arith.addf %139, %140 : vector<1x128xf32>
    %cst_67 = arith.constant 0.000000e+00 : f32
    %142 = vector.broadcast %cst_67 : f32 to vector<1x128xf32>
    %143 = arith.maximumf %141, %142 : vector<1x128xf32>
    %cst_68 = arith.constant dense<0.000000e+00> : vector<1x128xf32>
    %144 = tpu.matmul %105, %102, %cst_68 {dimension_numbers = #tpu.dot_dimension_numbers<[1], [0], [0], [1], [0, 0, 1, 1], [], []>} : vector<1x128xf32>, vector<128x128xf32>, vector<1x128xf32> -> vector<1x128xf32>
    %145 = vector.broadcast %108 : vector<1x1xf32> to vector<1x128xf32>
    %146 = arith.addf %144, %145 : vector<1x128xf32>
    %cst_69 = arith.constant 0.000000e+00 : f32
    %147 = vector.broadcast %cst_69 : f32 to vector<1x128xf32>
    %148 = arith.maximumf %146, %147 : vector<1x128xf32>
    %149 = tpu.concatenate %113, %118, %123, %128, %133, %138, %143, %148 in 0 : vector<1x128xf32>, vector<1x128xf32>, vector<1x128xf32>, vector<1x128xf32>, vector<1x128xf32>, vector<1x128xf32>, vector<1x128xf32>, vector<1x128xf32> -> vector<8x128xf32>
    %c0_70 = arith.constant 0 : index
    %c0_71 = arith.constant 0 : index
    %150 = vector.load %arg9[%c0_70, %c0_71] : memref<128x128xf32, #tpu.memory_space<vmem>>, vector<128x128xf32>
    %cst_72 = arith.constant dense<0.000000e+00> : vector<8x128xf32>
    %151 = tpu.matmul %149, %150, %cst_72 {dimension_numbers = #tpu.dot_dimension_numbers<[1], [0], [0], [1], [0, 0, 1, 1], [], []>} : vector<8x128xf32>, vector<128x128xf32>, vector<8x128xf32> -> vector<8x128xf32>
    %c0_73 = arith.constant 0 : index
    %c0_74 = arith.constant 0 : index
    %152 = vector.load %arg10[%c0_73, %c0_74] : memref<1x128xf32, #tpu.memory_space<vmem>>, vector<1x128xf32>
    %153 = vector.broadcast %152 : vector<1x128xf32> to vector<8x128xf32>
    %154 = arith.addf %151, %153 : vector<8x128xf32>
    %c0_75 = arith.constant 0 : index
    %c0_76 = arith.constant 0 : index
    %155 = vector.load %arg11[%c0_75, %c0_76] : memref<8x128xf32, #tpu.memory_space<vmem>>, vector<8x128xf32>
    tpu.vector_store %arg11[%c0_75, %c0_76], %154 {strides = array<i32>} : memref<8x128xf32, #tpu.memory_space<vmem>>, vector<8x128xf32>,
    return
  }
  func.func @transform_0(%arg0: i32) -> (i32, i32, i32) {
    %c0_i32 = arith.constant 0 : i32
    %c0_i32_0 = arith.constant 0 : i32
    %c0_i32_1 = arith.constant 0 : i32
    return %arg0, %c0_i32, %c0_i32_0 : i32, i32, i32
  }
  func.func @transform_1(%arg0: i32) -> (i32, i32) {
    %c0_i32 = arith.constant 0 : i32
    %c0_i32_0 = arith.constant 0 : i32
    %c0_i32_1 = arith.constant 0 : i32
    return %c0_i32, %c0_i32_0 : i32, i32
  }
  func.func @transform_2(%arg0: i32) -> (i32, i32) {
    %c0_i32 = arith.constant 0 : i32
    %c0_i32_0 = arith.constant 0 : i32
    %c0_i32_1 = arith.constant 0 : i32
    return %c0_i32, %c0_i32_0 : i32, i32
  }
  func.func @transform_3(%arg0: i32) -> (i32, i32) {
    %c0_i32 = arith.constant 0 : i32
    %c0_i32_0 = arith.constant 0 : i32
    %c0_i32_1 = arith.constant 0 : i32
    return %c0_i32, %c0_i32_0 : i32, i32
  }
  func.func @transform_4(%arg0: i32) -> (i32, i32) {
    %c0_i32 = arith.constant 0 : i32
    %c0_i32_0 = arith.constant 0 : i32
    %c0_i32_1 = arith.constant 0 : i32
    return %c0_i32, %c0_i32_0 : i32, i32
  }
  func.func @transform_5(%arg0: i32) -> (i32, i32, i32) {
    %c0_i32 = arith.constant 0 : i32
    %c0_i32_0 = arith.constant 0 : i32
    %c0_i32_1 = arith.constant 0 : i32
    %c0_i32_2 = arith.constant 0 : i32
    return %c0_i32, %c0_i32_0, %c0_i32_1 : i32, i32, i32
  }
  func.func @transform_6(%arg0: i32) -> (i32, i32, i32) {
    %c0_i32 = arith.constant 0 : i32
    %c0_i32_0 = arith.constant 0 : i32
    %c0_i32_1 = arith.constant 0 : i32
    %c0_i32_2 = arith.constant 0 : i32
    return %c0_i32, %c0_i32_0, %c0_i32_1 : i32, i32, i32
  }
  func.func @transform_7(%arg0: i32) -> (i32, i32, i32) {
    %c0_i32 = arith.constant 0 : i32
    %c0_i32_0 = arith.constant 0 : i32
    %c0_i32_1 = arith.constant 0 : i32
    %c0_i32_2 = arith.constant 0 : i32
    return %c0_i32, %c0_i32_0, %c0_i32_1 : i32, i32, i32
  }
  func.func @transform_8(%arg0: i32) -> (i32, i32) {
    %c0_i32 = arith.constant 0 : i32
    %c0_i32_0 = arith.constant 0 : i32
    %c0_i32_1 = arith.constant 0 : i32
    return %c0_i32, %c0_i32_0 : i32, i32
  }
  func.func @transform_9(%arg0: i32) -> (i32, i32) {
    %c0_i32 = arith.constant 0 : i32
    %c0_i32_0 = arith.constant 0 : i32
    %c0_i32_1 = arith.constant 0 : i32
    return %c0_i32, %c0_i32_0 : i32, i32
  }
  func.func @transform_10(%arg0: i32) -> (i32, i32) {
    %c0_i32 = arith.constant 0 : i32
    %c0_i32_0 = arith.constant 0 : i32
    return %arg0, %c0_i32 : i32, i32
  }
}

</mosaic_0001>

<bundles_post_ra>
// kernel: tpu_custom_call.1
= control target key start
LH: loop header
LB: loop body
LE: loop exit
PB: predicated region body
PF: predicated region fallthrough
CT: control target
= control target key end

     0   :  { %15 = vsyncpa [#allocation3], 0  ;;  %s7418_s0 = inlined_call_operand.vmem [shape: f32[8,16,128], index: 0, kind: input, shape index: {}]   ;;  %s7419_s1 = inlined_call_operand.vmem [shape: f32[128,128], index: 1, kind: input, shape index: {}]   ;;  %s7420_s2 = inlined_call_operand.vmem [shape: f32[1,128], index: 2, kind: input, shape index: {}]   ;;  %s7421_s3 = inlined_call_operand.vmem [shape: f32[128,16], index: 3, kind: input, shape index: {}]   ;;  %s7422_s4 = inlined_call_operand.vmem [shape: f32[128,1], index: 4, kind: input, shape index: {}]   ;;  %s7423_s5 = inlined_call_operand.vmem [shape: f32[2,128,128], index: 5, kind: input, shape index: {}]   ;;  %s7424_s6 = inlined_call_operand.vmem [shape: f32[2,1,128], index: 6, kind: input, shape index: {}]   ;;  %s7425_s7 = inlined_call_operand.vmem [shape: f32[2,128,1], index: 7, kind: input, shape index: {}]   ;;  %s7426_s8 = inlined_call_operand.hbm [shape: f32[128,128], index: 8, kind: input, shape index: {}]   ;;  %s7427_s9 = inlined_call_operand.vmem [shape: f32[1,128], index: 9, kind: input, shape index: {}]   ;;  %s7428_s10 = inlined_call_operand.hbm [shape: f32[8,128], index: 10, kind: output, shape index: {}]  }
   0x1   :  { %16 = vsyncpa [#allocation4], 0  ;;  %s6093_s13 = smov [#allocation2]   ;;  %s6045_s17 = scalar_lea.hbm %s7426_s8, 2048 }
   0x2   :  { %s38_s14 = sshll.u32 %s6093_s13, 4  ;;  %p6046_p0 = scmp.ne.s32.totalorder %s7426_s8, %s6045_s17  ;;  %s39_s14 = int_to_ptr.vmem [resolvable:$true] %s38_s14 }
   0x3   :  { %p6049_p1 = scmp.lt.u32.totalorder %s6045_s17, %s7426_s8 }
   0x5   :  { %p6051_p2 = pnand %p6049_p1, %p6046_p0 }
   0x7   :  { %6054 = shalt.err (!%p6051_p2)
}
   0x8   :  { %s6055_s22 = scalar_lea.vmem %s39_s14, 2048  ;;  %p6060_p4 = scmp.lt.s32.totalorder %s39_s14, %s39_s14 }
   0x9   :  { %p6056_p3 = scmp.ne.s32.totalorder %s39_s14, %s6055_s22  ;;  %p6061_p5 = scmp.lt.s32.totalorder %s6055_s22, %s6055_s22 }
   0xb   :  { %p6062_p6 = por %p6061_p5, %p6060_p4 }
   0xd   :  { %p6063_p7 = pnand %p6062_p6, %p6056_p3 }
   0xf   :  { %6066 = shalt.err (!%p6063_p7)
}
  0x10   :  { %s6094_s23 = smov 128   ;;  %s6095_s24 = smov 8  }
  0x11   :  { %44 = dma.hbm_to_vmem [thread:$0]  %s7426_s8, 2048, %s39_s14, [#allocation3], %s6094_s23, %s6094_s23, %s6095_s24  }
  0x12   :  { %6089 = dma.done.wait [#allocation3], 2048  }
  0x13   :  { %6090 = vsyncadd [#allocation3], 4294965248  ;;  %v66_v0 = vld [vmem:[%s7419_s1] sm:$0xff]  ;;  %v67_v1 = vld [vmem:[%s7419_s1 + $0x8] sm:$0xff]  ;;  %vm362_vm0 = vcmask 130048   ;;  %v6096_v41 = vmov 0  }
  0x14   :  { %v68_v2 = vld [vmem:[%s7419_s1 + $0x10] sm:$0xff]  ;;  %v5496_v3 = vpack.c.bf16 %v67_v1, %v66_v0  ;;  %v69_v4 = vld [vmem:[%s7419_s1 + $0x18] sm:$0xff]  ;;  %v70_v6 = vld [vmem:[%s7419_s1 + $0x20] sm:$0xff]  ;;  %6042 = vset.pattern.permute.xlu0 %v6096_v41  ;;  %6043 = vset.pattern.permute.xlu1 %v6096_v41  ;;  %vm6098_vm1 = vmmov 0   ;;  %vm3612_vm2 = vcmask 1040384   ;;  %vm3614_vm3 = vcmask 1041408  }
  0x15   :  { %v5500_v5 = vpack.c.bf16 %v69_v4, %v68_v2  ;;  %v71_v7 = vld [vmem:[%s7419_s1 + $0x28] sm:$0xff]  ;;  %v50_v9 = vld [vmem:[%s7418_s0] sm:$0xff]  ;;  %v72_v10 = vld [vmem:[%s7419_s1 + $0x30] sm:$0xff]  ;;  %vm3616_vm4 = vcmask 1042432   ;;  %vm3618_vm5 = vcmask 1043456   ;;  %vm3620_vm6 = vcmask 1044480  }
  0x16   :  { %5497 = vmatprep.subr.bf16.mxu0 %v5496_v3  ;;  %v5504_v8 = vpack.c.bf16 %v71_v7, %v70_v6  ;;  %v73_v11 = vld [vmem:[%s7419_s1 + $0x38] sm:$0xff]  ;;  %4485 = vmatprep.mubr.f32.mxu0 %v50_v9  ;;  %v74_v13 = vld [vmem:[%s7419_s1 + $0x40] sm:$0xff]  ;;  %v75_v14 = vld [vmem:[%s7419_s1 + $0x48] sm:$0xff]  ;;  %vm3622_vm7 = vcmask 1045504   ;;  %vm3624_vm8 = vcmask 1046528   ;;  %s6100_s29 = smov [#allocation5]  }
  0x17   :  { %5499 = vmatpush3.bf16.msra.mxu0 %v5496_v3  ;;  %v5508_v12 = vpack.c.bf16 %v73_v11, %v72_v10  ;;  %v5512_v15 = vpack.c.bf16 %v75_v14, %v74_v13  ;;  %v76_v16 = vld [vmem:[%s7419_s1 + $0x50] sm:$0xff]  ;;  %v77_v17 = vld [vmem:[%s7419_s1 + $0x58] sm:$0xff]  ;;  %v78_v19 = vld [vmem:[%s7419_s1 + $0x60] sm:$0xff] }
  0x18   :  { %5501 = vmatprep.subr.bf16.mxu0 %v5500_v5  ;;  %v5516_v18 = vpack.c.bf16 %v77_v17, %v76_v16  ;;  %v79_v20 = vld [vmem:[%s7419_s1 + $0x68] sm:$0xff]  ;;  %v80_v22 = vld [vmem:[%s7419_s1 + $0x70] sm:$0xff]  ;;  %v81_v23 = vld [vmem:[%s7419_s1 + $0x78] sm:$0xff] }
  0x19   :  { %v5520_v21 = vpack.c.bf16 %v79_v20, %v78_v19  ;;  %v5524_v24 = vpack.c.bf16 %v81_v23, %v80_v22  ;;  %v51_v25 = vld [vmem:[%s7418_s0 + $0x8] sm:$0xff]  ;;  %v52_v26 = vld [vmem:[%s7418_s0 + $0x10] sm:$0xff]  ;;  %v53_v27 = vld [vmem:[%s7418_s0 + $0x18] sm:$0xff] }
  0x1a   :  { %v54_v28 = vld [vmem:[%s7418_s0 + $0x20] sm:$0xff]  ;;  %v55_v29 = vld [vmem:[%s7418_s0 + $0x28] sm:$0xff]  ;;  %v56_v30 = vld [vmem:[%s7418_s0 + $0x30] sm:$0xff] }
  0x1b   :  { %5503 = vmatpush3.bf16.msra.mxu0 %v5500_v5  ;;  %v57_v31 = vld [vmem:[%s7418_s0 + $0x38] sm:$0xff]  ;;  %v58_v32 = vld [vmem:[%s7418_s0 + $0x40] sm:$0xff]  ;;  %v59_v33 = vld [vmem:[%s7418_s0 + $0x48] sm:$0xff] }
  0x1c   :  { %5505 = vmatprep.subr.bf16.mxu0 %v5504_v8  ;;  %v60_v34 = vld [vmem:[%s7418_s0 + $0x50] sm:$0xff]  ;;  %v61_v35 = vld [vmem:[%s7418_s0 + $0x58] sm:$0xff]  ;;  %v62_v36 = vld [vmem:[%s7418_s0 + $0x60] sm:$0xff] }
  0x1d   :  { %v63_v37 = vld [vmem:[%s7418_s0 + $0x68] sm:$0xff]  ;;  %v64_v38 = vld [vmem:[%s7418_s0 + $0x70] sm:$0xff]  ;;  %v65_v39 = vld [vmem:[%s7418_s0 + $0x78] sm:$0xff]  ;;  %s3726_s0 = sshll.u32 %s6100_s29, 4  ;;  %s3727_s0 = int_to_ptr.vmem [resolvable:$true] %s3726_s0 }
  0x1e   :  { %v6267_v40 = vld [vmem:[%s7421_s3] sm:$0xff]  ;;  %v268_v43 = vld [vmem:[%s7422_s4 + $0x10] sm:$0xff]  ;;  %v267_v44 = vld [vmem:[%s7422_s4 + $0x8] sm:$0xff]  ;;  %s6067_s30 = scalar_lea.vmem %s3727_s0, 128  ;;  %p6072_p9 = scmp.lt.s32.totalorder %s3727_s0, %s3727_s0 }
  0x1f   :  { %5507 = vmatpush3.bf16.msra.mxu0 %v5504_v8  ;;  %4513 = vmatprep.mubr.msk.f32.mxu1 %vm362_vm0, %v6267_v40  ;;  %v266_v42 = vld [vmem:[%s7422_s4] sm:$0xff]  ;;  %v269_v45 = vld [vmem:[%s7422_s4 + $0x18] sm:$0xff]  ;;  %v271_v46 = vld [vmem:[%s7422_s4 + $0x28] sm:$0xff]  ;;  %p6068_p8 = scmp.ne.s32.totalorder %s3727_s0, %s6067_s30  ;;  %p6073_p10 = scmp.lt.s32.totalorder %s6067_s30, %s6067_s30 }
  0x20   :  { %5509 = vmatprep.subr.bf16.mxu0 %v5508_v12  ;;  %284 = vperm.xlu0 %6042, %v266_v42   ;;  %v270_v47 = vld [vmem:[%s7422_s4 + $0x20] sm:$0xff]  ;;  %v273_v48 = vld [vmem:[%s7422_s4 + $0x38] sm:$0xff]  ;;  %v272_v49 = vld [vmem:[%s7422_s4 + $0x30] sm:$0xff] }
  0x21   :  { %294 = vperm.xlu1 %6043, %v268_v43   ;;  %v275_v50 = vld [vmem:[%s7422_s4 + $0x48] sm:$0xff]  ;;  %v274_v51 = vld [vmem:[%s7422_s4 + $0x40] sm:$0xff]  ;;  %v277_v52 = vld [vmem:[%s7422_s4 + $0x58] sm:$0xff]  ;;  %p6074_p11 = por %p6073_p10, %p6072_p9 }
  0x22   :  { %v276_v53 = vld [vmem:[%s7422_s4 + $0x50] sm:$0xff]  ;;  %v279_v54 = vld [vmem:[%s7422_s4 + $0x68] sm:$0xff]  ;;  %v278_v55 = vld [vmem:[%s7422_s4 + $0x60] sm:$0xff] }
  0x23   :  { %5511 = vmatpush3.bf16.msra.mxu0 %v5508_v12  ;;  %v281_v56 = vld [vmem:[%s7422_s4 + $0x78] sm:$0xff]  ;;  %v280_v57 = vld [vmem:[%s7422_s4 + $0x70] sm:$0xff]  ;;  %v6324_v58 = vld [vmem:[%s7420_s2] ss:$0 sm:$0xff]  ;;  %p6075_p12 = pnand %p6074_p11, %p6068_p8 }
  0x24   :  { %5513 = vmatprep.subr.bf16.mxu0 %v5512_v15  ;;  %289 = vperm.xlu0 %6042, %v267_v44   ;;  %v3866_v9 = vld [vmem:[%s7425_s7 + $0x98] sm:$0xff]  ;;  %v6337_v12 = vld [vmem:[%s7421_s3 + $0x8] sm:$0xff]  ;;  %v6360_v23 = vld [vmem:[%s7421_s3 + $0x20] sm:$0xff] }
  0x25   :  { %299 = vperm.xlu1 %6043, %v269_v45   ;;  %v6352_v19 = vld [vmem:[%s7421_s3 + $0x18] sm:$0xff]  ;;  %v6401_v41 = vld [vmem:[%s7421_s3 + $0x40] sm:$0xff] }
  0x27   :  { %5515 = vmatpush3.bf16.msra.mxu0 %v5512_v15  ;;  %v6343_v15 = vld [vmem:[%s7421_s3 + $0x10] sm:$0xff] }
  0x28   :  { %5517 = vmatprep.subr.bf16.mxu0 %v5516_v18  ;;  %304 = vperm.xlu0 %6042, %v270_v47   ;;  %v6415_v47 = vld [vmem:[%s7421_s3 + $0x48] sm:$0xff] }
  0x29   :  { %309 = vperm.xlu1 %6043, %v271_v46  }
  0x2b   :  { %5519 = vmatpush3.bf16.msra.mxu0 %v5516_v18 }
  0x2c   :  { %5521 = vmatprep.subr.bf16.mxu0 %v5520_v21  ;;  %314 = vperm.xlu0 %6042, %v272_v49  }
  0x2d   :  { %319 = vperm.xlu1 %6043, %v273_v48  }
  0x2f   :  { %5523 = vmatpush3.bf16.msra.mxu0 %v5520_v21 }
  0x30   :  { %5525 = vmatprep.subr.bf16.mxu0 %v5524_v24  ;;  %324 = vperm.xlu0 %6042, %v274_v51  }
  0x31   :  { %329 = vperm.xlu1 %6043, %v275_v50   ;;  %v6421_v50 = vld [vmem:[%s7421_s3 + $0x50] sm:$0xff] }
  0x33   :  { %5527 = vmatpush3.bf16.msra.mxu0 %v5524_v24 }
  0x34   :  { %334 = vperm.xlu0 %6042, %v276_v53  }
  0x35   :  { %339 = vperm.xlu1 %6043, %v277_v52  }
  0x36   :  { %4486 = vmatmul.mubr.f32.vlgmr.msra.gmra.mrb[0].mxu0 %v51_v25 }
  0x37   :  { %4488 = vmatprep.mubr.f32.mxu0 %v52_v26 }
  0x38   :  { %344 = vperm.xlu0 %6042, %v278_v55  }
  0x39   :  { %349 = vperm.xlu1 %6043, %v279_v54  }
  0x3a   :  { %4489 = vmatmul.mubr.f32.gmra.mrb[2].mxu0 %v53_v27 }
  0x3b   :  { %4491 = vmatprep.mubr.f32.mxu0 %v54_v28  ;;  %v6372_v28 = vld [vmem:[%s7421_s3 + $0x28] sm:$0xff] }
  0x3c   :  { %354 = vperm.xlu0 %6042, %v280_v57  }
  0x3d   :  { %359 = vperm.xlu1 %6043, %v281_v56   ;;  %v6437_v56 = vld [vmem:[%s7421_s3 + $0x58] sm:$0xff] }
  0x3e   :  { %4492 = vmatmul.mubr.f32.gmra.mrb[4].mxu0 %v55_v29 }
  0x3f   :  { %4494 = vmatprep.mubr.f32.mxu0 %v56_v30 }
  0x40   :  { %3016 = vperm.xlu0 %6042, %v3866_v9  }
  0x42   :  { %4495 = vmatmul.mubr.f32.gmra.mrb[6].mxu0 %v57_v31  ;;  %v6378_v31 = vld [vmem:[%s7421_s3 + $0x30] sm:$0xff] }
  0x43   :  { %4497 = vmatprep.mubr.f32.mxu0 %v58_v32 }
  0x46   :  { %4498 = vmatmul.mubr.f32.gmra.mrb[8].mxu0 %v59_v33 }
  0x47   :  { %4500 = vmatprep.mubr.f32.mxu0 %v60_v34 }
  0x4a   :  { %4501 = vmatmul.mubr.f32.gmra.mrb[10].mxu0 %v61_v35 }
  0x4b   :  { %4503 = vmatprep.mubr.f32.mxu0 %v62_v36 }
  0x4e   :  { %4504 = vmatmul.mubr.f32.gmra.mrb[12].mxu0 %v63_v37  ;;  %v6395_v37 = vld [vmem:[%s7421_s3 + $0x38] sm:$0xff] }
  0x4f   :  { %4506 = vmatprep.mubr.f32.mxu0 %v64_v38 }
  0x52   :  { %4507 = vmatmul.mubr.f32.gmra.mrb[14].mxu0 %v65_v39 }
  0x53   :  { %4569 = vmatprep.mubr.msk.f32.mxu0 %vm362_vm0, %v6267_v40 }
 0x109   :  { %v4487_v59 = vpop.f32.mrb[0].mxu0 }
 0x10a   :  { %v161_v60 = vadd.f32 %v4487_v59, %v6324_v58  ;;  %v155_v61 = vpop.f32.mrb[1].mxu0 }
 0x10b   :  { %v156_v62 = vadd.f32 %v6324_v58, %v155_v61 }
 0x10c   :  { %v235_v63 = vmax.f32 %v161_v60, 0.0  ;;  %v6443_v60 = vld [vmem:[%s7421_s3 + $0x60] sm:$0xff] }
 0x10d   :  { %v234_v0 = vmax.f32 %v156_v62, 0.0  ;;  %v4490_v1 = vpop.f32.mrb[2].mxu0 }
 0x10e   :  { %v171_v2 = vadd.f32 %v4490_v1, %v6324_v58  ;;  %v165_v3 = vpop.f32.mrb[3].mxu0  ;;  %v6457_v1 = vld [vmem:[%s7421_s3 + $0x68] sm:$0xff] }
 0x10f   :  { %v166_v4 = vadd.f32 %v6324_v58, %v165_v3  ;;  %v5528_v5 = vpack.c.bf16 %v235_v63, %v234_v0  ;;  %v6477_v3 = vld [vmem:[%s7421_s3 + $0x78] sm:$0xff] }
 0x110   :  { %v237_v6 = vmax.f32 %v171_v2, 0.0 }
 0x111   :  { %v236_v7 = vmax.f32 %v166_v4, 0.0  ;;  %v4493_v8 = vpop.f32.mrb[4].mxu0  ;;  %5529 = vmatprep.subr.bf16.mxu1 %v5528_v5  ;;  %v1699_v4 = vld [vmem:[%s7423_s5] sm:$0xff] }
 0x112   :  { %v181_v10 = vadd.f32 %v4493_v8, %v6324_v58  ;;  %v175_v11 = vpop.f32.mrb[5].mxu0  ;;  %5531 = vmatpush3.bf16.msra.mxu1 %v5528_v5  ;;  %v1700_v5 = vld [vmem:[%s7423_s5 + $0x8] sm:$0xff]  ;;  %v1702_v8 = vld [vmem:[%s7423_s5 + $0x18] sm:$0xff] }
 0x113   :  { %v5532_v13 = vpack.c.bf16 %v237_v6, %v236_v7  ;;  %v176_v14 = vadd.f32 %v6324_v58, %v175_v11  ;;  %v6519_v6 = vpack.c.bf16 %v1700_v5, %v1699_v4  ;;  %v1701_v7 = vld [vmem:[%s7423_s5 + $0x10] sm:$0xff]  ;;  %v1704_v11 = vld [vmem:[%s7423_s5 + $0x28] sm:$0xff] }
 0x114   :  { %v239_v16 = vmax.f32 %v181_v10, 0.0  ;;  %v6560_v9 = vpack.c.bf16 %v1702_v8, %v1701_v7  ;;  %v1703_v10 = vld [vmem:[%s7423_s5 + $0x20] sm:$0xff] }
 0x115   :  { %v238_v17 = vmax.f32 %v176_v14, 0.0  ;;  %4514 = vmatmul.mubr.msk.f32.vlgmr.msra.gmra.mrb[0].mxu1 %vm362_vm0, %v6337_v12  ;;  %5533 = vmatprep.subr.bf16.mxu1 %v5532_v13  ;;  %v4496_v18 = vpop.f32.mrb[6].mxu0  ;;  %v1705_v14 = vld [vmem:[%s7423_s5 + $0x30] sm:$0xff] }
 0x116   :  { %5535 = vmatpush3.bf16.msra.mxu1 %v5532_v13  ;;  %4516 = vmatprep.mubr.msk.f32.mxu1 %vm362_vm0, %v6343_v15  ;;  %v191_v20 = vadd.f32 %v4496_v18, %v6324_v58  ;;  %v185_v21 = vpop.f32.mrb[7].mxu0  ;;  %v6588_v13 = vpack.c.bf16 %v1704_v11, %v1703_v10  ;;  %v1707_v18 = vld [vmem:[%s7423_s5 + $0x40] sm:$0xff] }
 0x117   :  { %v6355_v22 = vpack.c.bf16 %v239_v16, %v238_v17  ;;  %v186_v24 = vadd.f32 %v6324_v58, %v185_v21  ;;  %v1706_v16 = vld [vmem:[%s7423_s5 + $0x38] sm:$0xff] }
 0x118   :  { %v241_v25 = vmax.f32 %v191_v20, 0.0  ;;  %v6606_v17 = vpack.c.bf16 %v1706_v16, %v1705_v14  ;;  %v1708_v20 = vld [vmem:[%s7423_s5 + $0x48] sm:$0xff] }
 0x119   :  { %4517 = vmatmul.mubr.msk.f32.gmra.mrb[2].mxu1 %vm362_vm0, %v6352_v19  ;;  %5537 = vmatprep.subr.bf16.mxu0 %v6355_v22  ;;  %v240_v26 = vmax.f32 %v186_v24, 0.0  ;;  %v4499_v27 = vpop.f32.mrb[8].mxu0  ;;  %v6625_v21 = vpack.c.bf16 %v1708_v20, %v1707_v18  ;;  %v1710_v24 = vld [vmem:[%s7423_s5 + $0x58] sm:$0xff] }
 0x11a   :  { %5539 = vmatpush3.bf16.msra.mxu0 %v6355_v22  ;;  %4519 = vmatprep.mubr.msk.f32.mxu1 %vm362_vm0, %v6360_v23  ;;  %v201_v29 = vadd.f32 %v4499_v27, %v6324_v58  ;;  %v195_v30 = vpop.f32.mrb[9].mxu0  ;;  %v1712_v27 = vld [vmem:[%s7423_s5 + $0x68] sm:$0xff] }
 0x11b   :  { %v6380_v32 = vpack.c.bf16 %v241_v25, %v240_v26  ;;  %v196_v33 = vadd.f32 %v6324_v58, %v195_v30  ;;  %6032 = vmatprep.subr.bf16.mxu1 %v6355_v22  ;;  %v1711_v26 = vld [vmem:[%s7423_s5 + $0x60] sm:$0xff]  ;;  %v1713_v30 = vld [vmem:[%s7423_s5 + $0x70] sm:$0xff] }
 0x11c   :  { %v243_v34 = vmax.f32 %v201_v29, 0.0  ;;  %v6662_v29 = vpack.c.bf16 %v1712_v27, %v1711_v26 }
 0x11d   :  { %4520 = vmatmul.mubr.msk.f32.gmra.mrb[4].mxu1 %vm362_vm0, %v6372_v28  ;;  %4570 = vmatmul.mubr.msk.f32.vlgmr.msra.gmra.mrb[16].mxu0 %vm362_vm0, %v6337_v12  ;;  %v242_v35 = vmax.f32 %v196_v33, 0.0  ;;  %v4502_v36 = vpop.f32.mrb[10].mxu0 }
 0x11e   :  { %4522 = vmatprep.mubr.msk.f32.mxu1 %vm362_vm0, %v6378_v31  ;;  %4572 = vmatprep.mubr.msk.f32.mxu0 %vm362_vm0, %v6343_v15  ;;  %v211_v38 = vadd.f32 %v4502_v36, %v6324_v58  ;;  %v205_v39 = vpop.f32.mrb[11].mxu0 }
 0x11f   :  { %v5544_v42 = vpack.c.bf16 %v243_v34, %v242_v35  ;;  %v206_v43 = vadd.f32 %v6324_v58, %v205_v39 }
 0x120   :  { %v245_v44 = vmax.f32 %v211_v38, 0.0 }
 0x121   :  { %4523 = vmatmul.mubr.msk.f32.gmra.mrb[6].mxu1 %vm362_vm0, %v6395_v37  ;;  %4573 = vmatmul.mubr.msk.f32.gmra.mrb[18].mxu0 %vm362_vm0, %v6352_v19  ;;  %v244_v45 = vmax.f32 %v206_v43, 0.0  ;;  %v4505_v46 = vpop.f32.mrb[12].mxu0 }
 0x122   :  { %4525 = vmatprep.mubr.msk.f32.mxu1 %vm362_vm0, %v6401_v41  ;;  %4575 = vmatprep.mubr.msk.f32.mxu0 %vm362_vm0, %v6360_v23  ;;  %v221_v48 = vadd.f32 %v4505_v46, %v6324_v58  ;;  %v215_v49 = vpop.f32.mrb[13].mxu0 }
 0x123   :  { %5545 = vmatprep.subr.bf16.mxu0 %v5544_v42  ;;  %v6423_v51 = vpack.c.bf16 %v245_v44, %v244_v45  ;;  %v216_v52 = vadd.f32 %v6324_v58, %v215_v49 }
 0x124   :  { %5547 = vmatpush3.bf16.msra.mxu0 %v5544_v42  ;;  %v247_v53 = vmax.f32 %v221_v48, 0.0 }
 0x125   :  { %4526 = vmatmul.mubr.msk.f32.gmra.mrb[8].mxu1 %vm362_vm0, %v6415_v47  ;;  %4576 = vmatmul.mubr.msk.f32.gmra.mrb[20].mxu0 %vm362_vm0, %v6372_v28  ;;  %v246_v54 = vmax.f32 %v216_v52, 0.0  ;;  %v4508_v55 = vpop.f32.mrb[14].mxu0 }
 0x126   :  { %4528 = vmatprep.mubr.msk.f32.mxu1 %vm362_vm0, %v6421_v50  ;;  %4578 = vmatprep.mubr.msk.f32.mxu0 %vm362_vm0, %v6378_v31  ;;  %v231_v57 = vadd.f32 %v4508_v55, %v6324_v58  ;;  %v225_v59 = vpop.f32.mrb[15].mxu0 }
 0x127   :  { %v5552_v61 = vpack.c.bf16 %v247_v53, %v246_v54  ;;  %v226_v62 = vadd.f32 %v6324_v58, %v225_v59  ;;  %v6462_v58 = vld [vmem:[%s7421_s3 + $0x70] sm:$0xff] }
 0x128   :  { %v249_v63 = vmax.f32 %v231_v57, 0.0 }
 0x129   :  { %4529 = vmatmul.mubr.msk.f32.gmra.mrb[10].mxu1 %vm362_vm0, %v6437_v56  ;;  %4579 = vmatmul.mubr.msk.f32.gmra.mrb[22].mxu0 %vm362_vm0, %v6395_v37  ;;  %v248_v0 = vmax.f32 %v226_v62, 0.0 }
 0x12a   :  { %4531 = vmatprep.mubr.msk.f32.mxu1 %vm362_vm0, %v6443_v60  ;;  %4581 = vmatprep.mubr.msk.f32.mxu0 %vm362_vm0, %v6401_v41 }
 0x12b   :  { %5553 = vmatprep.subr.bf16.mxu0 %v5552_v61  ;;  %v6464_v2 = vpack.c.bf16 %v249_v63, %v248_v0 }
 0x12d   :  { %4532 = vmatmul.mubr.msk.f32.gmra.mrb[12].mxu1 %vm362_vm0, %v6457_v1  ;;  %4582 = vmatmul.mubr.msk.f32.gmra.mrb[24].mxu0 %vm362_vm0, %v6415_v47 }
 0x12e   :  { %4534 = vmatprep.mubr.msk.f32.mxu1 %vm362_vm0, %v6462_v58  ;;  %4625 = vmatprep.mubr.msk.f32.mxu0 %vm362_vm0, %v6267_v40 }
 0x131   :  { %4535 = vmatmul.mubr.msk.f32.gmra.mrb[14].mxu1 %vm362_vm0, %v6477_v3  ;;  %4626 = vmatmul.mubr.msk.f32.vlgmr.msra.gmra.mrb[26].mxu0 %vm362_vm0, %v6337_v12 }
 0x132   :  { %4541 = vmatprep.mubr.msk.f32.mxu1 %vm362_vm0, %v6267_v40  ;;  %4628 = vmatprep.mubr.msk.f32.mxu0 %vm362_vm0, %v6343_v15 }
 0x133   :  { %5555 = vmatpush3.bf16.msra.mxu0 %v5552_v61 }
 0x134   :  { %5561 = vmatprep.subr.bf16.mxu0 %v6519_v6 }
 0x135   :  { %4542 = vmatmul.mubr.msk.f32.vlgmr.msra.gmra.mrb[16].mxu1 %vm362_vm0, %v6337_v12  ;;  %4629 = vmatmul.mubr.msk.f32.gmra.mrb[28].mxu0 %vm362_vm0, %v6352_v19 }
 0x136   :  { %6033 = vmatpush3.bf16.msra.mxu1 %v6355_v22  ;;  %4544 = vmatprep.mubr.msk.f32.mxu1 %vm362_vm0, %v6343_v15  ;;  %v1709_v22 = vld [vmem:[%s7423_s5 + $0x50] sm:$0xff] }
 0x137   :  { %4631 = vmatprep.mubr.msk.f32.mxu0 %vm362_vm0, %v6360_v23  ;;  %5541 = vmatprep.subr.bf16.mxu1 %v6380_v32  ;;  %v6644_v25 = vpack.c.bf16 %v1710_v24, %v1709_v22 }
 0x139   :  { %4545 = vmatmul.mubr.msk.f32.gmra.mrb[18].mxu1 %vm362_vm0, %v6352_v19  ;;  %4632 = vmatmul.mubr.msk.f32.gmra.mrb[30].mxu0 %vm362_vm0, %v6372_v28 }
 0x13a   :  { %4547 = vmatprep.mubr.msk.f32.mxu1 %vm362_vm0, %v6360_v23  ;;  %4634 = vmatprep.mubr.msk.f32.mxu0 %vm362_vm0, %v6378_v31 }
 0x13d   :  { %4548 = vmatmul.mubr.msk.f32.gmra.mrb[20].mxu1 %vm362_vm0, %v6372_v28  ;;  %4635 = vmatmul.mubr.msk.f32.gmra.mrb[32].mxu0 %vm362_vm0, %v6395_v37 }
 0x13e   :  { %4550 = vmatprep.mubr.msk.f32.mxu1 %vm362_vm0, %v6378_v31  ;;  %4637 = vmatprep.mubr.msk.f32.mxu0 %vm362_vm0, %v6401_v41 }
 0x141   :  { %4551 = vmatmul.mubr.msk.f32.gmra.mrb[22].mxu1 %vm362_vm0, %v6395_v37  ;;  %4638 = vmatmul.mubr.msk.f32.gmra.mrb[34].mxu0 %vm362_vm0, %v6415_v47 }
 0x142   :  { %4553 = vmatprep.mubr.msk.f32.mxu1 %vm362_vm0, %v6401_v41  ;;  %4640 = vmatprep.mubr.msk.f32.mxu0 %vm362_vm0, %v6421_v50 }
 0x145   :  { %4554 = vmatmul.mubr.msk.f32.gmra.mrb[24].mxu1 %vm362_vm0, %v6415_v47  ;;  %4641 = vmatmul.mubr.msk.f32.gmra.mrb[36].mxu0 %vm362_vm0, %v6437_v56 }
 0x146   :  { %4556 = vmatprep.mubr.msk.f32.mxu1 %vm362_vm0, %v6421_v50  ;;  %4643 = vmatprep.mubr.msk.f32.mxu0 %vm362_vm0, %v6443_v60 }
 0x149   :  { %4557 = vmatmul.mubr.msk.f32.gmra.mrb[26].mxu1 %vm362_vm0, %v6437_v56  ;;  %4644 = vmatmul.mubr.msk.f32.gmra.mrb[38].mxu0 %vm362_vm0, %v6457_v1 }
 0x14a   :  { %4559 = vmatprep.mubr.msk.f32.mxu1 %vm362_vm0, %v6443_v60  ;;  %4646 = vmatprep.mubr.msk.f32.mxu0 %vm362_vm0, %v6462_v58 }
 0x14d   :  { %4560 = vmatmul.mubr.msk.f32.gmra.mrb[28].mxu1 %vm362_vm0, %v6457_v1  ;;  %4647 = vmatmul.mubr.msk.f32.gmra.mrb[40].mxu0 %vm362_vm0, %v6477_v3 }
 0x14e   :  { %4562 = vmatprep.mubr.msk.f32.mxu1 %vm362_vm0, %v6462_v58  ;;  %4681 = vmatprep.mubr.msk.f32.mxu0 %vm362_vm0, %v6267_v40 }
 0x151   :  { %4563 = vmatmul.mubr.msk.f32.gmra.mrb[30].mxu1 %vm362_vm0, %v6477_v3  ;;  %4682 = vmatmul.mubr.msk.f32.vlgmr.msra.gmra.mrb[42].mxu0 %vm362_vm0, %v6337_v12 }
 0x152   :  { %4584 = vmatprep.mubr.msk.f32.mxu1 %vm362_vm0, %v6421_v50  ;;  %4684 = vmatprep.mubr.msk.f32.mxu0 %vm362_vm0, %v6343_v15 }
 0x153   :  { %5563 = vmatpush3.bf16.msra.mxu0 %v6519_v6 }
 0x154   :  { %5565 = vmatprep.subr.bf16.mxu0 %v6560_v9 }
 0x155   :  { %4585 = vmatmul.mubr.msk.f32.vlgmr.msra.gmra.mrb[32].mxu1 %vm362_vm0, %v6437_v56  ;;  %4685 = vmatmul.mubr.msk.f32.gmra.mrb[44].mxu0 %vm362_vm0, %v6352_v19 }
 0x156   :  { %5543 = vmatpush3.bf16.msra.mxu1 %v6380_v32  ;;  %4587 = vmatprep.mubr.msk.f32.mxu1 %vm362_vm0, %v6443_v60  ;;  %v1714_v32 = vld [vmem:[%s7423_s5 + $0x78] sm:$0xff] }
 0x157   :  { %4687 = vmatprep.mubr.msk.f32.mxu0 %vm362_vm0, %v6360_v23  ;;  %5549 = vmatprep.subr.bf16.mxu1 %v6423_v51  ;;  %v6680_v33 = vpack.c.bf16 %v1714_v32, %v1713_v30 }
 0x158   :  { %5567 = vmatpush3.bf16.msra.mxu0 %v6560_v9 }
 0x159   :  { %4588 = vmatmul.mubr.msk.f32.gmra.mrb[34].mxu1 %vm362_vm0, %v6457_v1  ;;  %4688 = vmatmul.mubr.msk.f32.gmra.mrb[46].mxu0 %vm362_vm0, %v6372_v28 }
 0x15a   :  { %4590 = vmatprep.mubr.msk.f32.mxu1 %vm362_vm0, %v6462_v58  ;;  %4690 = vmatprep.mubr.msk.f32.mxu0 %vm362_vm0, %v6378_v31 }
 0x15b   :  { %5569 = vmatprep.subr.bf16.mxu0 %v6588_v13 }
 0x15c   :  { %5571 = vmatpush3.bf16.msra.mxu0 %v6588_v13 }
 0x15d   :  { %4591 = vmatmul.mubr.msk.f32.gmra.mrb[36].mxu1 %vm362_vm0, %v6477_v3  ;;  %4691 = vmatmul.mubr.msk.f32.gmra.mrb[48].mxu0 %vm362_vm0, %v6395_v37 }
 0x15e   :  { %4597 = vmatprep.mubr.msk.f32.mxu1 %vm362_vm0, %v6267_v40  ;;  %4693 = vmatprep.mubr.msk.f32.mxu0 %vm362_vm0, %v6401_v41 }
 0x15f   :  { %5573 = vmatprep.subr.bf16.mxu0 %v6606_v17 }
 0x160   :  { %5575 = vmatpush3.bf16.msra.mxu0 %v6606_v17 }
 0x161   :  { %4598 = vmatmul.mubr.msk.f32.vlgmr.msra.gmra.mrb[38].mxu1 %vm362_vm0, %v6337_v12  ;;  %4694 = vmatmul.mubr.msk.f32.gmra.mrb[50].mxu0 %vm362_vm0, %v6415_v47 }
 0x162   :  { %5551 = vmatpush3.bf16.msra.mxu1 %v6423_v51  ;;  %4600 = vmatprep.mubr.msk.f32.mxu1 %vm362_vm0, %v6343_v15 }
 0x163   :  { %4696 = vmatprep.mubr.msk.f32.mxu0 %vm362_vm0, %v6421_v50  ;;  %5557 = vmatprep.subr.bf16.mxu1 %v6464_v2 }
 0x164   :  { %5577 = vmatprep.subr.bf16.mxu0 %v6625_v21 }
 0x165   :  { %4601 = vmatmul.mubr.msk.f32.gmra.mrb[40].mxu1 %vm362_vm0, %v6352_v19  ;;  %4697 = vmatmul.mubr.msk.f32.gmra.mrb[52].mxu0 %vm362_vm0, %v6437_v56 }
 0x166   :  { %4603 = vmatprep.mubr.msk.f32.mxu1 %vm362_vm0, %v6360_v23  ;;  %4699 = vmatprep.mubr.msk.f32.mxu0 %vm362_vm0, %v6443_v60 }
 0x167   :  { %5579 = vmatpush3.bf16.msra.mxu0 %v6625_v21 }
 0x168   :  { %5581 = vmatprep.subr.bf16.mxu0 %v6644_v25 }
 0x169   :  { %4604 = vmatmul.mubr.msk.f32.gmra.mrb[42].mxu1 %vm362_vm0, %v6372_v28  ;;  %4700 = vmatmul.mubr.msk.f32.gmra.mrb[54].mxu0 %vm362_vm0, %v6457_v1 }
 0x16a   :  { %4606 = vmatprep.mubr.msk.f32.mxu1 %vm362_vm0, %v6378_v31  ;;  %4702 = vmatprep.mubr.msk.f32.mxu0 %vm362_vm0, %v6462_v58 }
 0x16b   :  { %5583 = vmatpush3.bf16.msra.mxu0 %v6644_v25 }
 0x16c   :  { %5585 = vmatprep.subr.bf16.mxu0 %v6662_v29 }
 0x16d   :  { %4607 = vmatmul.mubr.msk.f32.gmra.mrb[44].mxu1 %vm362_vm0, %v6395_v37  ;;  %4703 = vmatmul.mubr.msk.f32.gmra.mrb[56].mxu0 %vm362_vm0, %v6477_v3 }
 0x16e   :  { %4609 = vmatprep.mubr.msk.f32.mxu1 %vm362_vm0, %v6401_v41 }
 0x16f   :  { %5587 = vmatpush3.bf16.msra.mxu0 %v6662_v29 }
 0x170   :  { %5589 = vmatprep.subr.bf16.mxu0 %v6680_v33 }
 0x171   :  { %4610 = vmatmul.mubr.msk.f32.gmra.mrb[46].mxu1 %vm362_vm0, %v6415_v47 }
 0x172   :  { %4612 = vmatprep.mubr.msk.f32.mxu1 %vm362_vm0, %v6421_v50 }
 0x173   :  { %5591 = vmatpush3.bf16.msra.mxu0 %v6680_v33 }
 0x174   :  { %5625 = vmatprep.subr.bf16.mxu0 %v6519_v6 }
 0x175   :  { %4613 = vmatmul.mubr.msk.f32.gmra.mrb[48].mxu1 %vm362_vm0, %v6437_v56 }
 0x176   :  { %4615 = vmatprep.mubr.msk.f32.mxu1 %vm362_vm0, %v6443_v60 }
 0x179   :  { %4616 = vmatmul.mubr.msk.f32.gmra.mrb[50].mxu1 %vm362_vm0, %v6457_v1 }
 0x17a   :  { %4618 = vmatprep.mubr.msk.f32.mxu1 %vm362_vm0, %v6462_v58 }
 0x17d   :  { %4619 = vmatmul.mubr.msk.f32.gmra.mrb[52].mxu1 %vm362_vm0, %v6477_v3 }
 0x17e   :  { %4653 = vmatprep.mubr.msk.f32.mxu1 %vm362_vm0, %v6267_v40 }
 0x181   :  { %4654 = vmatmul.mubr.msk.f32.vlgmr.msra.gmra.mrb[54].mxu1 %vm362_vm0, %v6337_v12 }
 0x182   :  { %5559 = vmatpush3.bf16.msra.mxu1 %v6464_v2  ;;  %4656 = vmatprep.mubr.msk.f32.mxu1 %vm362_vm0, %v6343_v15 }
 0x183   :  { %5593 = vmatprep.subr.bf16.mxu1 %v6519_v6 }
 0x185   :  { %4657 = vmatmul.mubr.msk.f32.gmra.mrb[56].mxu1 %vm362_vm0, %v6352_v19 }
 0x186   :  { %4659 = vmatprep.mubr.msk.f32.mxu1 %vm362_vm0, %v6360_v23 }
 0x189   :  { %4660 = vmatmul.mubr.msk.f32.gmra.mrb[58].mxu1 %vm362_vm0, %v6372_v28 }
 0x18a   :  { %4662 = vmatprep.mubr.msk.f32.mxu1 %vm362_vm0, %v6378_v31 }
 0x18d   :  { %4663 = vmatmul.mubr.msk.f32.gmra.mrb[60].mxu1 %vm362_vm0, %v6395_v37 }
 0x18e   :  { %4665 = vmatprep.mubr.msk.f32.mxu1 %vm362_vm0, %v6401_v41 }
 0x191   :  { %4666 = vmatmul.mubr.msk.f32.gmra.mrb[62].mxu1 %vm362_vm0, %v6415_v47 }
 0x192   :  { %4668 = vmatprep.mubr.msk.f32.mxu1 %vm362_vm0, %v6421_v50 }
 0x195   :  { %4669 = vmatmul.mubr.msk.f32.gmra.mrb[64].mxu1 %vm362_vm0, %v6437_v56 }
 0x196   :  { %4671 = vmatprep.mubr.msk.f32.mxu1 %vm362_vm0, %v6443_v60 }
 0x199   :  { %4672 = vmatmul.mubr.msk.f32.gmra.mrb[66].mxu1 %vm362_vm0, %v6457_v1 }
 0x19a   :  { %4674 = vmatprep.mubr.msk.f32.mxu1 %vm362_vm0, %v6462_v58 }
 0x19d   :  { %4675 = vmatmul.mubr.msk.f32.gmra.mrb[68].mxu1 %vm362_vm0, %v6477_v3 }
 0x19e   :  { %4709 = vmatprep.mubr.msk.f32.mxu1 %vm362_vm0, %v6267_v40  ;;  %v6788_v40 = vpop.permute.xlu1 %294 }
 0x1a1   :  { %4710 = vmatmul.mubr.msk.f32.vlgmr.msra.gmra.mrb[70].mxu1 %vm362_vm0, %v6337_v12  ;;  %v6790_v12 = vpop.permute.xlu0 %284 }
 0x1a2   :  { %4712 = vmatprep.mubr.msk.f32.mxu1 %vm362_vm0, %v6343_v15  ;;  %5595 = vmatpush3.bf16.msra.mxu1 %v6519_v6  ;;  %v6792_v15 = vpop.permute.xlu1 %299 }
 0x1a3   :  { %5597 = vmatprep.subr.bf16.mxu1 %v6560_v9 }
 0x1a5   :  { %4713 = vmatmul.mubr.msk.f32.gmra.mrb[72].mxu1 %vm362_vm0, %v6352_v19  ;;  %v6794_v19 = vpop.permute.xlu0 %289 }
 0x1a6   :  { %4715 = vmatprep.mubr.msk.f32.mxu1 %vm362_vm0, %v6360_v23  ;;  %5599 = vmatpush3.bf16.msra.mxu1 %v6560_v9  ;;  %v6796_v23 = vpop.permute.xlu1 %309 }
 0x1a7   :  { %5601 = vmatprep.subr.bf16.mxu1 %v6588_v13 }
 0x1a9   :  { %4716 = vmatmul.mubr.msk.f32.gmra.mrb[74].mxu1 %vm362_vm0, %v6372_v28  ;;  %v6798_v28 = vpop.permute.xlu0 %304 }
 0x1aa   :  { %4718 = vmatprep.mubr.msk.f32.mxu1 %vm362_vm0, %v6378_v31  ;;  %5603 = vmatpush3.bf16.msra.mxu1 %v6588_v13  ;;  %v6800_v31 = vpop.permute.xlu1 %319 }
 0x1ab   :  { %5605 = vmatprep.subr.bf16.mxu1 %v6606_v17 }
 0x1ad   :  { %4719 = vmatmul.mubr.msk.f32.gmra.mrb[76].mxu1 %vm362_vm0, %v6395_v37  ;;  %v6802_v34 = vpop.permute.xlu0 %314 }
 0x1ae   :  { %4721 = vmatprep.mubr.msk.f32.mxu1 %vm362_vm0, %v6401_v41  ;;  %5607 = vmatpush3.bf16.msra.mxu1 %v6606_v17  ;;  %v6806_v42 = vpop.permute.xlu1 %329 }
 0x1af   :  { %5609 = vmatprep.subr.bf16.mxu1 %v6625_v21 }
 0x1b1   :  { %4722 = vmatmul.mubr.msk.f32.gmra.mrb[78].mxu1 %vm362_vm0, %v6415_v47  ;;  %v6809_v46 = vpop.permute.xlu0 %324 }
 0x1b2   :  { %4724 = vmatprep.mubr.msk.f32.mxu1 %vm362_vm0, %v6421_v50  ;;  %5611 = vmatpush3.bf16.msra.mxu1 %v6625_v21 }
 0x1b3   :  { %5613 = vmatprep.subr.bf16.mxu1 %v6644_v25 }
 0x1b5   :  { %4725 = vmatmul.mubr.msk.f32.gmra.mrb[80].mxu1 %vm362_vm0, %v6437_v56  ;;  %v6818_v56 = vpop.permute.xlu1 %339  ;;  %v6820_v57 = vpop.permute.xlu0 %334 }
 0x1b6   :  { %4727 = vmatprep.mubr.msk.f32.mxu1 %vm362_vm0, %v6443_v60  ;;  %5615 = vmatpush3.bf16.msra.mxu1 %v6644_v25 }
 0x1b7   :  { %5617 = vmatprep.subr.bf16.mxu1 %v6662_v29 }
 0x1b9   :  { %4728 = vmatmul.mubr.msk.f32.gmra.mrb[82].mxu1 %vm362_vm0, %v6457_v1  ;;  %v6836_v14 = vpop.permute.xlu1 %349  ;;  %v6838_v16 = vpop.permute.xlu0 %344 }
 0x1ba   :  { %4730 = vmatprep.mubr.msk.f32.mxu1 %vm362_vm0, %v6462_v58  ;;  %5619 = vmatpush3.bf16.msra.mxu1 %v6662_v29 }
 0x1bb   :  { %5621 = vmatprep.subr.bf16.mxu1 %v6680_v33 }
 0x1bd   :  { %4731 = vmatmul.mubr.msk.f32.gmra.mrb[84].mxu1 %vm362_vm0, %v6477_v3 }
 0x1be   :  { %5623 = vmatpush3.bf16.msra.mxu1 %v6680_v33 }
 0x1bf   :  { %5657 = vmatprep.subr.bf16.mxu1 %v6519_v6 }
 0x1e8   :  { %v4515_v35 = vpop.f32.mrb[0].mxu1 }
 0x1e9   :  { %v477_v36 = vpop.f32.mrb[1].mxu1  ;;  %v483_v37 = vadd.f32 %v4515_v35, %v6794_v19 }
 0x1ea   :  { %v478_v38 = vadd.f32 %v477_v36, %v6790_v12 }
 0x1eb   :  { %v557_v44 = vmax.f32 %v483_v37, 0.0 }
 0x1ec   :  { %v556_v39 = vmax.f32 %v478_v38, 0.0  ;;  %v4518_v41 = vpop.f32.mrb[2].mxu1 }
 0x1ed   :  { %v487_v43 = vpop.f32.mrb[3].mxu1  ;;  %v493_v45 = vadd.f32 %v4518_v41, %v6792_v15 }
 0x1ee   :  { %v488_v47 = vadd.f32 %v487_v43, %v6788_v40  ;;  %4765 = vmatprep.mubr.f32.mxu0 %v556_v39 }
 0x1ef   :  { %4766 = vmatmul.mubr.f32.vlgmr.msra.gmra.mrb[58].mxu0 %v557_v44  ;;  %v559_v52 = vmax.f32 %v493_v45, 0.0  ;;  %v6856_v45 = vpop.permute.xlu1 %359 }
 0x1f0   :  { %v558_v48 = vmax.f32 %v488_v47, 0.0  ;;  %v4521_v49 = vpop.f32.mrb[4].mxu1  ;;  %5627 = vmatpush3.bf16.msra.mxu0 %v6519_v6  ;;  %v6813_v50 = vpop.f32.mrb[16].mxu0 }
 0x1f1   :  { %v497_v51 = vpop.f32.mrb[5].mxu1  ;;  %5629 = vmatprep.subr.bf16.mxu0 %v6560_v9  ;;  %v503_v53 = vadd.f32 %v4521_v49, %v6796_v23  ;;  %v799_v54 = vpop.f32.mrb[17].mxu0 }
 0x1f2   :  { %v498_v55 = vadd.f32 %v497_v51, %v6798_v28  ;;  %4768 = vmatprep.mubr.f32.mxu0 %v558_v48  ;;  %v6858_v47 = vpop.permute.xlu0 %354  ;;  %v800_v49 = vadd.f32 %v799_v54, %v6790_v12 }
 0x1f3   :  { %4769 = vmatmul.mubr.f32.gmra.mrb[60].mxu0 %v559_v52  ;;  %v561_v63 = vmax.f32 %v503_v53, 0.0 }
 0x1f4   :  { %v560_v59 = vmax.f32 %v498_v55, 0.0  ;;  %v4524_v60 = vpop.f32.mrb[6].mxu1  ;;  %5631 = vmatpush3.bf16.msra.mxu0 %v6560_v9  ;;  %v6823_v61 = vpop.f32.mrb[18].mxu0  ;;  %v878_v54 = vmax.f32 %v800_v49, 0.0 }
 0x1f5   :  { %v507_v62 = vpop.f32.mrb[7].mxu1  ;;  %5633 = vmatprep.subr.bf16.mxu0 %v6588_v13  ;;  %v513_v0 = vadd.f32 %v4524_v60, %v6800_v31  ;;  %v809_v1 = vpop.f32.mrb[19].mxu0 }
 0x1f6   :  { %v508_v58 = vadd.f32 %v507_v62, %v6802_v34  ;;  %4771 = vmatprep.mubr.f32.mxu0 %v560_v59 }
 0x1f7   :  { %4772 = vmatmul.mubr.f32.gmra.mrb[62].mxu0 %v561_v63  ;;  %v563_v7 = vmax.f32 %v513_v0, 0.0  ;;  %v805_v63 = vadd.f32 %v6813_v50, %v6794_v19  ;;  %v810_v0 = vadd.f32 %v809_v1, %v6788_v40  ;;  %v815_v1 = vadd.f32 %v6823_v61, %v6792_v15 }
 0x1f8   :  { %v562_v2 = vmax.f32 %v508_v58, 0.0  ;;  %v4527_v3 = vpop.f32.mrb[8].mxu1  ;;  %5635 = vmatpush3.bf16.msra.mxu0 %v6588_v13  ;;  %v6829_v4 = vpop.f32.mrb[20].mxu0 }
 0x1f9   :  { %v517_v5 = vpop.f32.mrb[9].mxu1  ;;  %5637 = vmatprep.subr.bf16.mxu0 %v6606_v17  ;;  %v523_v8 = vadd.f32 %v4527_v3, %v6806_v42  ;;  %v6833_v10 = vpop.f32.mrb[21].mxu0 }
 0x1fa   :  { %v518_v11 = vadd.f32 %v517_v5, %v6809_v46  ;;  %4774 = vmatprep.mubr.f32.mxu0 %v562_v2 }
 0x1fb   :  { %4775 = vmatmul.mubr.f32.gmra.mrb[64].mxu0 %v563_v7  ;;  %v565_v26 = vmax.f32 %v523_v8, 0.0 }
 0x1fc   :  { %v564_v18 = vmax.f32 %v518_v11, 0.0  ;;  %v4530_v20 = vpop.f32.mrb[10].mxu1  ;;  %5639 = vmatpush3.bf16.msra.mxu0 %v6606_v17  ;;  %v6841_v22 = vpop.f32.mrb[22].mxu0 }
 0x1fd   :  { %v527_v24 = vpop.f32.mrb[11].mxu1  ;;  %5641 = vmatprep.subr.bf16.mxu0 %v6625_v21  ;;  %v533_v27 = vadd.f32 %v4530_v20, %v6818_v56  ;;  %v6845_v30 = vpop.f32.mrb[23].mxu0  ;;  %v880_v20 = vmax.f32 %v810_v0, 0.0  ;;  %v835_v0 = vadd.f32 %v6841_v22, %v6800_v31 }
 0x1fe   :  { %v528_v32 = vadd.f32 %v527_v24, %v6820_v57  ;;  %4777 = vmatprep.mubr.f32.mxu0 %v564_v18  ;;  %v879_v18 = vmax.f32 %v805_v63, 0.0  ;;  %v820_v24 = vadd.f32 %v6833_v10, %v6798_v28  ;;  %v825_v10 = vadd.f32 %v6829_v4, %v6796_v23 }
 0x1ff   :  { %4778 = vmatmul.mubr.f32.gmra.mrb[66].mxu0 %v565_v26  ;;  %v567_v39 = vmax.f32 %v533_v27, 0.0  ;;  %v830_v4 = vadd.f32 %v6845_v30, %v6802_v34 }
 0x200   :  { %v566_v35 = vmax.f32 %v528_v32, 0.0  ;;  %v4533_v36 = vpop.f32.mrb[12].mxu1  ;;  %5643 = vmatpush3.bf16.msra.mxu0 %v6625_v21  ;;  %v6849_v37 = vpop.f32.mrb[24].mxu0 }
 0x201   :  { %v537_v38 = vpop.f32.mrb[13].mxu1  ;;  %5645 = vmatprep.subr.bf16.mxu0 %v6644_v25  ;;  %v543_v41 = vadd.f32 %v4533_v36, %v6836_v14  ;;  %v6853_v43 = vpop.f32.mrb[25].mxu0  ;;  %v884_v22 = vmax.f32 %v830_v4, 0.0 }
 0x202   :  { %v538_v44 = vadd.f32 %v537_v38, %v6838_v16  ;;  %4780 = vmatprep.mubr.f32.mxu0 %v566_v35 }
 0x203   :  { %4781 = vmatmul.mubr.f32.gmra.mrb[68].mxu0 %v567_v39  ;;  %v569_v55 = vmax.f32 %v543_v41, 0.0  ;;  %v881_v41 = vmax.f32 %v815_v1, 0.0 }
 0x204   :  { %v568_v48 = vmax.f32 %v538_v44, 0.0  ;;  %v4536_v51 = vpop.f32.mrb[14].mxu1  ;;  %5647 = vmatpush3.bf16.msra.mxu0 %v6644_v25  ;;  %v6862_v52 = vpop.f32.mrb[26].mxu0  ;;  %v882_v44 = vmax.f32 %v820_v24, 0.0 }
 0x205   :  { %v547_v53 = vpop.f32.mrb[15].mxu1  ;;  %5649 = vmatprep.subr.bf16.mxu0 %v6662_v29  ;;  %v553_v59 = vadd.f32 %v4536_v51, %v6856_v45  ;;  %v6866_v60 = vpop.f32.mrb[27].mxu0 }
 0x206   :  { %v548_v62 = vadd.f32 %v547_v53, %v6858_v47  ;;  %4783 = vmatprep.mubr.f32.mxu0 %v568_v48 }
 0x207   :  { %4784 = vmatmul.mubr.f32.gmra.mrb[70].mxu0 %v569_v55  ;;  %v571_v8 = vmax.f32 %v553_v59, 0.0 }
 0x208   :  { %v570_v58 = vmax.f32 %v548_v62, 0.0  ;;  %v4543_v2 = vpop.f32.mrb[16].mxu1  ;;  %5651 = vmatpush3.bf16.msra.mxu0 %v6662_v29  ;;  %v6873_v3 = vpop.f32.mrb[28].mxu0 }
 0x209   :  { %v644_v5 = vadd.f32 %v4543_v2, %v6794_v19  ;;  %v638_v7 = vpop.f32.mrb[17].mxu1  ;;  %5653 = vmatprep.subr.bf16.mxu0 %v6680_v33  ;;  %v6877_v11 = vpop.f32.mrb[29].mxu0 }
 0x20a   :  { %v639_v50 = vadd.f32 %v638_v7, %v6790_v12  ;;  %4786 = vmatprep.mubr.f32.mxu0 %v570_v58 }
 0x20b   :  { %4787 = vmatmul.mubr.f32.gmra.mrb[72].mxu0 %v571_v8  ;;  %v718_v35 = vmax.f32 %v644_v5, 0.0 }
 0x20c   :  { %v717_v26 = vmax.f32 %v639_v50, 0.0  ;;  %v4546_v27 = vpop.f32.mrb[18].mxu1  ;;  %5655 = vmatpush3.bf16.msra.mxu0 %v6680_v33  ;;  %4877 = vmatprep.mubr.f32.mxu0 %v878_v54  ;;  %v6885_v32 = vpop.f32.mrb[30].mxu0  ;;  %v883_v54 = vmax.f32 %v825_v10, 0.0 }
 0x20d   :  { %v654_v36 = vadd.f32 %v4546_v27, %v6792_v15  ;;  %v648_v38 = vpop.f32.mrb[19].mxu1  ;;  %v6888_v39 = vpop.f32.mrb[31].mxu0  ;;  %5689 = vmatprep.subr.bf16.mxu0 %v6519_v6 }
 0x20e   :  { %v649_v61 = vadd.f32 %v648_v38, %v6788_v40  ;;  %4821 = vmatprep.mubr.f32.mxu1 %v717_v26 }
 0x20f   :  { %4822 = vmatmul.mubr.f32.vlgmr.msra.gmra.mrb[86].mxu1 %v718_v35  ;;  %4878 = vmatmul.mubr.f32.vlgmr.msra.gmra.mrb[74].mxu0 %v879_v18  ;;  %v720_v53 = vmax.f32 %v654_v36, 0.0  ;;  %v840_v18 = vadd.f32 %v6853_v43, %v6809_v46  ;;  %v845_v35 = vadd.f32 %v6849_v37, %v6806_v42 }
 0x210   :  { %v719_v48 = vmax.f32 %v649_v61, 0.0  ;;  %v4549_v49 = vpop.f32.mrb[20].mxu1  ;;  %v6894_v51 = vpop.f32.mrb[32].mxu0  ;;  %4880 = vmatprep.mubr.f32.mxu0 %v880_v20  ;;  %5659 = vmatpush3.bf16.msra.mxu1 %v6519_v6  ;;  %v885_v20 = vmax.f32 %v835_v0, 0.0 }
 0x211   :  { %v664_v55 = vadd.f32 %v4549_v49, %v6796_v23  ;;  %v658_v59 = vpop.f32.mrb[21].mxu1  ;;  %v6898_v62 = vpop.f32.mrb[33].mxu0  ;;  %5691 = vmatpush3.bf16.msra.mxu0 %v6519_v6  ;;  %5661 = vmatprep.subr.bf16.mxu1 %v6560_v9  ;;  %v887_v49 = vmax.f32 %v845_v35, 0.0 }
 0x212   :  { %v659_v63 = vadd.f32 %v658_v59, %v6798_v28  ;;  %4824 = vmatprep.mubr.f32.mxu1 %v719_v48  ;;  %5693 = vmatprep.subr.bf16.mxu0 %v6560_v9 }
 0x213   :  { %4825 = vmatmul.mubr.f32.gmra.mrb[88].mxu1 %v720_v53  ;;  %4881 = vmatmul.mubr.f32.gmra.mrb[76].mxu0 %v881_v41  ;;  %v722_v7 = vmax.f32 %v664_v55, 0.0  ;;  %v886_v41 = vmax.f32 %v840_v18, 0.0 }
 0x214   :  { %v721_v58 = vmax.f32 %v659_v63, 0.0  ;;  %v4552_v2 = vpop.f32.mrb[22].mxu1  ;;  %v6908_v5 = vpop.f32.mrb[34].mxu0  ;;  %4883 = vmatprep.mubr.f32.mxu0 %v882_v44  ;;  %5663 = vmatpush3.bf16.msra.mxu1 %v6560_v9 }
 0x215   :  { %v674_v30 = vadd.f32 %v4552_v2, %v6800_v31  ;;  %v668_v8 = vpop.f32.mrb[23].mxu1  ;;  %v6912_v50 = vpop.f32.mrb[35].mxu0  ;;  %5695 = vmatpush3.bf16.msra.mxu0 %v6560_v9  ;;  %5665 = vmatprep.subr.bf16.mxu1 %v6588_v13 }
 0x216   :  { %v669_v1 = vadd.f32 %v668_v8, %v6802_v34  ;;  %4827 = vmatprep.mubr.f32.mxu1 %v721_v58  ;;  %5697 = vmatprep.subr.bf16.mxu0 %v6588_v13 }
 0x217   :  { %4828 = vmatmul.mubr.f32.gmra.mrb[90].mxu1 %v722_v7  ;;  %4884 = vmatmul.mubr.f32.gmra.mrb[78].mxu0 %v883_v54  ;;  %v724_v36 = vmax.f32 %v674_v30, 0.0 }
 0x218   :  { %v723_v24 = vmax.f32 %v669_v1, 0.0  ;;  %v4555_v26 = vpop.f32.mrb[24].mxu1  ;;  %v6920_v27 = vpop.f32.mrb[36].mxu0  ;;  %4886 = vmatprep.mubr.f32.mxu0 %v884_v22  ;;  %5667 = vmatpush3.bf16.msra.mxu1 %v6588_v13 }
 0x219   :  { %v684_v43 = vadd.f32 %v4555_v26, %v6806_v42  ;;  %v678_v38 = vpop.f32.mrb[25].mxu1  ;;  %v6926_v61 = vpop.f32.mrb[37].mxu0  ;;  %5699 = vmatpush3.bf16.msra.mxu0 %v6588_v13  ;;  %5669 = vmatprep.subr.bf16.mxu1 %v6606_v17 }
 0x21a   :  { %v679_v10 = vadd.f32 %v678_v38, %v6809_v46  ;;  %4830 = vmatprep.mubr.f32.mxu1 %v723_v24  ;;  %5701 = vmatprep.subr.bf16.mxu0 %v6606_v17 }
 0x21b   :  { %4831 = vmatmul.mubr.f32.gmra.mrb[92].mxu1 %v724_v36  ;;  %4887 = vmatmul.mubr.f32.gmra.mrb[80].mxu0 %v885_v20  ;;  %v726_v53 = vmax.f32 %v684_v43, 0.0 }
 0x21c   :  { %v725_v44 = vmax.f32 %v679_v10, 0.0  ;;  %v4558_v37 = vpop.f32.mrb[26].mxu1  ;;  %v6932_v48 = vpop.f32.mrb[38].mxu0  ;;  %4889 = vmatprep.mubr.f32.mxu0 %v886_v41  ;;  %5671 = vmatpush3.bf16.msra.mxu1 %v6606_v17 }
 0x21d   :  { %v694_v55 = vadd.f32 %v4558_v37, %v6818_v56  ;;  %v688_v59 = vpop.f32.mrb[27].mxu1  ;;  %v6936_v4 = vpop.f32.mrb[39].mxu0  ;;  %5703 = vmatpush3.bf16.msra.mxu0 %v6606_v17  ;;  %5673 = vmatprep.subr.bf16.mxu1 %v6625_v21 }
 0x21e   :  { %v689_v63 = vadd.f32 %v688_v59, %v6820_v57  ;;  %4833 = vmatprep.mubr.f32.mxu1 %v725_v44  ;;  %5705 = vmatprep.subr.bf16.mxu0 %v6625_v21 }
 0x21f   :  { %4834 = vmatmul.mubr.f32.gmra.mrb[94].mxu1 %v726_v53  ;;  %4890 = vmatmul.mubr.f32.gmra.mrb[82].mxu0 %v887_v49  ;;  %v728_v2 = vmax.f32 %v694_v55, 0.0 }
 0x220   :  { %v727_v54 = vmax.f32 %v689_v63, 0.0  ;;  %v4561_v0 = vpop.f32.mrb[28].mxu1  ;;  %v6942_v58 = vpop.f32.mrb[40].mxu0  ;;  %5675 = vmatpush3.bf16.msra.mxu1 %v6625_v21 }
 0x221   :  { %v704_v7 = vadd.f32 %v4561_v0, %v6836_v14  ;;  %v698_v30 = vpop.f32.mrb[29].mxu1  ;;  %v6946_v8 = vpop.f32.mrb[41].mxu0  ;;  %5707 = vmatpush3.bf16.msra.mxu0 %v6625_v21  ;;  %5677 = vmatprep.subr.bf16.mxu1 %v6644_v25 }
 0x222   :  { %v699_v22 = vadd.f32 %v698_v30, %v6838_v16  ;;  %4836 = vmatprep.mubr.f32.mxu1 %v727_v54  ;;  %5709 = vmatprep.subr.bf16.mxu0 %v6644_v25 }
 0x223   :  { %4837 = vmatmul.mubr.f32.gmra.mrb[96].mxu1 %v728_v2  ;;  %v730_v24 = vmax.f32 %v704_v7, 0.0 }
 0x224   :  { %v729_v18 = vmax.f32 %v699_v22, 0.0  ;;  %v4564_v1 = vpop.f32.mrb[30].mxu1  ;;  %v6952_v20 = vpop.f32.mrb[42].mxu0  ;;  %5679 = vmatpush3.bf16.msra.mxu1 %v6644_v25 }
 0x225   :  { %v714_v26 = vadd.f32 %v4564_v1, %v6856_v45  ;;  %v708_v35 = vpop.f32.mrb[31].mxu1  ;;  %v6956_v36 = vpop.f32.mrb[43].mxu0  ;;  %5711 = vmatpush3.bf16.msra.mxu0 %v6644_v25  ;;  %5681 = vmatprep.subr.bf16.mxu1 %v6662_v29 }
 0x226   :  { %v709_v43 = vadd.f32 %v708_v35, %v6858_v47  ;;  %4839 = vmatprep.mubr.f32.mxu1 %v729_v18  ;;  %5713 = vmatprep.subr.bf16.mxu0 %v6662_v29 }
 0x227   :  { %4840 = vmatmul.mubr.f32.gmra.mrb[98].mxu1 %v730_v24  ;;  %v732_v44 = vmax.f32 %v714_v26, 0.0 }
 0x228   :  { %v731_v38 = vmax.f32 %v709_v43, 0.0  ;;  %v4586_v41 = vpop.f32.mrb[32].mxu1  ;;  %v6962_v10 = vpop.f32.mrb[44].mxu0  ;;  %5683 = vmatpush3.bf16.msra.mxu1 %v6662_v29 }
 0x229   :  { %v855_v37 = vadd.f32 %v4586_v41, %v6818_v56  ;;  %v849_v49 = vpop.f32.mrb[33].mxu1  ;;  %v6966_v53 = vpop.f32.mrb[45].mxu0  ;;  %5715 = vmatpush3.bf16.msra.mxu0 %v6662_v29  ;;  %5685 = vmatprep.subr.bf16.mxu1 %v6680_v33  ;;  %v1122_v41 = vadd.f32 %v6866_v60, %v6790_v12  ;;  %v1132_v60 = vadd.f32 %v6877_v11, %v6788_v40 }
 0x22a   :  { %v850_v55 = vadd.f32 %v849_v49, %v6820_v57  ;;  %4842 = vmatprep.mubr.f32.mxu1 %v731_v38  ;;  %5717 = vmatprep.subr.bf16.mxu0 %v6680_v33 }
 0x22b   :  { %4843 = vmatmul.mubr.f32.gmra.mrb[100].mxu1 %v732_v44  ;;  %v889_v0 = vmax.f32 %v855_v37, 0.0  ;;  %v1202_v11 = vmax.f32 %v1132_v60, 0.0 }
 0x22c   :  { %v888_v59 = vmax.f32 %v850_v55, 0.0  ;;  %v4589_v63 = vpop.f32.mrb[34].mxu1  ;;  %v6972_v54 = vpop.f32.mrb[46].mxu0  ;;  %5687 = vmatpush3.bf16.msra.mxu1 %v6680_v33 }
 0x22d   :  { %v865_v2 = vadd.f32 %v4589_v63, %v6836_v14  ;;  %v859_v7 = vpop.f32.mrb[35].mxu1  ;;  %v6976_v30 = vpop.f32.mrb[47].mxu0  ;;  %5719 = vmatpush3.bf16.msra.mxu0 %v6680_v33  ;;  %5721 = vmatprep.subr.bf16.mxu1 %v6519_v6 }
 0x22e   :  { %v860_v22 = vadd.f32 %v859_v7, %v6838_v16  ;;  %4892 = vmatprep.mubr.f32.mxu0 %v888_v59  ;;  %5753 = vmatprep.subr.bf16.mxu0 %v6519_v6  ;;  %v1127_v59 = vadd.f32 %v6862_v52, %v6794_v19 }
 0x22f   :  { %4893 = vmatmul.mubr.f32.gmra.mrb[84].mxu0 %v889_v0  ;;  %v891_v26 = vmax.f32 %v865_v2, 0.0 }
 0x230   :  { %v890_v18 = vmax.f32 %v860_v22, 0.0  ;;  %v4592_v1 = vpop.f32.mrb[36].mxu1  ;;  %v6982_v24 = vpop.f32.mrb[48].mxu0  ;;  %v1200_v22 = vmax.f32 %v1122_v41, 0.0  ;;  %v1201_v52 = vmax.f32 %v1127_v59, 0.0 }
 0x231   :  { %v875_v35 = vadd.f32 %v4592_v1, %v6856_v45  ;;  %v869_v43 = vpop.f32.mrb[37].mxu1  ;;  %v6985_v38 = vpop.f32.mrb[49].mxu0 }
 0x232   :  { %v870_v44 = vadd.f32 %v869_v43, %v6858_v47  ;;  %4895 = vmatprep.mubr.f32.mxu0 %v890_v18 }
 0x233   :  { %4896 = vmatmul.mubr.f32.gmra.mrb[86].mxu0 %v891_v26  ;;  %v893_v63 = vmax.f32 %v875_v35, 0.0  ;;  %v1137_v35 = vadd.f32 %v6873_v3, %v6792_v15 }
 0x234   :  { %v892_v37 = vmax.f32 %v870_v44, 0.0  ;;  %v4599_v49 = vpop.f32.mrb[38].mxu1  ;;  %v6990_v55 = vpop.f32.mrb[50].mxu0 }
 0x235   :  { %7429 = vst [vmem:[#allocation8_spill] sm:$0xff] %v6990_v55  ;;  %v966_v0 = vadd.f32 %v4599_v49, %v6794_v19  ;;  %v960_v2 = vpop.f32.mrb[39].mxu1  ;;  %v6995_v7 = vpop.f32.mrb[51].mxu0  ;;  %v1203_v3 = vmax.f32 %v1137_v35, 0.0 }
 0x236   :  { %v961_v18 = vadd.f32 %v960_v2, %v6790_v12  ;;  %4898 = vmatprep.mubr.f32.mxu0 %v892_v37  ;;  %v1142_v37 = vadd.f32 %v6888_v39, %v6798_v28 }
 0x237   :  { %4899 = vmatmul.mubr.f32.gmra.mrb[88].mxu0 %v893_v63  ;;  %v1040_v44 = vmax.f32 %v966_v0, 0.0  ;;  %v1147_v0 = vadd.f32 %v6885_v32, %v6796_v23 }
 0x238   :  { %v1039_v1 = vmax.f32 %v961_v18, 0.0  ;;  %v4602_v26 = vpop.f32.mrb[40].mxu1  ;;  %v7000_v43 = vpop.f32.mrb[52].mxu0  ;;  %4989 = vmatprep.mubr.f32.mxu0 %v1200_v22 }
 0x239   :  { %v976_v49 = vadd.f32 %v4602_v26, %v6792_v15  ;;  %v970_v41 = vpop.f32.mrb[41].mxu1  ;;  %v7005_v55 = vpop.f32.mrb[53].mxu0  ;;  %v1204_v26 = vmax.f32 %v1142_v37, 0.0 }
 0x23a   :  { %v971_v63 = vadd.f32 %v970_v41, %v6788_v40  ;;  %4933 = vmatprep.mubr.f32.mxu1 %v1039_v1  ;;  %v1205_v41 = vmax.f32 %v1147_v0, 0.0 }
 0x23b   :  { %4934 = vmatmul.mubr.f32.vlgmr.msra.gmra.mrb[102].mxu1 %v1040_v44  ;;  %4990 = vmatmul.mubr.f32.vlgmr.msra.gmra.mrb[90].mxu0 %v1201_v52  ;;  %v1042_v60 = vmax.f32 %v976_v49, 0.0  ;;  %v1152_v52 = vadd.f32 %v6898_v62, %v6802_v34 }
 0x23c   :  { %v1041_v2 = vmax.f32 %v971_v63, 0.0  ;;  %v4605_v59 = vpop.f32.mrb[42].mxu1  ;;  %v7010_v22 = vpop.f32.mrb[54].mxu0  ;;  %4992 = vmatprep.mubr.f32.mxu0 %v1202_v11  ;;  %5723 = vmatpush3.bf16.msra.mxu1 %v6519_v6  ;;  %v1157_v11 = vadd.f32 %v6894_v51, %v6800_v31 }
 0x23d   :  { %v986_v18 = vadd.f32 %v4605_v59, %v6796_v23  ;;  %5755 = vmatpush3.bf16.msra.mxu0 %v6519_v6  ;;  %v980_v39 = vpop.f32.mrb[43].mxu1  ;;  %v7017_v1 = vpop.f32.mrb[55].mxu0  ;;  %5725 = vmatprep.subr.bf16.mxu1 %v6560_v9  ;;  %v1206_v59 = vmax.f32 %v1152_v52, 0.0 }
 0x23e   :  { %v981_v44 = vadd.f32 %v980_v39, %v6798_v28  ;;  %4936 = vmatprep.mubr.f32.mxu1 %v1041_v2  ;;  %5757 = vmatprep.subr.bf16.mxu0 %v6560_v9  ;;  %v1167_v39 = vadd.f32 %v6908_v5, %v6806_v42 }
 0x23f   :  { %4937 = vmatmul.mubr.f32.gmra.mrb[104].mxu1 %v1042_v60  ;;  %4993 = vmatmul.mubr.f32.gmra.mrb[92].mxu0 %v1203_v3  ;;  %v1044_v37 = vmax.f32 %v986_v18, 0.0  ;;  %v1162_v3 = vadd.f32 %v6912_v50, %v6809_v46  ;;  %v1207_v18 = vmax.f32 %v1157_v11, 0.0 }
 0x240   :  { %v1043_v32 = vmax.f32 %v981_v44, 0.0  ;;  %v4608_v35 = vpop.f32.mrb[44].mxu1  ;;  %v7024_v49 = vpop.f32.mrb[56].mxu0  ;;  %4995 = vmatprep.mubr.f32.mxu0 %v1204_v26  ;;  %5727 = vmatpush3.bf16.msra.mxu1 %v6560_v9  ;;  %v1209_v11 = vmax.f32 %v1167_v39, 0.0 }
 0x241   :  { %v996_v62 = vadd.f32 %v4608_v35, %v6800_v31  ;;  %5759 = vmatpush3.bf16.msra.mxu0 %v6560_v9  ;;  %v990_v63 = vpop.f32.mrb[45].mxu1  ;;  %v7031_v2 = vpop.f32.mrb[57].mxu0  ;;  %5729 = vmatprep.subr.bf16.mxu1 %v6588_v13  ;;  %v1208_v44 = vmax.f32 %v1162_v3, 0.0  ;;  %v1182_v3 = vadd.f32 %v6936_v4, %v6838_v16 }
 0x242   :  { %v991_v60 = vadd.f32 %v990_v63, %v6802_v34  ;;  %4939 = vmatprep.mubr.f32.mxu1 %v1043_v32  ;;  %5761 = vmatprep.subr.bf16.mxu0 %v6588_v13  ;;  %v1172_v32 = vadd.f32 %v6926_v61, %v6820_v57 }
 0x243   :  { %4940 = vmatmul.mubr.f32.gmra.mrb[106].mxu1 %v1044_v37  ;;  %4996 = vmatmul.mubr.f32.gmra.mrb[94].mxu0 %v1205_v41  ;;  %v1046_v26 = vmax.f32 %v996_v62, 0.0  ;;  %v1177_v37 = vadd.f32 %v6920_v27, %v6818_v56 }
 0x244   :  { %v1045_v51 = vmax.f32 %v991_v60, 0.0  ;;  %v4611_v0 = vpop.f32.mrb[46].mxu1  ;;  %4998 = vmatprep.mubr.f32.mxu0 %v1206_v59  ;;  %5731 = vmatpush3.bf16.msra.mxu1 %v6588_v13  ;;  %v1210_v59 = vmax.f32 %v1172_v32, 0.0 }
 0x245   :  { %v1006_v52 = vadd.f32 %v4611_v0, %v6806_v42  ;;  %5763 = vmatpush3.bf16.msra.mxu0 %v6588_v13  ;;  %v1000_v50 = vpop.f32.mrb[47].mxu1  ;;  %5733 = vmatprep.subr.bf16.mxu1 %v6606_v17  ;;  %v1211_v0 = vmax.f32 %v1177_v37, 0.0 }
 0x246   :  { %v1001_v35 = vadd.f32 %v1000_v50, %v6809_v46  ;;  %4942 = vmatprep.mubr.f32.mxu1 %v1045_v51  ;;  %5765 = vmatprep.subr.bf16.mxu0 %v6606_v17  ;;  %v1192_v50 = vadd.f32 %v6946_v8, %v6858_v47 }
 0x247   :  { %4943 = vmatmul.mubr.f32.gmra.mrb[108].mxu1 %v1046_v26  ;;  %4999 = vmatmul.mubr.f32.gmra.mrb[96].mxu0 %v1207_v18  ;;  %v1048_v62 = vmax.f32 %v1006_v52, 0.0  ;;  %v1187_v18 = vadd.f32 %v6932_v48, %v6836_v14  ;;  %v1212_v52 = vmax.f32 %v1182_v3, 0.0 }
 0x248   :  { %v1047_v5 = vmax.f32 %v1001_v35, 0.0  ;;  %v4614_v41 = vpop.f32.mrb[48].mxu1  ;;  %5001 = vmatprep.mubr.f32.mxu0 %v1208_v44  ;;  %5735 = vmatpush3.bf16.msra.mxu1 %v6606_v17  ;;  %v1214_v37 = vmax.f32 %v1192_v50, 0.0 }
 0x249   :  { %v1016_v63 = vadd.f32 %v4614_v41, %v6818_v56  ;;  %5767 = vmatpush3.bf16.msra.mxu0 %v6606_v17  ;;  %v1010_v61 = vpop.f32.mrb[49].mxu1  ;;  %5737 = vmatprep.subr.bf16.mxu1 %v6625_v21  ;;  %v1213_v35 = vmax.f32 %v1187_v18, 0.0  ;;  %v1454_v18 = vadd.f32 %v6966_v53, %v6788_v40 }
 0x24a   :  { %v1011_v60 = vadd.f32 %v1010_v61, %v6820_v57  ;;  %4945 = vmatprep.mubr.f32.mxu1 %v1047_v5  ;;  %5769 = vmatprep.subr.bf16.mxu0 %v6625_v21  ;;  %v1197_v5 = vadd.f32 %v6942_v58, %v6856_v45 }
 0x24b   :  { %4946 = vmatmul.mubr.f32.gmra.mrb[110].mxu1 %v1048_v62  ;;  %5002 = vmatmul.mubr.f32.gmra.mrb[98].mxu0 %v1209_v11  ;;  %v1050_v39 = vmax.f32 %v1016_v63, 0.0  ;;  %v1444_v62 = vadd.f32 %v6956_v36, %v6790_v12  ;;  %v1449_v36 = vadd.f32 %v6952_v20, %v6794_v19 }
 0x24c   :  { %v1049_v27 = vmax.f32 %v1011_v60, 0.0  ;;  %v4617_v51 = vpop.f32.mrb[50].mxu1  ;;  %5004 = vmatprep.mubr.f32.mxu0 %v1210_v59  ;;  %5739 = vmatpush3.bf16.msra.mxu1 %v6625_v21  ;;  %v1215_v59 = vmax.f32 %v1197_v5, 0.0 }
 0x24d   :  { %v1026_v26 = vadd.f32 %v4617_v51, %v6836_v14  ;;  %5771 = vmatpush3.bf16.msra.mxu0 %v6625_v21  ;;  %v1020_v4 = vpop.f32.mrb[51].mxu1  ;;  %5741 = vmatprep.subr.bf16.mxu1 %v6644_v25  ;;  %v1522_v51 = vmax.f32 %v1444_v62, 0.0  ;;  %v1523_v50 = vmax.f32 %v1449_v36, 0.0  ;;  %v1469_v62 = vadd.f32 %v6972_v54, %v6796_v23 }
 0x24e   :  { %v1021_v44 = vadd.f32 %v1020_v4, %v6838_v16  ;;  %4948 = vmatprep.mubr.f32.mxu1 %v1049_v27  ;;  %5773 = vmatprep.subr.bf16.mxu0 %v6644_v25 }
 0x24f   :  { %4949 = vmatmul.mubr.f32.gmra.mrb[112].mxu1 %v1050_v39  ;;  %5005 = vmatmul.mubr.f32.gmra.mrb[100].mxu0 %v1211_v0  ;;  %v1052_v41 = vmax.f32 %v1026_v26, 0.0  ;;  %v1527_v54 = vmax.f32 %v1469_v62, 0.0 }
 0x250   :  { %v1051_v48 = vmax.f32 %v1021_v44, 0.0  ;;  %v4620_v32 = vpop.f32.mrb[52].mxu1  ;;  %5007 = vmatprep.mubr.f32.mxu0 %v1212_v52  ;;  %5743 = vmatpush3.bf16.msra.mxu1 %v6644_v25  ;;  %v1459_v44 = vadd.f32 %v6962_v10, %v6792_v15 }
 0x251   :  { %v1036_v11 = vadd.f32 %v4620_v32, %v6856_v45  ;;  %5775 = vmatpush3.bf16.msra.mxu0 %v6644_v25  ;;  %v1030_v8 = vpop.f32.mrb[53].mxu1  ;;  %5745 = vmatprep.subr.bf16.mxu1 %v6662_v29  ;;  %v1524_v32 = vmax.f32 %v1454_v18, 0.0 }
 0x252   :  { %v1031_v63 = vadd.f32 %v1030_v8, %v6858_v47  ;;  %4951 = vmatprep.mubr.f32.mxu1 %v1051_v48  ;;  %5777 = vmatprep.subr.bf16.mxu0 %v6662_v29  ;;  %v6097_v48 = vmov 0.0|0.0  }
 0x253   :  { %4952 = vmatmul.mubr.f32.gmra.mrb[114].mxu1 %v1052_v41  ;;  %5008 = vmatmul.mubr.f32.gmra.mrb[102].mxu0 %v1213_v35  ;;  %v1054_v3 = vmax.f32 %v1036_v11, 0.0  ;;  %v1464_v35 = vadd.f32 %v6976_v30, %v6798_v28 }
 0x254   :  { %v1053_v58 = vmax.f32 %v1031_v63, 0.0  ;;  %v4655_v61 = vpop.f32.mrb[54].mxu1  ;;  %5010 = vmatprep.mubr.f32.mxu0 %v1214_v37  ;;  %5747 = vmatpush3.bf16.msra.mxu1 %v6662_v29  ;;  %v1525_v37 = vmax.f32 %v1459_v44, 0.0 }
 0x255   :  { %v1288_v60 = vadd.f32 %v4655_v61, %v6794_v19  ;;  %5779 = vmatpush3.bf16.msra.mxu0 %v6662_v29  ;;  %v1282_v27 = vpop.f32.mrb[55].mxu1  ;;  %5749 = vmatprep.subr.bf16.mxu1 %v6680_v33  ;;  %v1526_v30 = vmax.f32 %v1464_v35, 0.0 }
 0x256   :  { %v1283_v0 = vadd.f32 %v1282_v27, %v6790_v12  ;;  %4954 = vmatprep.mubr.f32.mxu1 %v1053_v58  ;;  %5781 = vmatprep.subr.bf16.mxu0 %v6680_v33  ;;  %v1474_v58 = vadd.f32 %v6985_v38, %v6802_v34  ;;  %v1479_v27 = vadd.f32 %v6982_v24, %v6800_v31 }
 0x257   :  { %4955 = vmatmul.mubr.f32.gmra.mrb[116].mxu1 %v1054_v3  ;;  %5011 = vmatmul.mubr.f32.gmra.mrb[104].mxu0 %v1215_v59  ;;  %v1362_v4 = vmax.f32 %v1288_v60, 0.0 }
 0x258   :  { %v1361_v39 = vmax.f32 %v1283_v0, 0.0  ;;  %v4658_v26 = vpop.f32.mrb[56].mxu1  ;;  %5751 = vmatpush3.bf16.msra.mxu1 %v6680_v33  ;;  %5101 = vmatprep.mubr.f32.mxu0 %v1522_v51  ;;  %v1528_v38 = vmax.f32 %v1474_v58, 0.0  ;;  %v1484_v51 = vadd.f32 %v6995_v7, %v6809_v46  ;;  %v1529_v24 = vmax.f32 %v1479_v27, 0.0 }
 0x259   :  { %v1298_v52 = vadd.f32 %v4658_v26, %v6792_v15  ;;  %5783 = vmatpush3.bf16.msra.mxu0 %v6680_v33  ;;  %v1292_v20 = vpop.f32.mrb[57].mxu1  ;;  %5785 = vmatprep.subr.bf16.mxu1 %v6519_v6 }
 0x25a   :  { %v1293_v53 = vadd.f32 %v1292_v20, %v6788_v40  ;;  %5045 = vmatprep.mubr.f32.mxu1 %v1361_v39  ;;  %5816 = vmatprep.subr.bf16.mxu0 %v6097_v48  ;;  %v1530_v7 = vmax.f32 %v1484_v51, 0.0 }
 0x25b   :  { %5046 = vmatmul.mubr.f32.vlgmr.msra.gmra.mrb[118].mxu1 %v1362_v4  ;;  %v1364_v11 = vmax.f32 %v1298_v52, 0.0  ;;  %v7430_v4 = vld [vmem:[#allocation8_spill] sm:$0xff] }
 0x25c   :  { %v1363_v5 = vmax.f32 %v1293_v53, 0.0  ;;  %5102 = vmatmul.mubr.f32.vlgmr.msra.gmra.mrb[106].mxu0 %v1523_v50  ;;  %v4661_v41 = vpop.f32.mrb[58].mxu1  ;;  %5787 = vmatpush3.bf16.msra.mxu1 %v6519_v6  ;;  %v1489_v52 = vadd.f32 %v7430_v4, %v6806_v42  ;;  %v1494_v50 = vadd.f32 %v7005_v55, %v6820_v57 }
 0x25d   :  { %v1308_v8 = vadd.f32 %v4661_v41, %v6796_v23  ;;  %5104 = vmatprep.mubr.f32.mxu0 %v1524_v32  ;;  %v1302_v10 = vpop.f32.mrb[59].mxu1  ;;  %5789 = vmatprep.subr.bf16.mxu1 %v6560_v9  ;;  %v1499_v41 = vadd.f32 %v7000_v43, %v6818_v56 }
 0x25e   :  { %v1303_v63 = vadd.f32 %v1302_v10, %v6798_v28  ;;  %5048 = vmatprep.mubr.f32.mxu1 %v1363_v5  ;;  %v1531_v5 = vmax.f32 %v1489_v52, 0.0  ;;  %v1532_v55 = vmax.f32 %v1494_v50, 0.0 }
 0x25f   :  { %5049 = vmatmul.mubr.f32.gmra.mrb[120].mxu1 %v1364_v11  ;;  %v1366_v59 = vmax.f32 %v1308_v8, 0.0  ;;  %v1504_v8 = vadd.f32 %v7017_v1, %v6838_v16  ;;  %v1533_v43 = vmax.f32 %v1499_v41, 0.0 }
 0x260   :  { %v1365_v6 = vmax.f32 %v1303_v63, 0.0  ;;  %5105 = vmatmul.mubr.f32.gmra.mrb[108].mxu0 %v1525_v37  ;;  %v4664_v61 = vpop.f32.mrb[60].mxu1  ;;  %5791 = vmatpush3.bf16.msra.mxu1 %v6560_v9 }
 0x261   :  { %v1318_v3 = vadd.f32 %v4664_v61, %v6800_v31  ;;  %5107 = vmatprep.mubr.f32.mxu0 %v1526_v30  ;;  %v1312_v60 = vpop.f32.mrb[61].mxu1  ;;  %5793 = vmatprep.subr.bf16.mxu1 %v6588_v13  ;;  %v1509_v30 = vadd.f32 %v7010_v22, %v6836_v14  ;;  %v1534_v1 = vmax.f32 %v1504_v8, 0.0 }
 0x262   :  { %v1313_v36 = vadd.f32 %v1312_v60, %v6802_v34  ;;  %5051 = vmatprep.mubr.f32.mxu1 %v1365_v6  ;;  %v1514_v6 = vadd.f32 %v7031_v2, %v6858_v47 }
 0x263   :  { %5052 = vmatmul.mubr.f32.gmra.mrb[122].mxu1 %v1366_v59  ;;  %v1368_v18 = vmax.f32 %v1318_v3, 0.0  ;;  %v1535_v22 = vmax.f32 %v1509_v30, 0.0 }
 0x264   :  { %v1367_v9 = vmax.f32 %v1313_v36, 0.0  ;;  %5108 = vmatmul.mubr.f32.gmra.mrb[110].mxu0 %v1527_v54  ;;  %v4667_v0 = vpop.f32.mrb[62].mxu1  ;;  %5795 = vmatpush3.bf16.msra.mxu1 %v6588_v13  ;;  %v1519_v54 = vadd.f32 %v7024_v49, %v6856_v45  ;;  %v1536_v2 = vmax.f32 %v1514_v6, 0.0 }
 0x265   :  { %v1328_v39 = vadd.f32 %v4667_v0, %v6806_v42  ;;  %5110 = vmatprep.mubr.f32.mxu0 %v1528_v38  ;;  %v1322_v26 = vpop.f32.mrb[63].mxu1  ;;  %5797 = vmatprep.subr.bf16.mxu1 %v6606_v17 }
 0x266   :  { %v1323_v20 = vadd.f32 %v1322_v26, %v6809_v46  ;;  %5054 = vmatprep.mubr.f32.mxu1 %v1367_v9  ;;  %v1537_v0 = vmax.f32 %v1519_v54, 0.0 }
 0x267   :  { %5055 = vmatmul.mubr.f32.gmra.mrb[124].mxu1 %v1368_v18  ;;  %v1370_v53 = vmax.f32 %v1328_v39, 0.0 }
 0x268   :  { %v1369_v13 = vmax.f32 %v1323_v20, 0.0  ;;  %5111 = vmatmul.mubr.f32.gmra.mrb[112].mxu0 %v1529_v24  ;;  %v4670_v44 = vpop.f32.mrb[64].mxu1  ;;  %5799 = vmatpush3.bf16.msra.mxu1 %v6606_v17 }
 0x269   :  { %v1338_v32 = vadd.f32 %v4670_v44, %v6818_v56  ;;  %5113 = vmatprep.mubr.f32.mxu0 %v1530_v7  ;;  %v1332_v35 = vpop.f32.mrb[65].mxu1  ;;  %5801 = vmatprep.subr.bf16.mxu1 %v6625_v21 }
 0x26a   :  { %v1333_v11 = vadd.f32 %v1332_v35, %v6820_v57  ;;  %5057 = vmatprep.mubr.f32.mxu1 %v1369_v13 }
 0x26b   :  { %5058 = vmatmul.mubr.f32.gmra.mrb[126].mxu1 %v1370_v53  ;;  %v1372_v37 = vmax.f32 %v1338_v32, 0.0 }
 0x26c   :  { %v1371_v17 = vmax.f32 %v1333_v11, 0.0  ;;  %5114 = vmatmul.mubr.f32.gmra.mrb[114].mxu0 %v1531_v5  ;;  %v4673_v10 = vpop.f32.mrb[66].mxu1  ;;  %5803 = vmatpush3.bf16.msra.mxu1 %v6625_v21 }
 0x26d   :  { %v1348_v62 = vadd.f32 %v4673_v10, %v6836_v14  ;;  %5116 = vmatprep.mubr.f32.mxu0 %v1532_v55  ;;  %v1342_v63 = vpop.f32.mrb[67].mxu1  ;;  %5805 = vmatprep.subr.bf16.mxu1 %v6644_v25 }
 0x26e   :  { %v1343_v58 = vadd.f32 %v1342_v63, %v6838_v16  ;;  %5060 = vmatprep.mubr.f32.mxu1 %v1371_v17 }
 0x26f   :  { %5061 = vmatmul.mubr.f32.gmra.mrb[128].mxu1 %v1372_v37  ;;  %v1374_v59 = vmax.f32 %v1348_v62, 0.0 }
 0x270   :  { %v1373_v21 = vmax.f32 %v1343_v58, 0.0  ;;  %5117 = vmatmul.mubr.f32.gmra.mrb[116].mxu0 %v1533_v43  ;;  %v4676_v61 = vpop.f32.mrb[68].mxu1  ;;  %5807 = vmatpush3.bf16.msra.mxu1 %v6644_v25 }
 0x271   :  { %v1358_v3 = vadd.f32 %v4676_v61, %v6856_v45  ;;  %5119 = vmatprep.mubr.f32.mxu0 %v1534_v1  ;;  %v1352_v60 = vpop.f32.mrb[69].mxu1  ;;  %5809 = vmatprep.subr.bf16.mxu1 %v6662_v29 }
 0x272   :  { %v1353_v27 = vadd.f32 %v1352_v60, %v6858_v47  ;;  %5063 = vmatprep.mubr.f32.mxu1 %v1373_v21 }
 0x273   :  { %5064 = vmatmul.mubr.f32.gmra.mrb[130].mxu1 %v1374_v59  ;;  %v1376_v25 = vmax.f32 %v1358_v3, 0.0 }
 0x274   :  { %v1375_v36 = vmax.f32 %v1353_v27, 0.0  ;;  %5120 = vmatmul.mubr.f32.gmra.mrb[118].mxu0 %v1535_v22  ;;  %v4711_v38 = vpop.f32.mrb[70].mxu1  ;;  %5811 = vmatpush3.bf16.msra.mxu1 %v6662_v29 }
 0x275   :  { %v1610_v51 = vadd.f32 %v4711_v38, %v6794_v19  ;;  %5122 = vmatprep.mubr.f32.mxu0 %v1536_v2  ;;  %v1604_v9 = vpop.f32.mrb[71].mxu1  ;;  %5813 = vmatprep.subr.bf16.mxu1 %v6680_v33  ;;  %v6099_v19 = vmov 0.0  }
 0x276   :  { %v1605_v49 = vadd.f32 %v1604_v9, %v6790_v12  ;;  %5066 = vmatprep.mubr.f32.mxu1 %v1375_v36 }
 0x277   :  { %5067 = vmatmul.mubr.f32.gmra.mrb[132].mxu1 %v1376_v25  ;;  %v1684_v26 = vmax.f32 %v1610_v51, 0.0 }
 0x278   :  { %v1683_v18 = vmax.f32 %v1605_v49, 0.0  ;;  %5123 = vmatmul.mubr.f32.gmra.mrb[120].mxu0 %v1537_v0  ;;  %v4714_v39 = vpop.f32.mrb[72].mxu1  ;;  %5815 = vmatpush3.bf16.msra.mxu1 %v6680_v33 }
 0x279   :  { %v1620_v29 = vadd.f32 %v4714_v39, %v6792_v15  ;;  %v1614_v24 = vpop.f32.mrb[73].mxu1  ;;  %5213 = vmatprep.mubr.msk.f32.mxu0 %vm6098_vm1, %v6099_v19  ;;  %5840 = vmatprep.subr.bf16.mxu1 %v6097_v48 }
 0x27a   :  { %v1615_v12 = vadd.f32 %v1614_v24, %v6788_v40  ;;  %5157 = vmatprep.mubr.f32.mxu1 %v1683_v18 }
 0x27b   :  { %5158 = vmatmul.mubr.f32.vlgmr.msra.gmra.mrb[134].mxu1 %v1684_v26  ;;  %v1686_v20 = vmax.f32 %v1620_v29, 0.0 }
 0x27c   :  { %v1685_v4 = vmax.f32 %v1615_v12, 0.0  ;;  %v4717_v52 = vpop.f32.mrb[74].mxu1 }
 0x27d   :  { %v1630_v33 = vadd.f32 %v4717_v52, %v6796_v23  ;;  %v1624_v7 = vpop.f32.mrb[75].mxu1 }
 0x27e   :  { %v1625_v15 = vadd.f32 %v1624_v7, %v6798_v28  ;;  %5160 = vmatprep.mubr.f32.mxu1 %v1685_v4 }
 0x27f   :  { %5161 = vmatmul.mubr.f32.gmra.mrb[136].mxu1 %v1686_v20  ;;  %v1688_v44 = vmax.f32 %v1630_v33, 0.0 }
 0x280   :  { %v1687_v50 = vmax.f32 %v1625_v15, 0.0  ;;  %v4720_v13 = vpop.f32.mrb[76].mxu1 }
 0x281   :  { %v1640_v53 = vadd.f32 %v4720_v13, %v6800_v31  ;;  %v1634_v32 = vpop.f32.mrb[77].mxu1 }
 0x282   :  { %v1635_v40 = vadd.f32 %v1634_v32, %v6802_v34  ;;  %5163 = vmatprep.mubr.f32.mxu1 %v1687_v50 }
 0x283   :  { %5164 = vmatmul.mubr.f32.gmra.mrb[138].mxu1 %v1688_v44  ;;  %v1690_v41 = vmax.f32 %v1640_v53, 0.0 }
 0x284   :  { %v1689_v35 = vmax.f32 %v1635_v40, 0.0  ;;  %v4723_v5 = vpop.f32.mrb[78].mxu1 }
 0x285   :  { %v1650_v23 = vadd.f32 %v4723_v5, %v6806_v42  ;;  %v1644_v11 = vpop.f32.mrb[79].mxu1 }
 0x286   :  { %v1645_v28 = vadd.f32 %v1644_v11, %v6809_v46  ;;  %5166 = vmatprep.mubr.f32.mxu1 %v1689_v35 }
 0x287   :  { %5167 = vmatmul.mubr.f32.gmra.mrb[140].mxu1 %v1690_v41  ;;  %v1692_v17 = vmax.f32 %v1650_v23, 0.0 }
 0x288   :  { %v1691_v55 = vmax.f32 %v1645_v28, 0.0  ;;  %v4726_v8 = vpop.f32.mrb[80].mxu1 }
 0x289   :  { %v1660_v31 = vadd.f32 %v4726_v8, %v6818_v56  ;;  %v1654_v10 = vpop.f32.mrb[81].mxu1 }
 0x28a   :  { %v1655_v34 = vadd.f32 %v1654_v10, %v6820_v57  ;;  %5169 = vmatprep.mubr.f32.mxu1 %v1691_v55 }
 0x28b   :  { %5170 = vmatmul.mubr.f32.gmra.mrb[142].mxu1 %v1692_v17  ;;  %v1694_v63 = vmax.f32 %v1660_v31, 0.0 }
 0x28c   :  { %v1693_v37 = vmax.f32 %v1655_v34, 0.0  ;;  %v4729_v62 = vpop.f32.mrb[82].mxu1 }
 0x28d   :  { %v1670_v42 = vadd.f32 %v4729_v62, %v6836_v14  ;;  %v1664_v43 = vpop.f32.mrb[83].mxu1  ;;  %v7171_v14 = vld [vmem:[%s7424_s6] ss:$0 sm:$0xff] }
 0x28e   :  { %v1665_v46 = vadd.f32 %v1664_v43, %v6838_v16  ;;  %5172 = vmatprep.mubr.f32.mxu1 %v1693_v37 }
 0x28f   :  { %5173 = vmatmul.mubr.f32.gmra.mrb[144].mxu1 %v1694_v63  ;;  %v1696_v1 = vmax.f32 %v1670_v42, 0.0 }
 0x290   :  { %v1695_v30 = vmax.f32 %v1665_v46, 0.0  ;;  %v4732_v58 = vpop.f32.mrb[84].mxu1 }
 0x291   :  { %v1680_v56 = vadd.f32 %v4732_v58, %v6856_v45  ;;  %v1674_v6 = vpop.f32.mrb[85].mxu1 }
 0x292   :  { %v1675_v57 = vadd.f32 %v1674_v6, %v6858_v47  ;;  %5175 = vmatprep.mubr.f32.mxu1 %v1695_v30  ;;  %v3865_v6 = vld [vmem:[%s7423_s5 + $0x98] sm:$0xff] }
 0x293   :  { %5176 = vmatmul.mubr.f32.gmra.mrb[146].mxu1 %v1696_v1  ;;  %v1698_v61 = vmax.f32 %v1680_v56, 0.0 }
 0x294   :  { %v1697_v21 = vmax.f32 %v1675_v57, 0.0 }
 0x296   :  { %5178 = vmatprep.mubr.f32.mxu1 %v1697_v21 }
 0x297   :  { %5179 = vmatmul.mubr.f32.gmra.mrb[148].mxu1 %v1698_v61 }
 0x298   :  { %5248 = vmatprep.mubr.msk.f32.mxu1 %vm6098_vm1, %v6099_v19 }
 0x2c2   :  { %v4767_v16 = vpop.f32.mrb[58].mxu0 }
 0x2c3   :  { %v1794_v45 = vadd.f32 %v4767_v16, %v7171_v14  ;;  %v1788_v59 = vpop.f32.mrb[59].mxu0 }
 0x2c4   :  { %v1789_v47 = vadd.f32 %v7171_v14, %v1788_v59 }
 0x2c5   :  { %v1868_v3 = vmax.f32 %v1794_v45, 0.0 }
 0x2c6   :  { %v1867_v60 = vmax.f32 %v1789_v47, 0.0  ;;  %v4770_v22 = vpop.f32.mrb[60].mxu0 }
 0x2c7   :  { %v1804_v54 = vadd.f32 %v4770_v22, %v7171_v14  ;;  %v1798_v27 = vpop.f32.mrb[61].mxu0  ;;  %v7203_v22 = vrot.slane %v3865_v6, 7 }
 0x2c8   :  { %v5817_v2 = vpack.c.bf16 %v1868_v3, %v1867_v60  ;;  %v1799_v36 = vadd.f32 %v7171_v14, %v1798_v27 }
 0x2c9   :  { %v1870_v38 = vmax.f32 %v1804_v54, 0.0 }
 0x2ca   :  { %v1869_v25 = vmax.f32 %v1799_v36, 0.0  ;;  %v4773_v51 = vpop.f32.mrb[62].mxu0  ;;  %5818 = vmatpush3.bf16.msra.mxu0 %v5817_v2 }
 0x2cb   :  { %v1814_v9 = vadd.f32 %v4773_v51, %v7171_v14  ;;  %v1808_v0 = vpop.f32.mrb[63].mxu0  ;;  %5819 = vmatprep.subr.bf16.mxu0 %v6097_v48 }
 0x2cc   :  { %v5820_v49 = vpack.c.bf16 %v1870_v38, %v1869_v25  ;;  %v1809_v18 = vadd.f32 %v7171_v14, %v1808_v0 }
 0x2cd   :  { %v1872_v39 = vmax.f32 %v1814_v9, 0.0 }
 0x2ce   :  { %v1871_v26 = vmax.f32 %v1809_v18, 0.0  ;;  %v4776_v29 = vpop.f32.mrb[64].mxu0  ;;  %5821 = vmatpush3.bf16.msra.mxu0 %v5820_v49 }
 0x2cf   :  { %v1824_v24 = vadd.f32 %v4776_v29, %v7171_v14  ;;  %v1818_v12 = vpop.f32.mrb[65].mxu0  ;;  %5822 = vmatprep.subr.bf16.mxu0 %v6097_v48 }
 0x2d0   :  { %v5823_v4 = vpack.c.bf16 %v1872_v39, %v1871_v26  ;;  %v1819_v52 = vadd.f32 %v7171_v14, %v1818_v12 }
 0x2d1   :  { %v1874_v20 = vmax.f32 %v1824_v24, 0.0 }
 0x2d2   :  { %v1873_v33 = vmax.f32 %v1819_v52, 0.0  ;;  %v4779_v7 = vpop.f32.mrb[66].mxu0  ;;  %5824 = vmatpush3.bf16.msra.mxu0 %v5823_v4 }
 0x2d3   :  { %v1834_v15 = vadd.f32 %v4779_v7, %v7171_v14  ;;  %v1828_v50 = vpop.f32.mrb[67].mxu0  ;;  %5825 = vmatprep.subr.bf16.mxu0 %v6097_v48 }
 0x2d4   :  { %v5826_v13 = vpack.c.bf16 %v1874_v20, %v1873_v33  ;;  %v1829_v44 = vadd.f32 %v7171_v14, %v1828_v50 }
 0x2d5   :  { %v1876_v53 = vmax.f32 %v1834_v15, 0.0 }
 0x2d6   :  { %v1875_v32 = vmax.f32 %v1829_v44, 0.0  ;;  %v4782_v40 = vpop.f32.mrb[68].mxu0  ;;  %5827 = vmatpush3.bf16.msra.mxu0 %v5826_v13 }
 0x2d7   :  { %v1844_v35 = vadd.f32 %v4782_v40, %v7171_v14  ;;  %v1838_v5 = vpop.f32.mrb[69].mxu0  ;;  %5828 = vmatprep.subr.bf16.mxu0 %v6097_v48 }
 0x2d8   :  { %v5829_v41 = vpack.c.bf16 %v1876_v53, %v1875_v32  ;;  %v1839_v23 = vadd.f32 %v7171_v14, %v1838_v5 }
 0x2d9   :  { %v1878_v11 = vmax.f32 %v1844_v35, 0.0 }
 0x2da   :  { %v1877_v28 = vmax.f32 %v1839_v23, 0.0  ;;  %v4785_v55 = vpop.f32.mrb[70].mxu0  ;;  %5830 = vmatpush3.bf16.msra.mxu0 %v5829_v41 }
 0x2db   :  { %v1854_v8 = vadd.f32 %v4785_v55, %v7171_v14  ;;  %v1848_v17 = vpop.f32.mrb[71].mxu0  ;;  %5831 = vmatprep.subr.bf16.mxu0 %v6097_v48 }
 0x2dc   :  { %v5832_v31 = vpack.c.bf16 %v1878_v11, %v1877_v28  ;;  %v1849_v10 = vadd.f32 %v7171_v14, %v1848_v17 }
 0x2dd   :  { %v1880_v34 = vmax.f32 %v1854_v8, 0.0 }
 0x2de   :  { %v1879_v37 = vmax.f32 %v1849_v10, 0.0  ;;  %v4788_v62 = vpop.f32.mrb[72].mxu0  ;;  %5833 = vmatpush3.bf16.msra.mxu0 %v5832_v31 }
 0x2df   :  { %v1864_v63 = vadd.f32 %v4788_v62, %v7171_v14  ;;  %v1858_v42 = vpop.f32.mrb[73].mxu0  ;;  %5834 = vmatprep.subr.bf16.mxu0 %v6097_v48 }
 0x2e0   :  { %v5835_v43 = vpack.c.bf16 %v1880_v34, %v1879_v37  ;;  %v1859_v46 = vadd.f32 %v7171_v14, %v1858_v42 }
 0x2e1   :  { %v1882_v30 = vmax.f32 %v1864_v63, 0.0 }
 0x2e2   :  { %v1881_v58 = vmax.f32 %v1859_v46, 0.0  ;;  %v4823_v1 = vpop.f32.mrb[86].mxu1  ;;  %v4879_v56 = vpop.f32.mrb[74].mxu0  ;;  %5836 = vmatpush3.bf16.msra.mxu0 %v5835_v43 }
 0x2e3   :  { %v1955_v57 = vadd.f32 %v4823_v1, %v7171_v14  ;;  %v2116_v21 = vadd.f32 %v4879_v56, %v7171_v14  ;;  %v1949_v61 = vpop.f32.mrb[87].mxu1  ;;  %v2110_v16 = vpop.f32.mrb[75].mxu0  ;;  %5837 = vmatprep.subr.bf16.mxu0 %v6097_v48 }
 0x2e4   :  { %v5838_v45 = vpack.c.bf16 %v1882_v30, %v1881_v58  ;;  %v1950_v59 = vadd.f32 %v7171_v14, %v1949_v61  ;;  %v2111_v47 = vadd.f32 %v7171_v14, %v2110_v16 }
 0x2e5   :  { %v2029_v3 = vmax.f32 %v1955_v57, 0.0  ;;  %v2190_v60 = vmax.f32 %v2116_v21, 0.0 }
 0x2e6   :  { %v2028_v54 = vmax.f32 %v1950_v59, 0.0  ;;  %v2189_v27 = vmax.f32 %v2111_v47, 0.0  ;;  %v4826_v2 = vpop.f32.mrb[88].mxu1  ;;  %v4882_v36 = vpop.f32.mrb[76].mxu0  ;;  %5839 = vmatpush3.bf16.msra.mxu0 %v5838_v45 }
 0x2e7   :  { %v1965_v38 = vadd.f32 %v4826_v2, %v7171_v14  ;;  %v2126_v25 = vadd.f32 %v4882_v36, %v7171_v14  ;;  %v1959_v51 = vpop.f32.mrb[89].mxu1  ;;  %v2120_v9 = vpop.f32.mrb[77].mxu0  ;;  %5864 = vmatprep.subr.bf16.mxu0 %v6097_v48 }
 0x2e8   :  { %v5841_v0 = vpack.c.bf16 %v2029_v3, %v2028_v54  ;;  %v5865_v49 = vpack.c.bf16 %v2190_v60, %v2189_v27  ;;  %v1960_v18 = vadd.f32 %v7171_v14, %v1959_v51  ;;  %v2121_v39 = vadd.f32 %v7171_v14, %v2120_v9 }
 0x2e9   :  { %v2031_v26 = vmax.f32 %v1965_v38, 0.0  ;;  %v2192_v29 = vmax.f32 %v2126_v25, 0.0  ;;  %5214 = vmatmul.mubr.f32.vlgmr.msra.gmra.mrb[122].mxu0 %v7203_v22 }
 0x2ea   :  { %v2030_v24 = vmax.f32 %v1960_v18, 0.0  ;;  %v2191_v12 = vmax.f32 %v2121_v39, 0.0  ;;  %v4829_v4 = vpop.f32.mrb[90].mxu1  ;;  %v4885_v52 = vpop.f32.mrb[78].mxu0  ;;  %5842 = vmatpush3.bf16.msra.mxu1 %v5841_v0  ;;  %5866 = vmatpush3.bf16.msra.mxu0 %v5865_v49 }
 0x2eb   :  { %v1975_v20 = vadd.f32 %v4829_v4, %v7171_v14  ;;  %v2136_v33 = vadd.f32 %v4885_v52, %v7171_v14  ;;  %v1969_v7 = vpop.f32.mrb[91].mxu1  ;;  %v2130_v15 = vpop.f32.mrb[79].mxu0  ;;  %5843 = vmatprep.subr.bf16.mxu1 %v6097_v48  ;;  %5867 = vmatprep.subr.bf16.mxu0 %v6097_v48 }
 0x2ec   :  { %v5844_v50 = vpack.c.bf16 %v2031_v26, %v2030_v24  ;;  %v5868_v13 = vpack.c.bf16 %v2192_v29, %v2191_v12  ;;  %v1970_v44 = vadd.f32 %v7171_v14, %v1969_v7  ;;  %v2131_v53 = vadd.f32 %v7171_v14, %v2130_v15  ;;  %5283 = vmatprep.mubr.msk.f32.mxu0 %vm6098_vm1, %v6099_v19 }
 0x2ed   :  { %v2033_v32 = vmax.f32 %v1975_v20, 0.0  ;;  %v2194_v40 = vmax.f32 %v2136_v33, 0.0 }
 0x2ee   :  { %v2032_v35 = vmax.f32 %v1970_v44, 0.0  ;;  %v2193_v5 = vmax.f32 %v2131_v53, 0.0  ;;  %v4832_v41 = vpop.f32.mrb[92].mxu1  ;;  %v4888_v23 = vpop.f32.mrb[80].mxu0  ;;  %5845 = vmatpush3.bf16.msra.mxu1 %v5844_v50  ;;  %5869 = vmatpush3.bf16.msra.mxu0 %v5868_v13 }
 0x2ef   :  { %v1985_v11 = vadd.f32 %v4832_v41, %v7171_v14  ;;  %v2146_v28 = vadd.f32 %v4888_v23, %v7171_v14  ;;  %v1979_v55 = vpop.f32.mrb[93].mxu1  ;;  %v2140_v8 = vpop.f32.mrb[81].mxu0  ;;  %5846 = vmatprep.subr.bf16.mxu1 %v6097_v48  ;;  %5870 = vmatprep.subr.bf16.mxu0 %v6097_v48 }
 0x2f0   :  { %v5847_v17 = vpack.c.bf16 %v2033_v32, %v2032_v35  ;;  %v5871_v31 = vpack.c.bf16 %v2194_v40, %v2193_v5  ;;  %v1980_v10 = vadd.f32 %v7171_v14, %v1979_v55  ;;  %v2141_v34 = vadd.f32 %v7171_v14, %v2140_v8 }
 0x2f1   :  { %v2035_v37 = vmax.f32 %v1985_v11, 0.0  ;;  %v2196_v62 = vmax.f32 %v2146_v28, 0.0 }
 0x2f2   :  { %v2034_v63 = vmax.f32 %v1980_v10, 0.0  ;;  %v2195_v42 = vmax.f32 %v2141_v34, 0.0  ;;  %v4835_v43 = vpop.f32.mrb[94].mxu1  ;;  %v4891_v46 = vpop.f32.mrb[82].mxu0  ;;  %5848 = vmatpush3.bf16.msra.mxu1 %v5847_v17  ;;  %5872 = vmatpush3.bf16.msra.mxu0 %v5871_v31 }
 0x2f3   :  { %v1995_v30 = vadd.f32 %v4835_v43, %v7171_v14  ;;  %v2156_v58 = vadd.f32 %v4891_v46, %v7171_v14  ;;  %v1989_v1 = vpop.f32.mrb[95].mxu1  ;;  %v2150_v56 = vpop.f32.mrb[83].mxu0  ;;  %5849 = vmatprep.subr.bf16.mxu1 %v6097_v48  ;;  %5873 = vmatprep.subr.bf16.mxu0 %v6097_v48 }
 0x2f4   :  { %v5850_v6 = vpack.c.bf16 %v2035_v37, %v2034_v63  ;;  %v5874_v57 = vpack.c.bf16 %v2196_v62, %v2195_v42  ;;  %v1990_v21 = vadd.f32 %v7171_v14, %v1989_v1  ;;  %v2151_v61 = vadd.f32 %v7171_v14, %v2150_v56 }
 0x2f5   :  { %v2037_v16 = vmax.f32 %v1995_v30, 0.0  ;;  %v2198_v45 = vmax.f32 %v2156_v58, 0.0 }
 0x2f6   :  { %v2036_v59 = vmax.f32 %v1990_v21, 0.0  ;;  %v2197_v47 = vmax.f32 %v2151_v61, 0.0  ;;  %v4838_v3 = vpop.f32.mrb[96].mxu1  ;;  %5851 = vmatpush3.bf16.msra.mxu1 %v5850_v6  ;;  %5875 = vmatpush3.bf16.msra.mxu0 %v5874_v57 }
 0x2f7   :  { %v2005_v60 = vadd.f32 %v4838_v3, %v7171_v14  ;;  %v1999_v54 = vpop.f32.mrb[97].mxu1  ;;  %5852 = vmatprep.subr.bf16.mxu1 %v6097_v48  ;;  %5876 = vmatprep.subr.bf16.mxu0 %v6097_v48 }
 0x2f8   :  { %v5853_v27 = vpack.c.bf16 %v2037_v16, %v2036_v59  ;;  %v5877_v2 = vpack.c.bf16 %v2198_v45, %v2197_v47  ;;  %v2000_v36 = vadd.f32 %v7171_v14, %v1999_v54 }
 0x2f9   :  { %v2039_v38 = vmax.f32 %v2005_v60, 0.0 }
 0x2fa   :  { %v2038_v25 = vmax.f32 %v2000_v36, 0.0  ;;  %v4841_v51 = vpop.f32.mrb[98].mxu1  ;;  %5854 = vmatpush3.bf16.msra.mxu1 %v5853_v27  ;;  %5878 = vmatpush3.bf16.msra.mxu0 %v5877_v2 }
 0x2fb   :  { %v2015_v9 = vadd.f32 %v4841_v51, %v7171_v14  ;;  %v2009_v0 = vpop.f32.mrb[99].mxu1  ;;  %5855 = vmatprep.subr.bf16.mxu1 %v6097_v48  ;;  %5879 = vmatprep.subr.bf16.mxu0 %v6097_v48 }
 0x2fc   :  { %v5856_v49 = vpack.c.bf16 %v2039_v38, %v2038_v25  ;;  %v2010_v18 = vadd.f32 %v7171_v14, %v2009_v0 }
 0x2fd   :  { %v2041_v39 = vmax.f32 %v2015_v9, 0.0 }
 0x2fe   :  { %v2040_v26 = vmax.f32 %v2010_v18, 0.0  ;;  %v4844_v29 = vpop.f32.mrb[100].mxu1  ;;  %5857 = vmatpush3.bf16.msra.mxu1 %v5856_v49 }
 0x2ff   :  { %v2025_v24 = vadd.f32 %v4844_v29, %v7171_v14  ;;  %v2019_v12 = vpop.f32.mrb[101].mxu1  ;;  %5858 = vmatprep.subr.bf16.mxu1 %v6097_v48 }
 0x300   :  { %v5859_v4 = vpack.c.bf16 %v2041_v39, %v2040_v26  ;;  %v2020_v52 = vadd.f32 %v7171_v14, %v2019_v12 }
 0x301   :  { %v2043_v20 = vmax.f32 %v2025_v24, 0.0 }
 0x302   :  { %v2042_v33 = vmax.f32 %v2020_v52, 0.0  ;;  %v4894_v7 = vpop.f32.mrb[84].mxu0  ;;  %5860 = vmatpush3.bf16.msra.mxu1 %v5859_v4 }
 0x303   :  { %v2166_v15 = vadd.f32 %v4894_v7, %v7171_v14  ;;  %v2160_v50 = vpop.f32.mrb[85].mxu0  ;;  %5861 = vmatprep.subr.bf16.mxu1 %v6097_v48 }
 0x304   :  { %v5862_v13 = vpack.c.bf16 %v2043_v20, %v2042_v33  ;;  %v2161_v44 = vadd.f32 %v7171_v14, %v2160_v50 }
 0x305   :  { %v2200_v53 = vmax.f32 %v2166_v15, 0.0 }
 0x306   :  { %v2199_v32 = vmax.f32 %v2161_v44, 0.0  ;;  %v4897_v40 = vpop.f32.mrb[86].mxu0  ;;  %5863 = vmatpush3.bf16.msra.mxu1 %v5862_v13 }
 0x307   :  { %v2176_v35 = vadd.f32 %v4897_v40, %v7171_v14  ;;  %v2170_v5 = vpop.f32.mrb[87].mxu0  ;;  %5888 = vmatprep.subr.bf16.mxu1 %v6097_v48 }
 0x308   :  { %v5880_v41 = vpack.c.bf16 %v2200_v53, %v2199_v32  ;;  %v2171_v23 = vadd.f32 %v7171_v14, %v2170_v5 }
 0x309   :  { %v2202_v11 = vmax.f32 %v2176_v35, 0.0  ;;  %5249 = vmatmul.mubr.f32.vlgmr.msra.gmra.mrb[150].mxu1 %v7203_v22 }
 0x30a   :  { %v2201_v28 = vmax.f32 %v2171_v23, 0.0  ;;  %v4900_v55 = vpop.f32.mrb[88].mxu0  ;;  %5881 = vmatpush3.bf16.msra.mxu0 %v5880_v41  ;;  %5318 = vmatprep.mubr.msk.f32.mxu1 %vm6098_vm1, %v6099_v19 }
 0x30b   :  { %v2186_v8 = vadd.f32 %v4900_v55, %v7171_v14  ;;  %v2180_v17 = vpop.f32.mrb[89].mxu0  ;;  %5882 = vmatprep.subr.bf16.mxu0 %v6097_v48 }
 0x30c   :  { %v5883_v31 = vpack.c.bf16 %v2202_v11, %v2201_v28  ;;  %v2181_v10 = vadd.f32 %v7171_v14, %v2180_v17 }
 0x30d   :  { %v2204_v34 = vmax.f32 %v2186_v8, 0.0 }
 0x30e   :  { %v2203_v37 = vmax.f32 %v2181_v10, 0.0  ;;  %v4935_v62 = vpop.f32.mrb[102].mxu1  ;;  %v4991_v63 = vpop.f32.mrb[90].mxu0  ;;  %5884 = vmatpush3.bf16.msra.mxu0 %v5883_v31 }
 0x30f   :  { %v2277_v42 = vadd.f32 %v4935_v62, %v7171_v14  ;;  %v2438_v43 = vadd.f32 %v4991_v63, %v7171_v14  ;;  %v2271_v46 = vpop.f32.mrb[103].mxu1  ;;  %v2432_v30 = vpop.f32.mrb[91].mxu0  ;;  %5885 = vmatprep.subr.bf16.mxu0 %v6097_v48 }
 0x310   :  { %v5886_v58 = vpack.c.bf16 %v2204_v34, %v2203_v37  ;;  %v2272_v1 = vadd.f32 %v7171_v14, %v2271_v46  ;;  %v2433_v56 = vadd.f32 %v7171_v14, %v2432_v30 }
 0x311   :  { %v2351_v6 = vmax.f32 %v2277_v42, 0.0  ;;  %v2512_v57 = vmax.f32 %v2438_v43, 0.0 }
 0x312   :  { %v2350_v21 = vmax.f32 %v2272_v1, 0.0  ;;  %v2511_v61 = vmax.f32 %v2433_v56, 0.0  ;;  %v4938_v16 = vpop.f32.mrb[104].mxu1  ;;  %v4994_v45 = vpop.f32.mrb[92].mxu0  ;;  %5887 = vmatpush3.bf16.msra.mxu0 %v5886_v58 }
 0x313   :  { %v2287_v59 = vadd.f32 %v4938_v16, %v7171_v14  ;;  %v2448_v47 = vadd.f32 %v4994_v45, %v7171_v14  ;;  %v2281_v3 = vpop.f32.mrb[105].mxu1  ;;  %v2442_v60 = vpop.f32.mrb[93].mxu0  ;;  %5912 = vmatprep.subr.bf16.mxu0 %v6097_v48 }
 0x314   :  { %v5889_v54 = vpack.c.bf16 %v2351_v6, %v2350_v21  ;;  %v5913_v27 = vpack.c.bf16 %v2512_v57, %v2511_v61  ;;  %v2282_v2 = vadd.f32 %v7171_v14, %v2281_v3  ;;  %v2443_v36 = vadd.f32 %v7171_v14, %v2442_v60 }
 0x315   :  { %v2353_v38 = vmax.f32 %v2287_v59, 0.0  ;;  %v2514_v25 = vmax.f32 %v2448_v47, 0.0  ;;  %5284 = vmatmul.mubr.f32.vlgmr.msra.gmra.mrb[124].mxu0 %v7203_v22 }
 0x316   :  { %v2352_v51 = vmax.f32 %v2282_v2, 0.0  ;;  %v2513_v9 = vmax.f32 %v2443_v36, 0.0  ;;  %v4941_v0 = vpop.f32.mrb[106].mxu1  ;;  %v4997_v49 = vpop.f32.mrb[94].mxu0  ;;  %5890 = vmatpush3.bf16.msra.mxu1 %v5889_v54  ;;  %5914 = vmatpush3.bf16.msra.mxu0 %v5913_v27 }
 0x317   :  { %v2297_v18 = vadd.f32 %v4941_v0, %v7171_v14  ;;  %v2458_v39 = vadd.f32 %v4997_v49, %v7171_v14  ;;  %v2291_v26 = vpop.f32.mrb[107].mxu1  ;;  %v2452_v29 = vpop.f32.mrb[95].mxu0  ;;  %5891 = vmatprep.subr.bf16.mxu1 %v6097_v48  ;;  %5915 = vmatprep.subr.bf16.mxu0 %v6097_v48 }
 0x318   :  { %v5892_v24 = vpack.c.bf16 %v2353_v38, %v2352_v51  ;;  %v5916_v12 = vpack.c.bf16 %v2514_v25, %v2513_v9  ;;  %v2292_v4 = vadd.f32 %v7171_v14, %v2291_v26  ;;  %v2453_v52 = vadd.f32 %v7171_v14, %v2452_v29  ;;  %5353 = vmatprep.mubr.msk.f32.mxu0 %vm6098_vm1, %v6099_v19 }
 0x319   :  { %v2355_v20 = vmax.f32 %v2297_v18, 0.0  ;;  %v2516_v33 = vmax.f32 %v2458_v39, 0.0 }
 0x31a   :  { %v2354_v7 = vmax.f32 %v2292_v4, 0.0  ;;  %v2515_v15 = vmax.f32 %v2453_v52, 0.0  ;;  %v4944_v50 = vpop.f32.mrb[108].mxu1  ;;  %v5000_v13 = vpop.f32.mrb[96].mxu0  ;;  %5893 = vmatpush3.bf16.msra.mxu1 %v5892_v24  ;;  %5917 = vmatpush3.bf16.msra.mxu0 %v5916_v12 }
 0x31b   :  { %v2307_v44 = vadd.f32 %v4944_v50, %v7171_v14  ;;  %v2468_v53 = vadd.f32 %v5000_v13, %v7171_v14  ;;  %v2301_v32 = vpop.f32.mrb[109].mxu1  ;;  %v2462_v40 = vpop.f32.mrb[97].mxu0  ;;  %5894 = vmatprep.subr.bf16.mxu1 %v6097_v48  ;;  %5918 = vmatprep.subr.bf16.mxu0 %v6097_v48 }
 0x31c   :  { %v5895_v35 = vpack.c.bf16 %v2355_v20, %v2354_v7  ;;  %v5919_v5 = vpack.c.bf16 %v2516_v33, %v2515_v15  ;;  %v2302_v41 = vadd.f32 %v7171_v14, %v2301_v32  ;;  %v2463_v23 = vadd.f32 %v7171_v14, %v2462_v40 }
 0x31d   :  { %v2357_v11 = vmax.f32 %v2307_v44, 0.0  ;;  %v2518_v28 = vmax.f32 %v2468_v53, 0.0 }
 0x31e   :  { %v2356_v55 = vmax.f32 %v2302_v41, 0.0  ;;  %v2517_v8 = vmax.f32 %v2463_v23, 0.0  ;;  %v4947_v17 = vpop.f32.mrb[110].mxu1  ;;  %v5003_v31 = vpop.f32.mrb[98].mxu0  ;;  %5896 = vmatpush3.bf16.msra.mxu1 %v5895_v35  ;;  %5920 = vmatpush3.bf16.msra.mxu0 %v5919_v5 }
 0x31f   :  { %v2317_v10 = vadd.f32 %v4947_v17, %v7171_v14  ;;  %v2478_v34 = vadd.f32 %v5003_v31, %v7171_v14  ;;  %v2311_v37 = vpop.f32.mrb[111].mxu1  ;;  %v2472_v62 = vpop.f32.mrb[99].mxu0  ;;  %5897 = vmatprep.subr.bf16.mxu1 %v6097_v48  ;;  %5921 = vmatprep.subr.bf16.mxu0 %v6097_v48 }
 0x320   :  { %v5898_v63 = vpack.c.bf16 %v2357_v11, %v2356_v55  ;;  %v5922_v42 = vpack.c.bf16 %v2518_v28, %v2517_v8  ;;  %v2312_v43 = vadd.f32 %v7171_v14, %v2311_v37  ;;  %v2473_v46 = vadd.f32 %v7171_v14, %v2472_v62 }
 0x321   :  { %v2359_v30 = vmax.f32 %v2317_v10, 0.0  ;;  %v2520_v58 = vmax.f32 %v2478_v34, 0.0 }
 0x322   :  { %v2358_v1 = vmax.f32 %v2312_v43, 0.0  ;;  %v2519_v56 = vmax.f32 %v2473_v46, 0.0  ;;  %v4950_v6 = vpop.f32.mrb[112].mxu1  ;;  %v5006_v57 = vpop.f32.mrb[100].mxu0  ;;  %5899 = vmatpush3.bf16.msra.mxu1 %v5898_v63  ;;  %5923 = vmatpush3.bf16.msra.mxu0 %v5922_v42 }
 0x323   :  { %v2327_v21 = vadd.f32 %v4950_v6, %v7171_v14  ;;  %v2488_v61 = vadd.f32 %v5006_v57, %v7171_v14  ;;  %v2321_v16 = vpop.f32.mrb[113].mxu1  ;;  %v2482_v45 = vpop.f32.mrb[101].mxu0  ;;  %5900 = vmatprep.subr.bf16.mxu1 %v6097_v48  ;;  %5924 = vmatprep.subr.bf16.mxu0 %v6097_v48 }
 0x324   :  { %v5901_v59 = vpack.c.bf16 %v2359_v30, %v2358_v1  ;;  %v5925_v47 = vpack.c.bf16 %v2520_v58, %v2519_v56  ;;  %v2322_v3 = vadd.f32 %v7171_v14, %v2321_v16  ;;  %v2483_v60 = vadd.f32 %v7171_v14, %v2482_v45 }
 0x325   :  { %v2361_v54 = vmax.f32 %v2327_v21, 0.0  ;;  %v2522_v27 = vmax.f32 %v2488_v61, 0.0 }
 0x326   :  { %v2360_v2 = vmax.f32 %v2322_v3, 0.0  ;;  %v2521_v36 = vmax.f32 %v2483_v60, 0.0  ;;  %v4953_v38 = vpop.f32.mrb[114].mxu1  ;;  %v5009_v25 = vpop.f32.mrb[102].mxu0  ;;  %5902 = vmatpush3.bf16.msra.mxu1 %v5901_v59  ;;  %5926 = vmatpush3.bf16.msra.mxu0 %v5925_v47 }
 0x327   :  { %v2337_v51 = vadd.f32 %v4953_v38, %v7171_v14  ;;  %v2498_v9 = vadd.f32 %v5009_v25, %v7171_v14  ;;  %v2331_v0 = vpop.f32.mrb[115].mxu1  ;;  %v2492_v49 = vpop.f32.mrb[103].mxu0  ;;  %5903 = vmatprep.subr.bf16.mxu1 %v6097_v48  ;;  %5927 = vmatprep.subr.bf16.mxu0 %v6097_v48 }
 0x328   :  { %v5904_v18 = vpack.c.bf16 %v2361_v54, %v2360_v2  ;;  %v5928_v39 = vpack.c.bf16 %v2522_v27, %v2521_v36  ;;  %v2332_v26 = vadd.f32 %v7171_v14, %v2331_v0  ;;  %v2493_v29 = vadd.f32 %v7171_v14, %v2492_v49 }
 0x329   :  { %v2363_v24 = vmax.f32 %v2337_v51, 0.0  ;;  %v2524_v12 = vmax.f32 %v2498_v9, 0.0 }
 0x32a   :  { %v2362_v4 = vmax.f32 %v2332_v26, 0.0  ;;  %v2523_v52 = vmax.f32 %v2493_v29, 0.0  ;;  %v4956_v20 = vpop.f32.mrb[116].mxu1  ;;  %v5012_v33 = vpop.f32.mrb[104].mxu0  ;;  %5905 = vmatpush3.bf16.msra.mxu1 %v5904_v18  ;;  %5929 = vmatpush3.bf16.msra.mxu0 %v5928_v39 }
 0x32b   :  { %v2347_v7 = vadd.f32 %v4956_v20, %v7171_v14  ;;  %v2508_v15 = vadd.f32 %v5012_v33, %v7171_v14  ;;  %v2341_v50 = vpop.f32.mrb[117].mxu1  ;;  %v2502_v13 = vpop.f32.mrb[105].mxu0  ;;  %5906 = vmatprep.subr.bf16.mxu1 %v6097_v48  ;;  %5930 = vmatprep.subr.bf16.mxu0 %v6097_v48 }
 0x32c   :  { %v5907_v44 = vpack.c.bf16 %v2363_v24, %v2362_v4  ;;  %v5931_v53 = vpack.c.bf16 %v2524_v12, %v2523_v52  ;;  %v2342_v32 = vadd.f32 %v7171_v14, %v2341_v50  ;;  %v2503_v40 = vadd.f32 %v7171_v14, %v2502_v13 }
 0x32d   :  { %v2365_v35 = vmax.f32 %v2347_v7, 0.0  ;;  %v2526_v5 = vmax.f32 %v2508_v15, 0.0 }
 0x32e   :  { %v2364_v41 = vmax.f32 %v2342_v32, 0.0  ;;  %v2525_v23 = vmax.f32 %v2503_v40, 0.0  ;;  %v5047_v11 = vpop.f32.mrb[118].mxu1  ;;  %5908 = vmatpush3.bf16.msra.mxu1 %v5907_v44  ;;  %5932 = vmatpush3.bf16.msra.mxu0 %v5931_v53 }
 0x32f   :  { %v2599_v28 = vadd.f32 %v5047_v11, %v7171_v14  ;;  %v5103_v55 = vpop.f32.mrb[106].mxu0  ;;  %v2593_v8 = vpop.f32.mrb[119].mxu1  ;;  %5909 = vmatprep.subr.bf16.mxu1 %v6097_v48  ;;  %5933 = vmatprep.subr.bf16.mxu0 %v6097_v48 }
 0x330   :  { %v5910_v17 = vpack.c.bf16 %v2365_v35, %v2364_v41  ;;  %v5934_v31 = vpack.c.bf16 %v2526_v5, %v2525_v23  ;;  %v2760_v10 = vadd.f32 %v5103_v55, %v7171_v14  ;;  %v2594_v34 = vadd.f32 %v7171_v14, %v2593_v8  ;;  %v2754_v37 = vpop.f32.mrb[107].mxu0 }
 0x331   :  { %v2673_v62 = vmax.f32 %v2599_v28, 0.0  ;;  %v2755_v63 = vadd.f32 %v7171_v14, %v2754_v37 }
 0x332   :  { %v2834_v42 = vmax.f32 %v2760_v10, 0.0  ;;  %v2672_v43 = vmax.f32 %v2594_v34, 0.0  ;;  %v5050_v46 = vpop.f32.mrb[120].mxu1  ;;  %5911 = vmatpush3.bf16.msra.mxu1 %v5910_v17  ;;  %5935 = vmatpush3.bf16.msra.mxu0 %v5934_v31 }
 0x333   :  { %v2833_v30 = vmax.f32 %v2755_v63, 0.0  ;;  %v2609_v58 = vadd.f32 %v5050_v46, %v7171_v14  ;;  %v5106_v1 = vpop.f32.mrb[108].mxu0  ;;  %v2603_v56 = vpop.f32.mrb[121].mxu1  ;;  %5936 = vmatprep.subr.bf16.mxu1 %v6097_v48  ;;  %5960 = vmatprep.subr.bf16.mxu0 %v6097_v48 }
 0x334   :  { %v5937_v6 = vpack.c.bf16 %v2673_v62, %v2672_v43  ;;  %v2770_v57 = vadd.f32 %v5106_v1, %v7171_v14  ;;  %v2604_v21 = vadd.f32 %v7171_v14, %v2603_v56  ;;  %v2764_v61 = vpop.f32.mrb[109].mxu0 }
 0x335   :  { %v5961_v16 = vpack.c.bf16 %v2834_v42, %v2833_v30  ;;  %v2675_v45 = vmax.f32 %v2609_v58, 0.0  ;;  %v2765_v59 = vadd.f32 %v7171_v14, %v2764_v61  ;;  %5319 = vmatmul.mubr.f32.vlgmr.msra.gmra.mrb[152].mxu1 %v7203_v22  ;;  %5354 = vmatmul.mubr.f32.vlgmr.msra.gmra.mrb[126].mxu0 %v7203_v22 }
 0x336   :  { %v2836_v47 = vmax.f32 %v2770_v57, 0.0  ;;  %v2674_v3 = vmax.f32 %v2604_v21, 0.0  ;;  %v5053_v60 = vpop.f32.mrb[122].mxu1  ;;  %5938 = vmatpush3.bf16.msra.mxu1 %v5937_v6  ;;  %5388 = vmatprep.mubr.msk.f32.mxu1 %vm6098_vm1, %v6099_v19 }
 0x337   :  { %v2835_v54 = vmax.f32 %v2765_v59, 0.0  ;;  %v2619_v27 = vadd.f32 %v5053_v60, %v7171_v14  ;;  %v5109_v2 = vpop.f32.mrb[110].mxu0  ;;  %5962 = vmatpush3.bf16.msra.mxu0 %v5961_v16  ;;  %v2613_v36 = vpop.f32.mrb[123].mxu1  ;;  %5939 = vmatprep.subr.bf16.mxu1 %v6097_v48 }
 0x338   :  { %v5940_v38 = vpack.c.bf16 %v2675_v45, %v2674_v3  ;;  %v2780_v25 = vadd.f32 %v5109_v2, %v7171_v14  ;;  %v2614_v51 = vadd.f32 %v7171_v14, %v2613_v36  ;;  %v2774_v9 = vpop.f32.mrb[111].mxu0  ;;  %5963 = vmatprep.subr.bf16.mxu0 %v6097_v48  ;;  %5423 = vmatprep.mubr.msk.f32.mxu0 %vm6098_vm1, %v6099_v19 }
 0x339   :  { %v5964_v0 = vpack.c.bf16 %v2836_v47, %v2835_v54  ;;  %v2677_v49 = vmax.f32 %v2619_v27, 0.0  ;;  %v2775_v18 = vadd.f32 %v7171_v14, %v2774_v9 }
 0x33a   :  { %v2838_v39 = vmax.f32 %v2780_v25, 0.0  ;;  %v2676_v26 = vmax.f32 %v2614_v51, 0.0  ;;  %v5056_v29 = vpop.f32.mrb[124].mxu1  ;;  %5941 = vmatpush3.bf16.msra.mxu1 %v5940_v38 }
 0x33b   :  { %v2837_v24 = vmax.f32 %v2775_v18, 0.0  ;;  %v2629_v12 = vadd.f32 %v5056_v29, %v7171_v14  ;;  %v5112_v4 = vpop.f32.mrb[112].mxu0  ;;  %5965 = vmatpush3.bf16.msra.mxu0 %v5964_v0  ;;  %v2623_v52 = vpop.f32.mrb[125].mxu1  ;;  %5942 = vmatprep.subr.bf16.mxu1 %v6097_v48 }
 0x33c   :  { %v5943_v20 = vpack.c.bf16 %v2677_v49, %v2676_v26  ;;  %v2790_v33 = vadd.f32 %v5112_v4, %v7171_v14  ;;  %v2624_v7 = vadd.f32 %v7171_v14, %v2623_v52  ;;  %v2784_v15 = vpop.f32.mrb[113].mxu0  ;;  %5966 = vmatprep.subr.bf16.mxu0 %v6097_v48 }
 0x33d   :  { %v5967_v50 = vpack.c.bf16 %v2838_v39, %v2837_v24  ;;  %v2679_v13 = vmax.f32 %v2629_v12, 0.0  ;;  %v2785_v44 = vadd.f32 %v7171_v14, %v2784_v15 }
 0x33e   :  { %v2840_v53 = vmax.f32 %v2790_v33, 0.0  ;;  %v2678_v32 = vmax.f32 %v2624_v7, 0.0  ;;  %v5059_v40 = vpop.f32.mrb[126].mxu1  ;;  %5944 = vmatpush3.bf16.msra.mxu1 %v5943_v20 }
 0x33f   :  { %v2839_v35 = vmax.f32 %v2785_v44, 0.0  ;;  %v2639_v5 = vadd.f32 %v5059_v40, %v7171_v14  ;;  %v5115_v41 = vpop.f32.mrb[114].mxu0  ;;  %5968 = vmatpush3.bf16.msra.mxu0 %v5967_v50  ;;  %v2633_v23 = vpop.f32.mrb[127].mxu1  ;;  %5945 = vmatprep.subr.bf16.mxu1 %v6097_v48 }
 0x340   :  { %v5946_v11 = vpack.c.bf16 %v2679_v13, %v2678_v32  ;;  %v2800_v28 = vadd.f32 %v5115_v41, %v7171_v14  ;;  %v2634_v55 = vadd.f32 %v7171_v14, %v2633_v23  ;;  %v2794_v8 = vpop.f32.mrb[115].mxu0  ;;  %5969 = vmatprep.subr.bf16.mxu0 %v6097_v48 }
 0x341   :  { %v5970_v17 = vpack.c.bf16 %v2840_v53, %v2839_v35  ;;  %v2681_v31 = vmax.f32 %v2639_v5, 0.0  ;;  %v2795_v10 = vadd.f32 %v7171_v14, %v2794_v8  ;;  %v7362_v35 = vld [vmem:[%s7424_s6] ss:$0 sm:$0xff] }
 0x342   :  { %v2842_v34 = vmax.f32 %v2800_v28, 0.0  ;;  %v2680_v37 = vmax.f32 %v2634_v55, 0.0  ;;  %v5062_v62 = vpop.f32.mrb[128].mxu1  ;;  %5947 = vmatpush3.bf16.msra.mxu1 %v5946_v11 }
 0x343   :  { %v2841_v63 = vmax.f32 %v2795_v10, 0.0  ;;  %v2649_v42 = vadd.f32 %v5062_v62, %v7171_v14  ;;  %v5118_v43 = vpop.f32.mrb[116].mxu0  ;;  %5971 = vmatpush3.bf16.msra.mxu0 %v5970_v17  ;;  %v2643_v46 = vpop.f32.mrb[129].mxu1  ;;  %5948 = vmatprep.subr.bf16.mxu1 %v6097_v48 }
 0x344   :  { %v5949_v30 = vpack.c.bf16 %v2681_v31, %v2680_v37  ;;  %v2810_v58 = vadd.f32 %v5118_v43, %v7171_v14  ;;  %v2644_v1 = vadd.f32 %v7171_v14, %v2643_v46  ;;  %v2804_v56 = vpop.f32.mrb[117].mxu0  ;;  %5972 = vmatprep.subr.bf16.mxu0 %v6097_v48 }
 0x345   :  { %v5973_v6 = vpack.c.bf16 %v2842_v34, %v2841_v63  ;;  %v2683_v57 = vmax.f32 %v2649_v42, 0.0  ;;  %v2805_v21 = vadd.f32 %v7171_v14, %v2804_v56 }
 0x346   :  { %v2844_v61 = vmax.f32 %v2810_v58, 0.0  ;;  %v2682_v16 = vmax.f32 %v2644_v1, 0.0  ;;  %v5065_v45 = vpop.f32.mrb[130].mxu1  ;;  %5950 = vmatpush3.bf16.msra.mxu1 %v5949_v30 }
 0x347   :  { %v2843_v59 = vmax.f32 %v2805_v21, 0.0  ;;  %v2659_v47 = vadd.f32 %v5065_v45, %v7171_v14  ;;  %v5121_v3 = vpop.f32.mrb[118].mxu0  ;;  %5974 = vmatpush3.bf16.msra.mxu0 %v5973_v6  ;;  %v2653_v60 = vpop.f32.mrb[131].mxu1  ;;  %5951 = vmatprep.subr.bf16.mxu1 %v6097_v48 }
 0x348   :  { %v5952_v54 = vpack.c.bf16 %v2683_v57, %v2682_v16  ;;  %v2820_v27 = vadd.f32 %v5121_v3, %v7171_v14  ;;  %v2654_v2 = vadd.f32 %v7171_v14, %v2653_v60  ;;  %v2814_v36 = vpop.f32.mrb[119].mxu0  ;;  %5975 = vmatprep.subr.bf16.mxu0 %v6097_v48 }
 0x349   :  { %v5976_v38 = vpack.c.bf16 %v2844_v61, %v2843_v59  ;;  %v2685_v25 = vmax.f32 %v2659_v47, 0.0  ;;  %v2815_v51 = vadd.f32 %v7171_v14, %v2814_v36 }
 0x34a   :  { %v2846_v9 = vmax.f32 %v2820_v27, 0.0  ;;  %v2684_v0 = vmax.f32 %v2654_v2, 0.0  ;;  %v5068_v49 = vpop.f32.mrb[132].mxu1  ;;  %5953 = vmatpush3.bf16.msra.mxu1 %v5952_v54 }
 0x34b   :  { %v2845_v18 = vmax.f32 %v2815_v51, 0.0  ;;  %v2669_v39 = vadd.f32 %v5068_v49, %v7171_v14  ;;  %v5124_v26 = vpop.f32.mrb[120].mxu0  ;;  %5977 = vmatpush3.bf16.msra.mxu0 %v5976_v38  ;;  %v2663_v29 = vpop.f32.mrb[133].mxu1  ;;  %5954 = vmatprep.subr.bf16.mxu1 %v6097_v48 }
 0x34c   :  { %v5955_v24 = vpack.c.bf16 %v2685_v25, %v2684_v0  ;;  %v2830_v12 = vadd.f32 %v5124_v26, %v7171_v14  ;;  %v2664_v4 = vadd.f32 %v7171_v14, %v2663_v29  ;;  %v2824_v52 = vpop.f32.mrb[121].mxu0  ;;  %5978 = vmatprep.subr.bf16.mxu0 %v6097_v48 }
 0x34d   :  { %v5979_v20 = vpack.c.bf16 %v2846_v9, %v2845_v18  ;;  %v2687_v33 = vmax.f32 %v2669_v39, 0.0  ;;  %v2825_v7 = vadd.f32 %v7171_v14, %v2824_v52 }
 0x34e   :  { %v2848_v15 = vmax.f32 %v2830_v12, 0.0  ;;  %v2686_v50 = vmax.f32 %v2664_v4, 0.0  ;;  %v5159_v13 = vpop.f32.mrb[134].mxu1  ;;  %5956 = vmatpush3.bf16.msra.mxu1 %v5955_v24 }
 0x34f   :  { %v2847_v44 = vmax.f32 %v2825_v7, 0.0  ;;  %v2921_v53 = vadd.f32 %v5159_v13, %v7171_v14  ;;  %5980 = vmatpush3.bf16.msra.mxu0 %v5979_v20  ;;  %v2915_v32 = vpop.f32.mrb[135].mxu1  ;;  %5957 = vmatprep.subr.bf16.mxu1 %v6097_v48  ;;  %v3628_v13 = vld [vmem:[#allocation2 + $0x10] sm:$0xff] }
 0x350   :  { %v5958_v40 = vpack.c.bf16 %v2687_v33, %v2686_v50  ;;  %v2916_v5 = vadd.f32 %v7362_v35, %v2915_v32  ;;  %5981 = vmatprep.subr.bf16.mxu0 %v6097_v48  ;;  %v3627_v50 = vld [vmem:[#allocation2 + $0x8] sm:$0xff] }
 0x351   :  { %v5982_v41 = vpack.c.bf16 %v2848_v15, %v2847_v44  ;;  %v2995_v23 = vmax.f32 %v2921_v53, 0.0  ;;  %v3626_v15 = vld [vmem:[#allocation2] sm:$0xff]  ;;  %v3629_v53 = vld [vmem:[#allocation2 + $0x18] sm:$0xff] }
 0x352   :  { %v2994_v11 = vmax.f32 %v2916_v5, 0.0  ;;  %v5162_v28 = vpop.f32.mrb[136].mxu1  ;;  %5959 = vmatpush3.bf16.msra.mxu1 %v5958_v40  ;;  %v6009_v44 = vpack.c.bf16 %v3627_v50, %v3626_v15  ;;  %v6012_v32 = vpack.c.bf16 %v3629_v53, %v3628_v13  ;;  %v3630_v40 = vld [vmem:[#allocation2 + $0x20] sm:$0xff] }
 0x353   :  { %v2931_v14 = vadd.f32 %v7362_v35, %v5162_v28  ;;  %5983 = vmatpush3.bf16.msra.mxu0 %v5982_v41  ;;  %v2925_v55 = vpop.f32.mrb[137].mxu1  ;;  %5984 = vmatprep.subr.bf16.mxu1 %v6097_v48  ;;  %v3632_v41 = vld [vmem:[#allocation2 + $0x30] sm:$0xff]  ;;  %v3635_v28 = vld [vmem:[#allocation2 + $0x48] sm:$0xff] }
 0x354   :  { %v5985_v8 = vpack.c.bf16 %v2995_v23, %v2994_v11  ;;  %v2926_v17 = vadd.f32 %v7362_v35, %v2925_v55  ;;  %6008 = vmatprep.subr.bf16.mxu0 %v6097_v48  ;;  %v3633_v23 = vld [vmem:[#allocation2 + $0x38] sm:$0xff] }
 0x355   :  { %v2997_v31 = vmax.f32 %v2931_v14, 0.0  ;;  %5389 = vmatmul.mubr.f32.vlgmr.msra.gmra.mrb[154].mxu1 %v7203_v22  ;;  %v6018_v11 = vpack.c.bf16 %v3633_v23, %v3632_v41 }
 0x356   :  { %v2996_v10 = vmax.f32 %v2926_v17, 0.0  ;;  %5424 = vmatmul.mubr.f32.vlgmr.msra.gmra.mrb[128].mxu0 %v7203_v22  ;;  %v5165_v34 = vpop.f32.mrb[138].mxu1  ;;  %5986 = vmatpush3.bf16.msra.mxu1 %v5985_v8  ;;  %v3636_v17 = vld [vmem:[#allocation2 + $0x50] sm:$0xff] }
 0x357   :  { %v2941_v37 = vadd.f32 %v7362_v35, %v5165_v34  ;;  %v2935_v62 = vpop.f32.mrb[139].mxu1  ;;  %5987 = vmatprep.subr.bf16.mxu1 %v6097_v48  ;;  %5458 = vmatprep.mubr.msk.f32.mxu1 %vm6098_vm1, %v6099_v19  ;;  %v3638_v34 = vld [vmem:[#allocation2 + $0x60] sm:$0xff] }
 0x358   :  { %v5988_v63 = vpack.c.bf16 %v2997_v31, %v2996_v10  ;;  %v2936_v42 = vadd.f32 %v7362_v35, %v2935_v62  ;;  %5493 = vmatprep.mubr.msk.f32.mxu0 %vm6098_vm1, %v6099_v19  ;;  %6010 = vmatpush3.bf16.msra.mxu0 %v6009_v44  ;;  %v3637_v31 = vld [vmem:[#allocation2 + $0x58] sm:$0xff] }
 0x359   :  { %v2999_v43 = vmax.f32 %v2941_v37, 0.0  ;;  %6011 = vmatprep.subr.bf16.mxu0 %v6097_v48  ;;  %v6024_v10 = vpack.c.bf16 %v3637_v31, %v3636_v17  ;;  %v3639_v37 = vld [vmem:[#allocation2 + $0x68] sm:$0xff] }
 0x35a   :  { %v2998_v46 = vmax.f32 %v2936_v42, 0.0  ;;  %v5168_v30 = vpop.f32.mrb[140].mxu1  ;;  %5989 = vmatpush3.bf16.msra.mxu1 %v5988_v63  ;;  %v6027_v62 = vpack.c.bf16 %v3639_v37, %v3638_v34  ;;  %v3640_v63 = vld [vmem:[#allocation2 + $0x70] sm:$0xff]  ;;  %v3641_v42 = vld [vmem:[#allocation2 + $0x78] sm:$0xff] }
 0x35b   :  { %v2951_v58 = vadd.f32 %v7362_v35, %v5168_v30  ;;  %v2945_v1 = vpop.f32.mrb[141].mxu1  ;;  %5990 = vmatprep.subr.bf16.mxu1 %v6097_v48 }
 0x35c   :  { %v5991_v56 = vpack.c.bf16 %v2999_v43, %v2998_v46  ;;  %v2946_v6 = vadd.f32 %v7362_v35, %v2945_v1  ;;  %6013 = vmatpush3.bf16.msra.mxu0 %v6012_v32  ;;  %v6030_v43 = vpack.c.bf16 %v3641_v42, %v3640_v63  ;;  %v3017_v46 = vpop.permute.xlu0 %3016 }
 0x35d   :  { %v3001_v57 = vmax.f32 %v2951_v58, 0.0  ;;  %6014 = vmatprep.subr.bf16.mxu0 %v6097_v48  ;;  %v3021_v30 = vrot.slane %v3017_v46, 7 }
 0x35e   :  { %v3000_v21 = vmax.f32 %v2946_v6, 0.0  ;;  %v5171_v61 = vpop.f32.mrb[142].mxu1  ;;  %5992 = vmatpush3.bf16.msra.mxu1 %v5991_v56 }
 0x35f   :  { %v2961_v16 = vadd.f32 %v7362_v35, %v5171_v61  ;;  %v2955_v45 = vpop.f32.mrb[143].mxu1  ;;  %5993 = vmatprep.subr.bf16.mxu1 %v6097_v48 }
 0x360   :  { %v5994_v19 = vpack.c.bf16 %v3001_v57, %v3000_v21  ;;  %v2956_v59 = vadd.f32 %v7362_v35, %v2955_v45 }
 0x361   :  { %v3003_v47 = vmax.f32 %v2961_v16, 0.0 }
 0x362   :  { %v3002_v3 = vmax.f32 %v2956_v59, 0.0  ;;  %v5174_v60 = vpop.f32.mrb[144].mxu1  ;;  %5995 = vmatpush3.bf16.msra.mxu1 %v5994_v19 }
 0x363   :  { %v2971_v54 = vadd.f32 %v7362_v35, %v5174_v60  ;;  %v2965_v27 = vpop.f32.mrb[145].mxu1  ;;  %5996 = vmatprep.subr.bf16.mxu1 %v6097_v48 }
 0x364   :  { %v5997_v2 = vpack.c.bf16 %v3003_v47, %v3002_v3  ;;  %v2966_v36 = vadd.f32 %v7362_v35, %v2965_v27 }
 0x365   :  { %v3005_v38 = vmax.f32 %v2971_v54, 0.0 }
 0x366   :  { %v3004_v25 = vmax.f32 %v2966_v36, 0.0  ;;  %v5177_v51 = vpop.f32.mrb[146].mxu1  ;;  %5998 = vmatpush3.bf16.msra.mxu1 %v5997_v2 }
 0x367   :  { %v2981_v9 = vadd.f32 %v7362_v35, %v5177_v51  ;;  %v2975_v0 = vpop.f32.mrb[147].mxu1  ;;  %5999 = vmatprep.subr.bf16.mxu1 %v6097_v48 }
 0x368   :  { %v6000_v49 = vpack.c.bf16 %v3005_v38, %v3004_v25  ;;  %v2976_v18 = vadd.f32 %v7362_v35, %v2975_v0 }
 0x369   :  { %v3007_v39 = vmax.f32 %v2981_v9, 0.0 }
 0x36a   :  { %v3006_v26 = vmax.f32 %v2976_v18, 0.0  ;;  %v5180_v29 = vpop.f32.mrb[148].mxu1  ;;  %6001 = vmatpush3.bf16.msra.mxu1 %v6000_v49 }
 0x36b   :  { %v2991_v24 = vadd.f32 %v7362_v35, %v5180_v29  ;;  %v2985_v12 = vpop.f32.mrb[149].mxu1  ;;  %6002 = vmatprep.subr.bf16.mxu1 %v6097_v48 }
 0x36c   :  { %v6003_v4 = vpack.c.bf16 %v3007_v39, %v3006_v26  ;;  %v2986_v52 = vadd.f32 %v7362_v35, %v2985_v12  ;;  %v3631_v35 = vld [vmem:[#allocation2 + $0x28] sm:$0xff] }
 0x36d   :  { %v3009_v20 = vmax.f32 %v2991_v24, 0.0  ;;  %v6015_v5 = vpack.c.bf16 %v3631_v35, %v3630_v40 }
 0x36e   :  { %v3008_v33 = vmax.f32 %v2986_v52, 0.0  ;;  %6004 = vmatpush3.bf16.msra.mxu1 %v6003_v4 }
 0x36f   :  { %6005 = vmatprep.subr.bf16.mxu1 %v6097_v48  ;;  %6016 = vmatpush3.bf16.msra.mxu0 %v6015_v5  ;;  %v3867_v5 = vld [vmem:[%s7427_s9] ss:$0 sm:$0xff] }
 0x370   :  { %v6006_v7 = vpack.c.bf16 %v3009_v20, %v3008_v33  ;;  %6017 = vmatprep.subr.bf16.mxu0 %v6097_v48 }
 0x372   :  { %6007 = vmatpush3.bf16.msra.mxu1 %v6006_v7 }
 0x373   :  { %6019 = vmatpush3.bf16.msra.mxu0 %v6018_v11 }
 0x374   :  { %6020 = vmatprep.subr.bf16.mxu0 %v6097_v48 }
 0x375   :  { %5459 = vmatmul.mubr.f32.vlgmr.msra.gmra.mrb[156].mxu1 %v7203_v22  ;;  %v3634_v22 = vld [vmem:[#allocation2 + $0x40] sm:$0xff] }
 0x376   :  { %v6021_v8 = vpack.c.bf16 %v3635_v28, %v3634_v22 }
 0x378   :  { %6022 = vmatpush3.bf16.msra.mxu0 %v6021_v8 }
 0x379   :  { %6023 = vmatprep.subr.bf16.mxu0 %v6097_v48 }
 0x37c   :  { %6025 = vmatpush3.bf16.msra.mxu0 %v6024_v10 }
 0x37d   :  { %6026 = vmatprep.subr.bf16.mxu0 %v6097_v48 }
 0x380   :  { %6028 = vmatpush3.bf16.msra.mxu0 %v6027_v62 }
 0x381   :  { %6029 = vmatprep.subr.bf16.mxu0 %v6097_v48 }
 0x384   :  { %6031 = vmatpush3.bf16.msra.mxu0 %v6030_v43 }
 0x3bc   :  { %v3089_v14 = vpop.f32.mrb[122].mxu0 }
 0x3bd   :  { %v5215_v55 = vpop.f32.mrb[123].mxu0  ;;  %v3090_v1 = vadd.f32 %v3089_v14, %v3021_v30 }
 0x3bf   :  { %v3093_v21 = vmax.f32 %v3090_v1, 0.0 }
 0x3dc   :  { %v3160_v58 = vpop.f32.mrb[150].mxu1 }
 0x3dd   :  { %v3161_v56 = vadd.f32 %v3160_v58, %v3021_v30  ;;  %v5250_v6 = vpop.f32.mrb[151].mxu1 }
 0x3df   :  { %v3164_v57 = vmax.f32 %v3161_v56, 0.0 }
 0x3e1   :  { %v3592_v61 = vrot.slane %v3164_v57, 7 }
 0x3e3   :  { %v3613_v16 = vsel %vm3612_vm2, %v3093_v21, %v3592_v61 }
 0x3e8   :  { %v3231_v45 = vpop.f32.mrb[124].mxu0 }
 0x3e9   :  { %v3232_v19 = vadd.f32 %v3231_v45, %v3021_v30  ;;  %v5285_v59 = vpop.f32.mrb[125].mxu0 }
 0x3eb   :  { %v3235_v47 = vmax.f32 %v3232_v19, 0.0 }
 0x3ed   :  { %v3595_v48 = vrot.slane %v3235_v47, 6 }
 0x3ef   :  { %v3615_v3 = vsel %vm3614_vm3, %v3613_v16, %v3595_v48 }
 0x408   :  { %v3302_v60 = vpop.f32.mrb[152].mxu1  ;;  %v3373_v54 = vpop.f32.mrb[126].mxu0 }
 0x409   :  { %v3303_v27 = vadd.f32 %v3302_v60, %v3021_v30  ;;  %v3374_v2 = vadd.f32 %v3373_v54, %v3021_v30  ;;  %v5320_v36 = vpop.f32.mrb[153].mxu1  ;;  %v5355_v38 = vpop.f32.mrb[127].mxu0 }
 0x40b   :  { %v3306_v25 = vmax.f32 %v3303_v27, 0.0  ;;  %v3377_v51 = vmax.f32 %v3374_v2, 0.0 }
 0x40d   :  { %v3598_v9 = vrot.slane %v3306_v25, 5  ;;  %v3601_v0 = vrot.slane %v3377_v51, 4 }
 0x40f   :  { %v3617_v49 = vsel %vm3616_vm4, %v3615_v3, %v3598_v9 }
 0x410   :  { %v3619_v18 = vsel %vm3618_vm5, %v3617_v49, %v3601_v0 }
 0x428   :  { %v3444_v39 = vpop.f32.mrb[154].mxu1 }
 0x429   :  { %v3445_v26 = vadd.f32 %v3444_v39, %v3021_v30  ;;  %v3515_v29 = vpop.f32.mrb[128].mxu0  ;;  %v5390_v24 = vpop.f32.mrb[155].mxu1 }
 0x42a   :  { %v3516_v12 = vadd.f32 %v3515_v29, %v3021_v30  ;;  %v5425_v4 = vpop.f32.mrb[129].mxu0 }
 0x42b   :  { %v3448_v52 = vmax.f32 %v3445_v26, 0.0 }
 0x42c   :  { %v3519_v20 = vmax.f32 %v3516_v12, 0.0 }
 0x42d   :  { %v3604_v33 = vrot.slane %v3448_v52, 3 }
 0x42e   :  { %v3607_v7 = vrot.slane %v3519_v20, 2 }
 0x42f   :  { %v3621_v15 = vsel %vm3620_vm6, %v3619_v18, %v3604_v33 }
 0x430   :  { %v3623_v50 = vsel %vm3622_vm7, %v3621_v15, %v3607_v7 }
 0x448   :  { %v3586_v13 = vpop.f32.mrb[156].mxu1 }
 0x449   :  { %v3587_v44 = vadd.f32 %v3586_v13, %v3021_v30  ;;  %v5460_v53 = vpop.f32.mrb[157].mxu1 }
 0x44b   :  { %v3590_v32 = vmax.f32 %v3587_v44, 0.0 }
 0x44d   :  { %v3610_v40 = vrot.slane %v3590_v32, 1 }
 0x44f   :  { %v3625_v35 = vsel %vm3624_vm8, %v3623_v50, %v3610_v40 }
 0x450   :  { %5494 = vmatmul.mubr.f32.vlgmr.msra.gmra.mrb[130].mxu0 %v3625_v35 }
 0x523   :  { %v3715_v41 = vpop.f32.mrb[130].mxu0 }
 0x524   :  { %v3716_v23 = vadd.f32 %v3867_v5, %v3715_v41  ;;  %v5495_v11 = vpop.f32.mrb[131].mxu0 }
 0x526   :  { %3719 = vst [vmem:[#allocation5] sm:$0xff] %v3716_v23 }
 0x527   :  { %6078 = shalt.err (!%p6075_p12)
}
 0x528   :  { %s6079_s13 = scalar_lea.hbm %s7428_s10, 128 }
 0x529   :  { %p6080_p13 = scmp.ne.s32.totalorder %s7428_s10, %s6079_s13  ;;  %p6083_p0 = scmp.lt.u32.totalorder %s6079_s13, %s7428_s10 }
 0x52b   :  { %p6085_p1 = pnand %p6083_p0, %p6080_p13 }
 0x52d   :  { %6088 = shalt.err (!%p6085_p1)
}
 0x52e   :  { %3729 = dma.vmem_to_hbm [thread:$0]  %s3727_s0, 128, %s7428_s10, [#allocation4]  }
 0x52f   :  { %6091 = dma.done.wait [#allocation4], 128  }
 0x530   :  { %6092 = vsyncadd [#allocation4], 4294967168 }
 0x531   :  { %3733 = vsyncpa [#allocation3], 1 }
 0x532   :  { %3734 = vsyncpa [#allocation4], 1 }

</bundles_post_ra>
